<compile_context>
chip_gen: v7x
topology: tpu7x:2x2x1
jax: 0.10.0
libtpu: 0.0.40
codegen_flags: <defaults>
</compile_context>

<pallas_src>
import functools
import math

import jax
import jax.numpy as jnp
from jax.experimental import pallas as pl
from jax.experimental.pallas import tpu as pltpu


def _round_up(x, m):
    return ((x + m - 1) // m) * m


def _masked_layer_norm(x, gamma, beta, lane_mask, n_real, eps=1e-5):
    """LayerNorm over the last dim where only the first n_real lanes are real.

    x has zeros in the padded lanes and gamma/beta are zero-padded, so the
    result also has zeros in the padded lanes.
    """
    inv_n = 1.0 / float(n_real)
    mean = jnp.sum(x, axis=-1, keepdims=True) * inv_n
    centered = jnp.where(lane_mask, x - mean, 0.0)
    var = jnp.sum(centered * centered, axis=-1, keepdims=True) * inv_n
    return centered * jax.lax.rsqrt(var + eps) * gamma + beta


def transformer_kernel(x_ref, row_bias_ref,
                       w_in_ref,
                       wq_ref, wk_ref, wv_ref, wo_ref,
                       ln1_g_ref, ln1_b_ref,
                       w1_ref, b1_ref, w2_ref, b2_ref,
                       ln2_g_ref, ln2_b_ref,
                       w_out_ref, b_out_ref,
                       out_ref,
                       *, h_real, seq_len, input_is_scalar):
    f32, bf16 = jnp.float32, jnp.bfloat16
    S = seq_len
    Bt = out_ref.shape[0]
    Hp = row_bias_ref.shape[-1]
    R = Bt * S

    # ---- hoisted parameter reads (one read / broadcast each) ----
    row_bias = row_bias_ref[...]                     # (R, Hp) f32
    ln1_g, ln1_b = ln1_g_ref[...], ln1_b_ref[...]
    b1, b2 = b1_ref[...], b2_ref[...]
    ln2_g, ln2_b = ln2_g_ref[...], ln2_b_ref[...]
    b_out = b_out_ref[...]                           # (1, Op) f32
    lane_mask = jax.lax.broadcasted_iota(jnp.int32, (1, Hp), 1) < h_real

    # ---- input projection + positional encoding + input bias ----
    if input_is_scalar:
        # Rank-1 projection: (Bt,S) x (1,Hp) broadcast multiply on the VPU.
        x_blk = x_ref[...]                           # (Bt, S) f32
        h = (x_blk[:, :, None] * w_in_ref[...][None, :, :]).reshape(R, Hp)
    else:
        h = jnp.dot(x_ref[...], w_in_ref[...],       # (R, I) @ (I, Hp) bf16
                    preferred_element_type=f32)
    h = h + row_bias                                 # (R, Hp) f32

    # ---- single-head self-attention (K/V needed at every position) ----
    h_b = h.astype(bf16)
    q = jnp.dot(h_b, wq_ref[...], preferred_element_type=f32)    # (R, Hp) f32
    k = jnp.dot(h_b, wk_ref[...], preferred_element_type=f32)
    v = jnp.dot(h_b, wv_ref[...], preferred_element_type=f32)

    # reshape while still f32 (free view when S % 8 == 0), cast to bf16 after
    qb = q.reshape(Bt, S, Hp).astype(bf16)
    kb = k.reshape(Bt, S, Hp).astype(bf16)
    vb = v.reshape(Bt, S, Hp).astype(bf16)

    scores = jnp.einsum('bqd,bkd->bqk', qb, kb,
                        preferred_element_type=f32)               # (Bt, S, S)
    scores = scores * (1.0 / math.sqrt(float(h_real)))
    scores = scores - jnp.max(scores, axis=-1, keepdims=True)
    p = jnp.exp(scores)
    # EUP approximate reciprocal (~1e-3 rel-err vs exact softmax; deliberate).
    p = p * pl.reciprocal(jnp.sum(p, axis=-1, keepdims=True), approx=True)

    attn = jnp.einsum('bqk,bkd->bqd', p.astype(bf16), vb,
                      preferred_element_type=f32)                 # (Bt, S, Hp)
    attn = jnp.dot(attn.reshape(R, Hp).astype(bf16), wo_ref[...],
                   preferred_element_type=f32)                    # (R, Hp)

    # ---- slice the last timestep BEFORE LN1/FFN: only it feeds the head ----
    last = (h + attn).reshape(Bt, S, Hp)[:, S - 1, :]             # (Bt, Hp)
    last = _masked_layer_norm(last, ln1_g, ln1_b, lane_mask, h_real)

    # ---- feed-forward on (Bt, Hp) rows only ----
    ff = jnp.dot(last.astype(bf16), w1_ref[...],
                 preferred_element_type=f32) + b1                 # (Bt, Fp)
    ff = jnp.maximum(ff, 0.0)
    ff = jnp.dot(ff.astype(bf16), w2_ref[...],
                 preferred_element_type=f32) + b2                 # (Bt, Hp)
    last = _masked_layer_norm(last + ff, ln2_g, ln2_b, lane_mask, h_real)

    # ---- output head: one lane/row-dense (Bt, Op) store per grid step ----
    y = jnp.dot(last.astype(bf16), w_out_ref[...],
                preferred_element_type=f32) + b_out               # (Bt, Op)
    out_ref[...] = y


def transformer_forward(x, params, *, batch_tile=16):
    """x: (B, S, input_size) float32 -> (B, output_size) float32."""
    B, S, I = x.shape
    H = params["w_in"].shape[1]
    F = params["w1"].shape[1]
    O = params["w_out"].shape[1]

    f32, bf16 = jnp.float32, jnp.bfloat16
    Hp = _round_up(H, 128)
    Fp = _round_up(F, 128)
    Op = _round_up(O, 128)
    Bt = max(1, batch_tile)
    Bp = _round_up(B, Bt)
    R = Bt * S
    input_is_scalar = (I == 1)

    def pad2(a, rows, cols, dtype):
        a = jnp.pad(a, ((0, rows - a.shape[0]), (0, cols - a.shape[1])))
        return a.astype(dtype)

    # zero-pad H/F/O to 128 lanes; MXU weights cast to bf16 once, here.
    w_in = pad2(params["w_in"], I, Hp, f32 if input_is_scalar else bf16)
    pos = pad2(params["pos"], S, Hp, f32)
    b_in = pad2(params["b_in"], 1, Hp, f32)
    # flat per-row bias for the (R, Hp) activation slab (pos tiled over Bt).
    row_bias = jnp.tile(pos + b_in, (Bt, 1))                     # (R, Hp) f32

    consts = [
        row_bias,
        w_in,
        pad2(params["wq"],    Hp, Hp, bf16),
        pad2(params["wk"],    Hp, Hp, bf16),
        pad2(params["wv"],    Hp, Hp, bf16),
        pad2(params["wo"],    Hp, Hp, bf16),
        pad2(params["ln1_g"], 1,  Hp, f32),
        pad2(params["ln1_b"], 1,  Hp, f32),
        pad2(params["w1"],    Hp, Fp, bf16),
        pad2(params["b1"],    1,  Fp, f32),
        pad2(params["w2"],    Fp, Hp, bf16),
        pad2(params["b2"],    1,  Hp, f32),
        pad2(params["ln2_g"], 1,  Hp, f32),
        pad2(params["ln2_b"], 1,  Hp, f32),
        pad2(params["w_out"], Hp, Op, bf16),
        pad2(params["b_out"], 1,  Op, f32),
    ]

    # x as a lane-dense 2-D slab per grid step.
    x_pad = jnp.pad(x, ((0, Bp - B), (0, 0), (0, 0)))
    if input_is_scalar:
        x_in = x_pad.reshape(Bp, S).astype(f32)                  # (Bp, S)
        x_spec = pl.BlockSpec((Bt, S), lambda b: (b, 0))
    else:
        x_in = x_pad.reshape(Bp * S, I).astype(bf16)             # (Bp*S, I)
        x_spec = pl.BlockSpec((R, I), lambda b: (b, 0))

    out_spec = pl.BlockSpec((Bt, Op), lambda b: (b, 0))

    # VMEM budget: weights (worst case double-buffered) + pipelined x/out
    # tiles + in-kernel activation slabs, with headroom; clamp to 64 MiB
    # (v7x physical VMEM).
    def nbytes(a):
        return a.size * a.dtype.itemsize
    act_bytes = 4 * (10 * R * Hp + 2 * Bt * S * S + 3 * Bt * Fp + 6 * Bt * Hp)
    footprint = (2 * sum(nbytes(c) for c in consts)
                 + 2 * (nbytes(x_in) // max(1, Bp // Bt) + Bt * Op * 4)
                 + act_bytes)
    vmem_limit = int(min(64 * 2 ** 20, max(16 * 2 ** 20, int(footprint * 1.5))))

    kernel = functools.partial(transformer_kernel, h_real=H, seq_len=S,
                               input_is_scalar=input_is_scalar)

    def make_const_spec(shape, single_buffer):
        nd = len(shape)
        idx = lambda b, _nd=nd: (0,) * _nd
        if single_buffer:
            # constant block index -> single-buffer the weights (halves VMEM)
            return pl.BlockSpec(shape, idx, pipeline_mode=pl.Buffered(1))
        return pl.BlockSpec(shape, idx)

    def run(single_buffer_weights):
        in_specs = [x_spec] + [make_const_spec(c.shape, single_buffer_weights)
                               for c in consts]
        fn = pl.pallas_call(
            kernel,
            out_shape=jax.ShapeDtypeStruct((Bp, Op), jnp.float32),
            grid_spec=pltpu.PrefetchScalarGridSpec(
                num_scalar_prefetch=0,
                grid=(Bp // Bt,),
                in_specs=in_specs,
                out_specs=out_spec,
            ),
            compiler_params=pltpu.CompilerParams(
                dimension_semantics=("parallel",),
                vmem_limit_bytes=vmem_limit),
        )
        return fn(x_in, *consts)

    if hasattr(pl, "Buffered"):
        try:
            out = jax.block_until_ready(run(True))
        except Exception:
            # pipeline_mode / Buffered(1) unsupported on this build: fall back.
            out = run(False)
    else:
        out = run(False)
    return out[:B, :O]


def make_params(key, input_size, hidden, ff, output_size, seq_len):
    ks = jax.random.split(key, 12)

    def rnd(k, shape, scale):
        return jax.random.normal(k, shape, jnp.float32) * scale

    s_h = 1.0 / (hidden ** 0.5)
    return {
        "pos":   rnd(ks[0], (seq_len, hidden), 0.02),
        "w_in":  rnd(ks[1], (input_size, hidden), 1.0 / max(1, input_size) ** 0.5),
        "b_in":  jnp.zeros((1, hidden), jnp.float32),
        "wq":    rnd(ks[2], (hidden, hidden), s_h),
        "wk":    rnd(ks[3], (hidden, hidden), s_h),
        "wv":    rnd(ks[4], (hidden, hidden), s_h),
        "wo":    rnd(ks[5], (hidden, hidden), s_h),
        "ln1_g": jnp.ones((1, hidden), jnp.float32),
        "ln1_b": jnp.zeros((1, hidden), jnp.float32),
        "w1":    rnd(ks[6], (hidden, ff), s_h),
        "b1":    jnp.zeros((1, ff), jnp.float32),
        "w2":    rnd(ks[7], (ff, hidden), 1.0 / ff ** 0.5),
        "b2":    jnp.zeros((1, hidden), jnp.float32),
        "ln2_g": jnp.ones((1, hidden), jnp.float32),
        "ln2_b": jnp.zeros((1, hidden), jnp.float32),
        "w_out": rnd(ks[8], (hidden, output_size), s_h),
        "b_out": jnp.zeros((1, output_size), jnp.float32),
    }


if __name__ == "__main__":
    # Small shapes consistent with the module signature:
    #   input_size=1, hidden_layer_size=32 (small stand-in for 100), output_size=1
    # B=32 with batch_tile=16 -> R = 128 rows per MXU pass and a 2-step
    # "parallel" grid (so a v7x megacore can use both TensorCores).
    B, S, I, H, F, O = 32, 8, 1, 32, 64, 1

    key = jax.random.PRNGKey(0)
    k_x, k_p = jax.random.split(key)
    x = jax.random.normal(k_x, (B, S, I), jnp.float32)
    params = make_params(k_p, I, H, F, O, S)

    out = transformer_forward(x, params, batch_tile=16)
    out = jax.block_until_ready(out)
    assert out.shape == (B, O) and out.dtype == jnp.float32
    assert bool(jnp.all(jnp.isfinite(out)))
    print("KERNEL_OK")
</pallas_src>

<mosaic_0001>
module attributes {stable_mosaic.version = 11 : i64} {
  func.func @transformer_kernel(%arg0: i32, %arg1: memref<16x8xf32, #tpu.memory_space<vmem>>, %arg2: memref<128x128xf32, #tpu.memory_space<vmem>>, %arg3: memref<1x128xf32, #tpu.memory_space<vmem>>, %arg4: memref<128x128xbf16, #tpu.memory_space<vmem>>, %arg5: memref<128x128xbf16, #tpu.memory_space<vmem>>, %arg6: memref<128x128xbf16, #tpu.memory_space<vmem>>, %arg7: memref<128x128xbf16, #tpu.memory_space<vmem>>, %arg8: memref<1x128xf32, #tpu.memory_space<vmem>>, %arg9: memref<1x128xf32, #tpu.memory_space<vmem>>, %arg10: memref<128x128xbf16, #tpu.memory_space<vmem>>, %arg11: memref<1x128xf32, #tpu.memory_space<vmem>>, %arg12: memref<128x128xbf16, #tpu.memory_space<vmem>>, %arg13: memref<1x128xf32, #tpu.memory_space<vmem>>, %arg14: memref<1x128xf32, #tpu.memory_space<vmem>>, %arg15: memref<1x128xf32, #tpu.memory_space<vmem>>, %arg16: memref<128x128xbf16, #tpu.memory_space<vmem>>, %arg17: memref<1x128xf32, #tpu.memory_space<vmem>>, %arg18: memref<16x128xf32, #tpu.memory_space<vmem>>) attributes {dimension_semantics = [#tpu.dimension_semantics<parallel>], iteration_bounds = array<i64: 2>, scalar_prefetch = 0 : i64, scratch_operands = 0 : i64, tpu.core_type = #tpu.core_type<tc>, window_params = [{transform_indices = @transform_0, window_bounds = array<i64: 16, 8>}, {pipeline_mode = #tpu.pipeline_mode<synchronous>, transform_indices = @transform_1, window_bounds = array<i64: 128, 128>}, {pipeline_mode = #tpu.pipeline_mode<synchronous>, transform_indices = @transform_2, window_bounds = array<i64: 1, 128>}, {pipeline_mode = #tpu.pipeline_mode<synchronous>, transform_indices = @transform_3, window_bounds = array<i64: 128, 128>}, {pipeline_mode = #tpu.pipeline_mode<synchronous>, transform_indices = @transform_4, window_bounds = array<i64: 128, 128>}, {pipeline_mode = #tpu.pipeline_mode<synchronous>, transform_indices = @transform_5, window_bounds = array<i64: 128, 128>}, {pipeline_mode = #tpu.pipeline_mode<synchronous>, transform_indices = @transform_6, window_bounds = array<i64: 128, 128>}, {pipeline_mode = #tpu.pipeline_mode<synchronous>, transform_indices = @transform_7, window_bounds = array<i64: 1, 128>}, {pipeline_mode = #tpu.pipeline_mode<synchronous>, transform_indices = @transform_8, window_bounds = array<i64: 1, 128>}, {pipeline_mode = #tpu.pipeline_mode<synchronous>, transform_indices = @transform_9, window_bounds = array<i64: 128, 128>}, {pipeline_mode = #tpu.pipeline_mode<synchronous>, transform_indices = @transform_10, window_bounds = array<i64: 1, 128>}, {pipeline_mode = #tpu.pipeline_mode<synchronous>, transform_indices = @transform_11, window_bounds = array<i64: 128, 128>}, {pipeline_mode = #tpu.pipeline_mode<synchronous>, transform_indices = @transform_12, window_bounds = array<i64: 1, 128>}, {pipeline_mode = #tpu.pipeline_mode<synchronous>, transform_indices = @transform_13, window_bounds = array<i64: 1, 128>}, {pipeline_mode = #tpu.pipeline_mode<synchronous>, transform_indices = @transform_14, window_bounds = array<i64: 1, 128>}, {pipeline_mode = #tpu.pipeline_mode<synchronous>, transform_indices = @transform_15, window_bounds = array<i64: 128, 128>}, {pipeline_mode = #tpu.pipeline_mode<synchronous>, transform_indices = @transform_16, window_bounds = array<i64: 1, 128>}, {transform_indices = @transform_17, window_bounds = array<i64: 16, 128>}]} {
    %c0 = arith.constant 0 : index
    %c0_0 = arith.constant 0 : index
    %0 = vector.load %arg2[%c0, %c0_0] : memref<128x128xf32, #tpu.memory_space<vmem>>, vector<128x128xf32>
    %c0_1 = arith.constant 0 : index
    %c0_2 = arith.constant 0 : index
    %1 = vector.load %arg8[%c0_1, %c0_2] : memref<1x128xf32, #tpu.memory_space<vmem>>, vector<1x128xf32>
    %c0_3 = arith.constant 0 : index
    %c0_4 = arith.constant 0 : index
    %2 = vector.load %arg9[%c0_3, %c0_4] : memref<1x128xf32, #tpu.memory_space<vmem>>, vector<1x128xf32>
    %c0_5 = arith.constant 0 : index
    %c0_6 = arith.constant 0 : index
    %3 = vector.load %arg11[%c0_5, %c0_6] : memref<1x128xf32, #tpu.memory_space<vmem>>, vector<1x128xf32>
    %c0_7 = arith.constant 0 : index
    %c0_8 = arith.constant 0 : index
    %4 = vector.load %arg13[%c0_7, %c0_8] : memref<1x128xf32, #tpu.memory_space<vmem>>, vector<1x128xf32>
    %c0_9 = arith.constant 0 : index
    %c0_10 = arith.constant 0 : index
    %5 = vector.load %arg14[%c0_9, %c0_10] : memref<1x128xf32, #tpu.memory_space<vmem>>, vector<1x128xf32>
    %c0_11 = arith.constant 0 : index
    %c0_12 = arith.constant 0 : index
    %6 = vector.load %arg15[%c0_11, %c0_12] : memref<1x128xf32, #tpu.memory_space<vmem>>, vector<1x128xf32>
    %c0_13 = arith.constant 0 : index
    %c0_14 = arith.constant 0 : index
    %7 = vector.load %arg17[%c0_13, %c0_14] : memref<1x128xf32, #tpu.memory_space<vmem>>, vector<1x128xf32>
    %8 = tpu.iota {dimensions = array<i32: 1>} : vector<1x128xi32>
    %c32_i32 = arith.constant 32 : i32
    %9 = vector.broadcast %c32_i32 : i32 to vector<1x128xi32>
    %10 = arith.cmpi slt, %8, %9 : vector<1x128xi32>
    %c0_15 = arith.constant 0 : index
    %c0_16 = arith.constant 0 : index
    %11 = vector.load %arg1[%c0_15, %c0_16] : memref<16x8xf32, #tpu.memory_space<vmem>>, vector<16x8xf32>
    %12 = vector.shape_cast %11 : vector<16x8xf32> to vector<16x8x1xf32>
    %c0_17 = arith.constant 0 : index
    %c0_18 = arith.constant 0 : index
    %13 = vector.load %arg3[%c0_17, %c0_18] : memref<1x128xf32, #tpu.memory_space<vmem>>, vector<1x128xf32>
    %14 = vector.shape_cast %13 : vector<1x128xf32> to vector<1x1x128xf32>
    %15 = vector.broadcast %12 : vector<16x8x1xf32> to vector<16x8x128xf32>
    %16 = vector.broadcast %14 : vector<1x1x128xf32> to vector<16x8x128xf32>
    %17 = arith.mulf %15, %16 : vector<16x8x128xf32>
    %18 = vector.shape_cast %17 : vector<16x8x128xf32> to vector<128x128xf32>
    %19 = arith.addf %18, %0 : vector<128x128xf32>
    %20 = arith.truncf %19 : vector<128x128xf32> to vector<128x128xbf16>
    %c0_19 = arith.constant 0 : index
    %c0_20 = arith.constant 0 : index
    %21 = vector.load %arg4[%c0_19, %c0_20] : memref<128x128xbf16, #tpu.memory_space<vmem>>, vector<128x128xbf16>
    %cst = arith.constant dense<0.000000e+00> : vector<128x128xf32>
    %22 = tpu.matmul %20, %21, %cst {dimension_numbers = #tpu.dot_dimension_numbers<[1], [0], [0], [1], [0, 0, 1, 1], [], []>} : vector<128x128xbf16>, vector<128x128xbf16>, vector<128x128xf32> -> vector<128x128xf32>
    %c0_21 = arith.constant 0 : index
    %c0_22 = arith.constant 0 : index
    %23 = vector.load %arg5[%c0_21, %c0_22] : memref<128x128xbf16, #tpu.memory_space<vmem>>, vector<128x128xbf16>
    %cst_23 = arith.constant dense<0.000000e+00> : vector<128x128xf32>
    %24 = tpu.matmul %20, %23, %cst_23 {dimension_numbers = #tpu.dot_dimension_numbers<[1], [0], [0], [1], [0, 0, 1, 1], [], []>} : vector<128x128xbf16>, vector<128x128xbf16>, vector<128x128xf32> -> vector<128x128xf32>
    %c0_24 = arith.constant 0 : index
    %c0_25 = arith.constant 0 : index
    %25 = vector.load %arg6[%c0_24, %c0_25] : memref<128x128xbf16, #tpu.memory_space<vmem>>, vector<128x128xbf16>
    %cst_26 = arith.constant dense<0.000000e+00> : vector<128x128xf32>
    %26 = tpu.matmul %20, %25, %cst_26 {dimension_numbers = #tpu.dot_dimension_numbers<[1], [0], [0], [1], [0, 0, 1, 1], [], []>} : vector<128x128xbf16>, vector<128x128xbf16>, vector<128x128xf32> -> vector<128x128xf32>
    %27 = vector.shape_cast %22 : vector<128x128xf32> to vector<16x8x128xf32>
    %28 = arith.truncf %27 : vector<16x8x128xf32> to vector<16x8x128xbf16>
    %29 = vector.shape_cast %24 : vector<128x128xf32> to vector<16x8x128xf32>
    %30 = arith.truncf %29 : vector<16x8x128xf32> to vector<16x8x128xbf16>
    %31 = vector.shape_cast %26 : vector<128x128xf32> to vector<16x8x128xf32>
    %32 = arith.truncf %31 : vector<16x8x128xf32> to vector<16x8x128xbf16>
    "tpu.trace_start"() <{level = 10 : i32, message = "bqd,bkd->bqk"}> : () -> ()
    %cst_27 = arith.constant dense<0.000000e+00> : vector<16x8x8xf32>
    %33 = tpu.matmul %28, %30, %cst_27 {dimension_numbers = #tpu.dot_dimension_numbers<[2], [2], [1], [1], [0, 0, 0, 1, 1, 1], [0], [0]>} : vector<16x8x128xbf16>, vector<16x8x128xbf16>, vector<16x8x8xf32> -> vector<16x8x8xf32>
    "tpu.trace_stop"() : () -> ()
    %cst_28 = arith.constant 0.176776692 : f32
    %34 = vector.broadcast %cst_28 : f32 to vector<16x8x8xf32>
    %35 = arith.mulf %33, %34 : vector<16x8x8xf32>
    %cst_29 = arith.constant dense<0xFF800000> : vector<16x8xf32>
    %36 = vector.multi_reduction <maximumf>, %35, %cst_29 [2] : vector<16x8x8xf32> to vector<16x8xf32>
    %37 = vector.shape_cast %36 : vector<16x8xf32> to vector<16x8x1xf32>
    %38 = vector.broadcast %37 : vector<16x8x1xf32> to vector<16x8x8xf32>
    %39 = arith.subf %35, %38 : vector<16x8x8xf32>
    %40 = math.exp %39 : vector<16x8x8xf32>
    %cst_30 = arith.constant dense<0.000000e+00> : vector<16x8xf32>
    %41 = vector.multi_reduction <add>, %40, %cst_30 [2] : vector<16x8x8xf32> to vector<16x8xf32>
    %42 = vector.shape_cast %41 : vector<16x8xf32> to vector<16x8x1xf32>
    %43 = tpu.reciprocal %42 {approx = true} : vector<16x8x1xf32> -> vector<16x8x1xf32>
    %44 = vector.broadcast %43 : vector<16x8x1xf32> to vector<16x8x8xf32>
    %45 = arith.mulf %40, %44 : vector<16x8x8xf32>
    %46 = arith.truncf %45 : vector<16x8x8xf32> to vector<16x8x8xbf16>
    "tpu.trace_start"() <{level = 10 : i32, message = "bqk,bkd->bqd"}> : () -> ()
    %cst_31 = arith.constant dense<0.000000e+00> : vector<16x8x128xf32>
    %47 = tpu.matmul %46, %32, %cst_31 {dimension_numbers = #tpu.dot_dimension_numbers<[2], [1], [1], [2], [0, 0, 0, 1, 1, 2], [0], [0]>} : vector<16x8x8xbf16>, vector<16x8x128xbf16>, vector<16x8x128xf32> -> vector<16x8x128xf32>
    "tpu.trace_stop"() : () -> ()
    %48 = vector.shape_cast %47 : vector<16x8x128xf32> to vector<128x128xf32>
    %49 = arith.truncf %48 : vector<128x128xf32> to vector<128x128xbf16>
    %c0_32 = arith.constant 0 : index
    %c0_33 = arith.constant 0 : index
    %50 = vector.load %arg7[%c0_32, %c0_33] : memref<128x128xbf16, #tpu.memory_space<vmem>>, vector<128x128xbf16>
    %cst_34 = arith.constant dense<0.000000e+00> : vector<128x128xf32>
    %51 = tpu.matmul %49, %50, %cst_34 {dimension_numbers = #tpu.dot_dimension_numbers<[1], [0], [0], [1], [0, 0, 1, 1], [], []>} : vector<128x128xbf16>, vector<128x128xbf16>, vector<128x128xf32> -> vector<128x128xf32>
    %52 = arith.addf %19, %51 : vector<128x128xf32>
    %53 = vector.shape_cast %52 : vector<128x128xf32> to vector<16x8x128xf32>
    %54 = vector.extract_strided_slice %53 {offsets = [0, 7, 0], sizes = [16, 1, 128], strides = [1, 1, 1]} : vector<16x8x128xf32> to vector<16x1x128xf32>
    %55 = vector.shape_cast %54 : vector<16x1x128xf32> to vector<16x128xf32>
    %cst_35 = arith.constant dense<0.000000e+00> : vector<16xf32>
    %56 = vector.multi_reduction <add>, %55, %cst_35 [1] : vector<16x128xf32> to vector<16xf32>
    %57 = vector.shape_cast %56 : vector<16xf32> to vector<16x1xf32>
    %cst_36 = arith.constant 3.125000e-02 : f32
    %58 = vector.broadcast %cst_36 : f32 to vector<16x1xf32>
    %59 = arith.mulf %57, %58 : vector<16x1xf32>
    %60 = vector.broadcast %59 : vector<16x1xf32> to vector<16x128xf32>
    %61 = arith.subf %55, %60 : vector<16x128xf32>
    %cst_37 = arith.constant 0.000000e+00 : f32
    %62 = vector.shape_cast %10 : vector<1x128xi1> to vector<1x128xi1>
    %63 = vector.broadcast %62 : vector<1x128xi1> to vector<16x128xi1>
    %64 = vector.broadcast %cst_37 : f32 to vector<16x128xf32>
    %65 = arith.select %63, %61, %64 : vector<16x128xi1>, vector<16x128xf32>
    %66 = arith.mulf %65, %65 : vector<16x128xf32>
    %cst_38 = arith.constant dense<0.000000e+00> : vector<16xf32>
    %67 = vector.multi_reduction <add>, %66, %cst_38 [1] : vector<16x128xf32> to vector<16xf32>
    %68 = vector.shape_cast %67 : vector<16xf32> to vector<16x1xf32>
    %cst_39 = arith.constant 3.125000e-02 : f32
    %69 = vector.broadcast %cst_39 : f32 to vector<16x1xf32>
    %70 = arith.mulf %68, %69 : vector<16x1xf32>
    %cst_40 = arith.constant 9.99999974E-6 : f32
    %71 = vector.broadcast %cst_40 : f32 to vector<16x1xf32>
    %72 = arith.addf %70, %71 : vector<16x1xf32>
    %73 = math.rsqrt %72 : vector<16x1xf32>
    %74 = vector.broadcast %73 : vector<16x1xf32> to vector<16x128xf32>
    %75 = arith.mulf %65, %74 : vector<16x128xf32>
    %76 = vector.broadcast %1 : vector<1x128xf32> to vector<16x128xf32>
    %77 = arith.mulf %75, %76 : vector<16x128xf32>
    %78 = vector.broadcast %2 : vector<1x128xf32> to vector<16x128xf32>
    %79 = arith.addf %77, %78 : vector<16x128xf32>
    %80 = arith.truncf %79 : vector<16x128xf32> to vector<16x128xbf16>
    %c0_41 = arith.constant 0 : index
    %c0_42 = arith.constant 0 : index
    %81 = vector.load %arg10[%c0_41, %c0_42] : memref<128x128xbf16, #tpu.memory_space<vmem>>, vector<128x128xbf16>
    %cst_43 = arith.constant dense<0.000000e+00> : vector<16x128xf32>
    %82 = tpu.matmul %80, %81, %cst_43 {dimension_numbers = #tpu.dot_dimension_numbers<[1], [0], [0], [1], [0, 0, 1, 1], [], []>} : vector<16x128xbf16>, vector<128x128xbf16>, vector<16x128xf32> -> vector<16x128xf32>
    %83 = vector.broadcast %3 : vector<1x128xf32> to vector<16x128xf32>
    %84 = arith.addf %82, %83 : vector<16x128xf32>
    %cst_44 = arith.constant 0.000000e+00 : f32
    %85 = vector.broadcast %cst_44 : f32 to vector<16x128xf32>
    %86 = arith.maximumf %84, %85 : vector<16x128xf32>
    %87 = arith.truncf %86 : vector<16x128xf32> to vector<16x128xbf16>
    %c0_45 = arith.constant 0 : index
    %c0_46 = arith.constant 0 : index
    %88 = vector.load %arg12[%c0_45, %c0_46] : memref<128x128xbf16, #tpu.memory_space<vmem>>, vector<128x128xbf16>
    %cst_47 = arith.constant dense<0.000000e+00> : vector<16x128xf32>
    %89 = tpu.matmul %87, %88, %cst_47 {dimension_numbers = #tpu.dot_dimension_numbers<[1], [0], [0], [1], [0, 0, 1, 1], [], []>} : vector<16x128xbf16>, vector<128x128xbf16>, vector<16x128xf32> -> vector<16x128xf32>
    %90 = vector.broadcast %4 : vector<1x128xf32> to vector<16x128xf32>
    %91 = arith.addf %89, %90 : vector<16x128xf32>
    %92 = arith.addf %79, %91 : vector<16x128xf32>
    %cst_48 = arith.constant dense<0.000000e+00> : vector<16xf32>
    %93 = vector.multi_reduction <add>, %92, %cst_48 [1] : vector<16x128xf32> to vector<16xf32>
    %94 = vector.shape_cast %93 : vector<16xf32> to vector<16x1xf32>
    %cst_49 = arith.constant 3.125000e-02 : f32
    %95 = vector.broadcast %cst_49 : f32 to vector<16x1xf32>
    %96 = arith.mulf %94, %95 : vector<16x1xf32>
    %97 = vector.broadcast %96 : vector<16x1xf32> to vector<16x128xf32>
    %98 = arith.subf %92, %97 : vector<16x128xf32>
    %cst_50 = arith.constant 0.000000e+00 : f32
    %99 = vector.shape_cast %10 : vector<1x128xi1> to vector<1x128xi1>
    %100 = vector.broadcast %99 : vector<1x128xi1> to vector<16x128xi1>
    %101 = vector.broadcast %cst_50 : f32 to vector<16x128xf32>
    %102 = arith.select %100, %98, %101 : vector<16x128xi1>, vector<16x128xf32>
    %103 = arith.mulf %102, %102 : vector<16x128xf32>
    %cst_51 = arith.constant dense<0.000000e+00> : vector<16xf32>
    %104 = vector.multi_reduction <add>, %103, %cst_51 [1] : vector<16x128xf32> to vector<16xf32>
    %105 = vector.shape_cast %104 : vector<16xf32> to vector<16x1xf32>
    %cst_52 = arith.constant 3.125000e-02 : f32
    %106 = vector.broadcast %cst_52 : f32 to vector<16x1xf32>
    %107 = arith.mulf %105, %106 : vector<16x1xf32>
    %cst_53 = arith.constant 9.99999974E-6 : f32
    %108 = vector.broadcast %cst_53 : f32 to vector<16x1xf32>
    %109 = arith.addf %107, %108 : vector<16x1xf32>
    %110 = math.rsqrt %109 : vector<16x1xf32>
    %111 = vector.broadcast %110 : vector<16x1xf32> to vector<16x128xf32>
    %112 = arith.mulf %102, %111 : vector<16x128xf32>
    %113 = vector.broadcast %5 : vector<1x128xf32> to vector<16x128xf32>
    %114 = arith.mulf %112, %113 : vector<16x128xf32>
    %115 = vector.broadcast %6 : vector<1x128xf32> to vector<16x128xf32>
    %116 = arith.addf %114, %115 : vector<16x128xf32>
    %117 = arith.truncf %116 : vector<16x128xf32> to vector<16x128xbf16>
    %c0_54 = arith.constant 0 : index
    %c0_55 = arith.constant 0 : index
    %118 = vector.load %arg16[%c0_54, %c0_55] : memref<128x128xbf16, #tpu.memory_space<vmem>>, vector<128x128xbf16>
    %cst_56 = arith.constant dense<0.000000e+00> : vector<16x128xf32>
    %119 = tpu.matmul %117, %118, %cst_56 {dimension_numbers = #tpu.dot_dimension_numbers<[1], [0], [0], [1], [0, 0, 1, 1], [], []>} : vector<16x128xbf16>, vector<128x128xbf16>, vector<16x128xf32> -> vector<16x128xf32>
    %120 = vector.broadcast %7 : vector<1x128xf32> to vector<16x128xf32>
    %121 = arith.addf %119, %120 : vector<16x128xf32>
    %c0_57 = arith.constant 0 : index
    %c0_58 = arith.constant 0 : index
    %122 = vector.load %arg18[%c0_57, %c0_58] : memref<16x128xf32, #tpu.memory_space<vmem>>, vector<16x128xf32>
    tpu.vector_store %arg18[%c0_57, %c0_58], %121 {strides = array<i32>} : memref<16x128xf32, #tpu.memory_space<vmem>>, vector<16x128xf32>,
    return
  }
  func.func @transform_0(%arg0: i32) -> (i32, i32) {
    %c0_i32 = arith.constant 0 : i32
    %c0_i32_0 = arith.constant 0 : i32
    return %arg0, %c0_i32 : i32, i32
  }
  func.func @transform_1(%arg0: i32) -> (i32, i32) {
    %c0_i32 = arith.constant 0 : i32
    %c0_i32_0 = arith.constant 0 : i32
    %c0_i32_1 = arith.constant 0 : i32
    return %c0_i32, %c0_i32_0 : i32, i32
  }
  func.func @transform_2(%arg0: i32) -> (i32, i32) {
    %c0_i32 = arith.constant 0 : i32
    %c0_i32_0 = arith.constant 0 : i32
    %c0_i32_1 = arith.constant 0 : i32
    return %c0_i32, %c0_i32_0 : i32, i32
  }
  func.func @transform_3(%arg0: i32) -> (i32, i32) {
    %c0_i32 = arith.constant 0 : i32
    %c0_i32_0 = arith.constant 0 : i32
    %c0_i32_1 = arith.constant 0 : i32
    return %c0_i32, %c0_i32_0 : i32, i32
  }
  func.func @transform_4(%arg0: i32) -> (i32, i32) {
    %c0_i32 = arith.constant 0 : i32
    %c0_i32_0 = arith.constant 0 : i32
    %c0_i32_1 = arith.constant 0 : i32
    return %c0_i32, %c0_i32_0 : i32, i32
  }
  func.func @transform_5(%arg0: i32) -> (i32, i32) {
    %c0_i32 = arith.constant 0 : i32
    %c0_i32_0 = arith.constant 0 : i32
    %c0_i32_1 = arith.constant 0 : i32
    return %c0_i32, %c0_i32_0 : i32, i32
  }
  func.func @transform_6(%arg0: i32) -> (i32, i32) {
    %c0_i32 = arith.constant 0 : i32
    %c0_i32_0 = arith.constant 0 : i32
    %c0_i32_1 = arith.constant 0 : i32
    return %c0_i32, %c0_i32_0 : i32, i32
  }
  func.func @transform_7(%arg0: i32) -> (i32, i32) {
    %c0_i32 = arith.constant 0 : i32
    %c0_i32_0 = arith.constant 0 : i32
    %c0_i32_1 = arith.constant 0 : i32
    return %c0_i32, %c0_i32_0 : i32, i32
  }
  func.func @transform_8(%arg0: i32) -> (i32, i32) {
    %c0_i32 = arith.constant 0 : i32
    %c0_i32_0 = arith.constant 0 : i32
    %c0_i32_1 = arith.constant 0 : i32
    return %c0_i32, %c0_i32_0 : i32, i32
  }
  func.func @transform_9(%arg0: i32) -> (i32, i32) {
    %c0_i32 = arith.constant 0 : i32
    %c0_i32_0 = arith.constant 0 : i32
    %c0_i32_1 = arith.constant 0 : i32
    return %c0_i32, %c0_i32_0 : i32, i32
  }
  func.func @transform_10(%arg0: i32) -> (i32, i32) {
    %c0_i32 = arith.constant 0 : i32
    %c0_i32_0 = arith.constant 0 : i32
    %c0_i32_1 = arith.constant 0 : i32
    return %c0_i32, %c0_i32_0 : i32, i32
  }
  func.func @transform_11(%arg0: i32) -> (i32, i32) {
    %c0_i32 = arith.constant 0 : i32
    %c0_i32_0 = arith.constant 0 : i32
    %c0_i32_1 = arith.constant 0 : i32
    return %c0_i32, %c0_i32_0 : i32, i32
  }
  func.func @transform_12(%arg0: i32) -> (i32, i32) {
    %c0_i32 = arith.constant 0 : i32
    %c0_i32_0 = arith.constant 0 : i32
    %c0_i32_1 = arith.constant 0 : i32
    return %c0_i32, %c0_i32_0 : i32, i32
  }
  func.func @transform_13(%arg0: i32) -> (i32, i32) {
    %c0_i32 = arith.constant 0 : i32
    %c0_i32_0 = arith.constant 0 : i32
    %c0_i32_1 = arith.constant 0 : i32
    return %c0_i32, %c0_i32_0 : i32, i32
  }
  func.func @transform_14(%arg0: i32) -> (i32, i32) {
    %c0_i32 = arith.constant 0 : i32
    %c0_i32_0 = arith.constant 0 : i32
    %c0_i32_1 = arith.constant 0 : i32
    return %c0_i32, %c0_i32_0 : i32, i32
  }
  func.func @transform_15(%arg0: i32) -> (i32, i32) {
    %c0_i32 = arith.constant 0 : i32
    %c0_i32_0 = arith.constant 0 : i32
    %c0_i32_1 = arith.constant 0 : i32
    return %c0_i32, %c0_i32_0 : i32, i32
  }
  func.func @transform_16(%arg0: i32) -> (i32, i32) {
    %c0_i32 = arith.constant 0 : i32
    %c0_i32_0 = arith.constant 0 : i32
    %c0_i32_1 = arith.constant 0 : i32
    return %c0_i32, %c0_i32_0 : i32, i32
  }
  func.func @transform_17(%arg0: i32) -> (i32, i32) {
    %c0_i32 = arith.constant 0 : i32
    %c0_i32_0 = arith.constant 0 : i32
    return %arg0, %c0_i32 : i32, i32
  }
}

module attributes {stable_mosaic.version = 11 : i64} {
  func.func @transformer_kernel(%arg0: i32, %arg1: memref<16x8xf32, #tpu.memory_space<vmem>>, %arg2: memref<128x128xf32, #tpu.memory_space<vmem>>, %arg3: memref<1x128xf32, #tpu.memory_space<vmem>>, %arg4: memref<128x128xbf16, #tpu.memory_space<vmem>>, %arg5: memref<128x128xbf16, #tpu.memory_space<vmem>>, %arg6: memref<128x128xbf16, #tpu.memory_space<vmem>>, %arg7: memref<128x128xbf16, #tpu.memory_space<vmem>>, %arg8: memref<1x128xf32, #tpu.memory_space<vmem>>, %arg9: memref<1x128xf32, #tpu.memory_space<vmem>>, %arg10: memref<128x128xbf16, #tpu.memory_space<vmem>>, %arg11: memref<1x128xf32, #tpu.memory_space<vmem>>, %arg12: memref<128x128xbf16, #tpu.memory_space<vmem>>, %arg13: memref<1x128xf32, #tpu.memory_space<vmem>>, %arg14: memref<1x128xf32, #tpu.memory_space<vmem>>, %arg15: memref<1x128xf32, #tpu.memory_space<vmem>>, %arg16: memref<128x128xbf16, #tpu.memory_space<vmem>>, %arg17: memref<1x128xf32, #tpu.memory_space<vmem>>, %arg18: memref<16x128xf32, #tpu.memory_space<vmem>>) attributes {dimension_semantics = [#tpu.dimension_semantics<parallel>], iteration_bounds = array<i64: 2>, scalar_prefetch = 0 : i64, scratch_operands = 0 : i64, tpu.core_type = #tpu.core_type<tc>, window_params = [{transform_indices = @transform_0, window_bounds = array<i64: 16, 8>}, {pipeline_mode = #tpu.pipeline_mode<synchronous>, transform_indices = @transform_1, window_bounds = array<i64: 128, 128>}, {pipeline_mode = #tpu.pipeline_mode<synchronous>, transform_indices = @transform_2, window_bounds = array<i64: 1, 128>}, {pipeline_mode = #tpu.pipeline_mode<synchronous>, transform_indices = @transform_3, window_bounds = array<i64: 128, 128>}, {pipeline_mode = #tpu.pipeline_mode<synchronous>, transform_indices = @transform_4, window_bounds = array<i64: 128, 128>}, {pipeline_mode = #tpu.pipeline_mode<synchronous>, transform_indices = @transform_5, window_bounds = array<i64: 128, 128>}, {pipeline_mode = #tpu.pipeline_mode<synchronous>, transform_indices = @transform_6, window_bounds = array<i64: 128, 128>}, {pipeline_mode = #tpu.pipeline_mode<synchronous>, transform_indices = @transform_7, window_bounds = array<i64: 1, 128>}, {pipeline_mode = #tpu.pipeline_mode<synchronous>, transform_indices = @transform_8, window_bounds = array<i64: 1, 128>}, {pipeline_mode = #tpu.pipeline_mode<synchronous>, transform_indices = @transform_9, window_bounds = array<i64: 128, 128>}, {pipeline_mode = #tpu.pipeline_mode<synchronous>, transform_indices = @transform_10, window_bounds = array<i64: 1, 128>}, {pipeline_mode = #tpu.pipeline_mode<synchronous>, transform_indices = @transform_11, window_bounds = array<i64: 128, 128>}, {pipeline_mode = #tpu.pipeline_mode<synchronous>, transform_indices = @transform_12, window_bounds = array<i64: 1, 128>}, {pipeline_mode = #tpu.pipeline_mode<synchronous>, transform_indices = @transform_13, window_bounds = array<i64: 1, 128>}, {pipeline_mode = #tpu.pipeline_mode<synchronous>, transform_indices = @transform_14, window_bounds = array<i64: 1, 128>}, {pipeline_mode = #tpu.pipeline_mode<synchronous>, transform_indices = @transform_15, window_bounds = array<i64: 128, 128>}, {pipeline_mode = #tpu.pipeline_mode<synchronous>, transform_indices = @transform_16, window_bounds = array<i64: 1, 128>}, {transform_indices = @transform_17, window_bounds = array<i64: 16, 128>}]} {
    %c0 = arith.constant 0 : index
    %c0_0 = arith.constant 0 : index
    %0 = vector.load %arg2[%c0, %c0_0] : memref<128x128xf32, #tpu.memory_space<vmem>>, vector<128x128xf32>
    %c0_1 = arith.constant 0 : index
    %c0_2 = arith.constant 0 : index
    %1 = vector.load %arg8[%c0_1, %c0_2] : memref<1x128xf32, #tpu.memory_space<vmem>>, vector<1x128xf32>
    %c0_3 = arith.constant 0 : index
    %c0_4 = arith.constant 0 : index
    %2 = vector.load %arg9[%c0_3, %c0_4] : memref<1x128xf32, #tpu.memory_space<vmem>>, vector<1x128xf32>
    %c0_5 = arith.constant 0 : index
    %c0_6 = arith.constant 0 : index
    %3 = vector.load %arg11[%c0_5, %c0_6] : memref<1x128xf32, #tpu.memory_space<vmem>>, vector<1x128xf32>
    %c0_7 = arith.constant 0 : index
    %c0_8 = arith.constant 0 : index
    %4 = vector.load %arg13[%c0_7, %c0_8] : memref<1x128xf32, #tpu.memory_space<vmem>>, vector<1x128xf32>
    %c0_9 = arith.constant 0 : index
    %c0_10 = arith.constant 0 : index
    %5 = vector.load %arg14[%c0_9, %c0_10] : memref<1x128xf32, #tpu.memory_space<vmem>>, vector<1x128xf32>
    %c0_11 = arith.constant 0 : index
    %c0_12 = arith.constant 0 : index
    %6 = vector.load %arg15[%c0_11, %c0_12] : memref<1x128xf32, #tpu.memory_space<vmem>>, vector<1x128xf32>
    %c0_13 = arith.constant 0 : index
    %c0_14 = arith.constant 0 : index
    %7 = vector.load %arg17[%c0_13, %c0_14] : memref<1x128xf32, #tpu.memory_space<vmem>>, vector<1x128xf32>
    %8 = tpu.iota {dimensions = array<i32: 1>} : vector<1x128xi32>
    %c32_i32 = arith.constant 32 : i32
    %9 = vector.broadcast %c32_i32 : i32 to vector<1x128xi32>
    %10 = arith.cmpi slt, %8, %9 : vector<1x128xi32>
    %c0_15 = arith.constant 0 : index
    %c0_16 = arith.constant 0 : index
    %11 = vector.load %arg1[%c0_15, %c0_16] : memref<16x8xf32, #tpu.memory_space<vmem>>, vector<16x8xf32>
    %12 = vector.shape_cast %11 : vector<16x8xf32> to vector<16x8x1xf32>
    %c0_17 = arith.constant 0 : index
    %c0_18 = arith.constant 0 : index
    %13 = vector.load %arg3[%c0_17, %c0_18] : memref<1x128xf32, #tpu.memory_space<vmem>>, vector<1x128xf32>
    %14 = vector.shape_cast %13 : vector<1x128xf32> to vector<1x1x128xf32>
    %15 = vector.broadcast %12 : vector<16x8x1xf32> to vector<16x8x128xf32>
    %16 = vector.broadcast %14 : vector<1x1x128xf32> to vector<16x8x128xf32>
    %17 = arith.mulf %15, %16 : vector<16x8x128xf32>
    %18 = vector.shape_cast %17 : vector<16x8x128xf32> to vector<128x128xf32>
    %19 = arith.addf %18, %0 : vector<128x128xf32>
    %20 = arith.truncf %19 : vector<128x128xf32> to vector<128x128xbf16>
    %c0_19 = arith.constant 0 : index
    %c0_20 = arith.constant 0 : index
    %21 = vector.load %arg4[%c0_19, %c0_20] : memref<128x128xbf16, #tpu.memory_space<vmem>>, vector<128x128xbf16>
    %cst = arith.constant dense<0.000000e+00> : vector<128x128xf32>
    %22 = tpu.matmul %20, %21, %cst {dimension_numbers = #tpu.dot_dimension_numbers<[1], [0], [0], [1], [0, 0, 1, 1], [], []>} : vector<128x128xbf16>, vector<128x128xbf16>, vector<128x128xf32> -> vector<128x128xf32>
    %c0_21 = arith.constant 0 : index
    %c0_22 = arith.constant 0 : index
    %23 = vector.load %arg5[%c0_21, %c0_22] : memref<128x128xbf16, #tpu.memory_space<vmem>>, vector<128x128xbf16>
    %cst_23 = arith.constant dense<0.000000e+00> : vector<128x128xf32>
    %24 = tpu.matmul %20, %23, %cst_23 {dimension_numbers = #tpu.dot_dimension_numbers<[1], [0], [0], [1], [0, 0, 1, 1], [], []>} : vector<128x128xbf16>, vector<128x128xbf16>, vector<128x128xf32> -> vector<128x128xf32>
    %c0_24 = arith.constant 0 : index
    %c0_25 = arith.constant 0 : index
    %25 = vector.load %arg6[%c0_24, %c0_25] : memref<128x128xbf16, #tpu.memory_space<vmem>>, vector<128x128xbf16>
    %cst_26 = arith.constant dense<0.000000e+00> : vector<128x128xf32>
    %26 = tpu.matmul %20, %25, %cst_26 {dimension_numbers = #tpu.dot_dimension_numbers<[1], [0], [0], [1], [0, 0, 1, 1], [], []>} : vector<128x128xbf16>, vector<128x128xbf16>, vector<128x128xf32> -> vector<128x128xf32>
    %27 = vector.shape_cast %22 : vector<128x128xf32> to vector<16x8x128xf32>
    %28 = arith.truncf %27 : vector<16x8x128xf32> to vector<16x8x128xbf16>
    %29 = vector.shape_cast %24 : vector<128x128xf32> to vector<16x8x128xf32>
    %30 = arith.truncf %29 : vector<16x8x128xf32> to vector<16x8x128xbf16>
    %31 = vector.shape_cast %26 : vector<128x128xf32> to vector<16x8x128xf32>
    %32 = arith.truncf %31 : vector<16x8x128xf32> to vector<16x8x128xbf16>
    "tpu.trace_start"() <{level = 10 : i32, message = "bqd,bkd->bqk"}> : () -> ()
    %cst_27 = arith.constant dense<0.000000e+00> : vector<16x8x8xf32>
    %33 = tpu.matmul %28, %30, %cst_27 {dimension_numbers = #tpu.dot_dimension_numbers<[2], [2], [1], [1], [0, 0, 0, 1, 1, 1], [0], [0]>} : vector<16x8x128xbf16>, vector<16x8x128xbf16>, vector<16x8x8xf32> -> vector<16x8x8xf32>
    "tpu.trace_stop"() : () -> ()
    %cst_28 = arith.constant 0.176776692 : f32
    %34 = vector.broadcast %cst_28 : f32 to vector<16x8x8xf32>
    %35 = arith.mulf %33, %34 : vector<16x8x8xf32>
    %cst_29 = arith.constant dense<0xFF800000> : vector<16x8xf32>
    %36 = vector.multi_reduction <maximumf>, %35, %cst_29 [2] : vector<16x8x8xf32> to vector<16x8xf32>
    %37 = vector.shape_cast %36 : vector<16x8xf32> to vector<16x8x1xf32>
    %38 = vector.broadcast %37 : vector<16x8x1xf32> to vector<16x8x8xf32>
    %39 = arith.subf %35, %38 : vector<16x8x8xf32>
    %40 = math.exp %39 : vector<16x8x8xf32>
    %cst_30 = arith.constant dense<0.000000e+00> : vector<16x8xf32>
    %41 = vector.multi_reduction <add>, %40, %cst_30 [2] : vector<16x8x8xf32> to vector<16x8xf32>
    %42 = vector.shape_cast %41 : vector<16x8xf32> to vector<16x8x1xf32>
    %43 = tpu.reciprocal %42 {approx = true} : vector<16x8x1xf32> -> vector<16x8x1xf32>
    %44 = vector.broadcast %43 : vector<16x8x1xf32> to vector<16x8x8xf32>
    %45 = arith.mulf %40, %44 : vector<16x8x8xf32>
    %46 = arith.truncf %45 : vector<16x8x8xf32> to vector<16x8x8xbf16>
    "tpu.trace_start"() <{level = 10 : i32, message = "bqk,bkd->bqd"}> : () -> ()
    %cst_31 = arith.constant dense<0.000000e+00> : vector<16x8x128xf32>
    %47 = tpu.matmul %46, %32, %cst_31 {dimension_numbers = #tpu.dot_dimension_numbers<[2], [1], [1], [2], [0, 0, 0, 1, 1, 2], [0], [0]>} : vector<16x8x8xbf16>, vector<16x8x128xbf16>, vector<16x8x128xf32> -> vector<16x8x128xf32>
    "tpu.trace_stop"() : () -> ()
    %48 = vector.shape_cast %47 : vector<16x8x128xf32> to vector<128x128xf32>
    %49 = arith.truncf %48 : vector<128x128xf32> to vector<128x128xbf16>
    %c0_32 = arith.constant 0 : index
    %c0_33 = arith.constant 0 : index
    %50 = vector.load %arg7[%c0_32, %c0_33] : memref<128x128xbf16, #tpu.memory_space<vmem>>, vector<128x128xbf16>
    %cst_34 = arith.constant dense<0.000000e+00> : vector<128x128xf32>
    %51 = tpu.matmul %49, %50, %cst_34 {dimension_numbers = #tpu.dot_dimension_numbers<[1], [0], [0], [1], [0, 0, 1, 1], [], []>} : vector<128x128xbf16>, vector<128x128xbf16>, vector<128x128xf32> -> vector<128x128xf32>
    %52 = arith.addf %19, %51 : vector<128x128xf32>
    %53 = vector.shape_cast %52 : vector<128x128xf32> to vector<16x8x128xf32>
    %54 = vector.extract_strided_slice %53 {offsets = [0, 7, 0], sizes = [16, 1, 128], strides = [1, 1, 1]} : vector<16x8x128xf32> to vector<16x1x128xf32>
    %55 = vector.shape_cast %54 : vector<16x1x128xf32> to vector<16x128xf32>
    %cst_35 = arith.constant dense<0.000000e+00> : vector<16xf32>
    %56 = vector.multi_reduction <add>, %55, %cst_35 [1] : vector<16x128xf32> to vector<16xf32>
    %57 = vector.shape_cast %56 : vector<16xf32> to vector<16x1xf32>
    %cst_36 = arith.constant 3.125000e-02 : f32
    %58 = vector.broadcast %cst_36 : f32 to vector<16x1xf32>
    %59 = arith.mulf %57, %58 : vector<16x1xf32>
    %60 = vector.broadcast %59 : vector<16x1xf32> to vector<16x128xf32>
    %61 = arith.subf %55, %60 : vector<16x128xf32>
    %cst_37 = arith.constant 0.000000e+00 : f32
    %62 = vector.shape_cast %10 : vector<1x128xi1> to vector<1x128xi1>
    %63 = vector.broadcast %62 : vector<1x128xi1> to vector<16x128xi1>
    %64 = vector.broadcast %cst_37 : f32 to vector<16x128xf32>
    %65 = arith.select %63, %61, %64 : vector<16x128xi1>, vector<16x128xf32>
    %66 = arith.mulf %65, %65 : vector<16x128xf32>
    %cst_38 = arith.constant dense<0.000000e+00> : vector<16xf32>
    %67 = vector.multi_reduction <add>, %66, %cst_38 [1] : vector<16x128xf32> to vector<16xf32>
    %68 = vector.shape_cast %67 : vector<16xf32> to vector<16x1xf32>
    %cst_39 = arith.constant 3.125000e-02 : f32
    %69 = vector.broadcast %cst_39 : f32 to vector<16x1xf32>
    %70 = arith.mulf %68, %69 : vector<16x1xf32>
    %cst_40 = arith.constant 9.99999974E-6 : f32
    %71 = vector.broadcast %cst_40 : f32 to vector<16x1xf32>
    %72 = arith.addf %70, %71 : vector<16x1xf32>
    %73 = math.rsqrt %72 : vector<16x1xf32>
    %74 = vector.broadcast %73 : vector<16x1xf32> to vector<16x128xf32>
    %75 = arith.mulf %65, %74 : vector<16x128xf32>
    %76 = vector.broadcast %1 : vector<1x128xf32> to vector<16x128xf32>
    %77 = arith.mulf %75, %76 : vector<16x128xf32>
    %78 = vector.broadcast %2 : vector<1x128xf32> to vector<16x128xf32>
    %79 = arith.addf %77, %78 : vector<16x128xf32>
    %80 = arith.truncf %79 : vector<16x128xf32> to vector<16x128xbf16>
    %c0_41 = arith.constant 0 : index
    %c0_42 = arith.constant 0 : index
    %81 = vector.load %arg10[%c0_41, %c0_42] : memref<128x128xbf16, #tpu.memory_space<vmem>>, vector<128x128xbf16>
    %cst_43 = arith.constant dense<0.000000e+00> : vector<16x128xf32>
    %82 = tpu.matmul %80, %81, %cst_43 {dimension_numbers = #tpu.dot_dimension_numbers<[1], [0], [0], [1], [0, 0, 1, 1], [], []>} : vector<16x128xbf16>, vector<128x128xbf16>, vector<16x128xf32> -> vector<16x128xf32>
    %83 = vector.broadcast %3 : vector<1x128xf32> to vector<16x128xf32>
    %84 = arith.addf %82, %83 : vector<16x128xf32>
    %cst_44 = arith.constant 0.000000e+00 : f32
    %85 = vector.broadcast %cst_44 : f32 to vector<16x128xf32>
    %86 = arith.maximumf %84, %85 : vector<16x128xf32>
    %87 = arith.truncf %86 : vector<16x128xf32> to vector<16x128xbf16>
    %c0_45 = arith.constant 0 : index
    %c0_46 = arith.constant 0 : index
    %88 = vector.load %arg12[%c0_45, %c0_46] : memref<128x128xbf16, #tpu.memory_space<vmem>>, vector<128x128xbf16>
    %cst_47 = arith.constant dense<0.000000e+00> : vector<16x128xf32>
    %89 = tpu.matmul %87, %88, %cst_47 {dimension_numbers = #tpu.dot_dimension_numbers<[1], [0], [0], [1], [0, 0, 1, 1], [], []>} : vector<16x128xbf16>, vector<128x128xbf16>, vector<16x128xf32> -> vector<16x128xf32>
    %90 = vector.broadcast %4 : vector<1x128xf32> to vector<16x128xf32>
    %91 = arith.addf %89, %90 : vector<16x128xf32>
    %92 = arith.addf %79, %91 : vector<16x128xf32>
    %cst_48 = arith.constant dense<0.000000e+00> : vector<16xf32>
    %93 = vector.multi_reduction <add>, %92, %cst_48 [1] : vector<16x128xf32> to vector<16xf32>
    %94 = vector.shape_cast %93 : vector<16xf32> to vector<16x1xf32>
    %cst_49 = arith.constant 3.125000e-02 : f32
    %95 = vector.broadcast %cst_49 : f32 to vector<16x1xf32>
    %96 = arith.mulf %94, %95 : vector<16x1xf32>
    %97 = vector.broadcast %96 : vector<16x1xf32> to vector<16x128xf32>
    %98 = arith.subf %92, %97 : vector<16x128xf32>
    %cst_50 = arith.constant 0.000000e+00 : f32
    %99 = vector.shape_cast %10 : vector<1x128xi1> to vector<1x128xi1>
    %100 = vector.broadcast %99 : vector<1x128xi1> to vector<16x128xi1>
    %101 = vector.broadcast %cst_50 : f32 to vector<16x128xf32>
    %102 = arith.select %100, %98, %101 : vector<16x128xi1>, vector<16x128xf32>
    %103 = arith.mulf %102, %102 : vector<16x128xf32>
    %cst_51 = arith.constant dense<0.000000e+00> : vector<16xf32>
    %104 = vector.multi_reduction <add>, %103, %cst_51 [1] : vector<16x128xf32> to vector<16xf32>
    %105 = vector.shape_cast %104 : vector<16xf32> to vector<16x1xf32>
    %cst_52 = arith.constant 3.125000e-02 : f32
    %106 = vector.broadcast %cst_52 : f32 to vector<16x1xf32>
    %107 = arith.mulf %105, %106 : vector<16x1xf32>
    %cst_53 = arith.constant 9.99999974E-6 : f32
    %108 = vector.broadcast %cst_53 : f32 to vector<16x1xf32>
    %109 = arith.addf %107, %108 : vector<16x1xf32>
    %110 = math.rsqrt %109 : vector<16x1xf32>
    %111 = vector.broadcast %110 : vector<16x1xf32> to vector<16x128xf32>
    %112 = arith.mulf %102, %111 : vector<16x128xf32>
    %113 = vector.broadcast %5 : vector<1x128xf32> to vector<16x128xf32>
    %114 = arith.mulf %112, %113 : vector<16x128xf32>
    %115 = vector.broadcast %6 : vector<1x128xf32> to vector<16x128xf32>
    %116 = arith.addf %114, %115 : vector<16x128xf32>
    %117 = arith.truncf %116 : vector<16x128xf32> to vector<16x128xbf16>
    %c0_54 = arith.constant 0 : index
    %c0_55 = arith.constant 0 : index
    %118 = vector.load %arg16[%c0_54, %c0_55] : memref<128x128xbf16, #tpu.memory_space<vmem>>, vector<128x128xbf16>
    %cst_56 = arith.constant dense<0.000000e+00> : vector<16x128xf32>
    %119 = tpu.matmul %117, %118, %cst_56 {dimension_numbers = #tpu.dot_dimension_numbers<[1], [0], [0], [1], [0, 0, 1, 1], [], []>} : vector<16x128xbf16>, vector<128x128xbf16>, vector<16x128xf32> -> vector<16x128xf32>
    %120 = vector.broadcast %7 : vector<1x128xf32> to vector<16x128xf32>
    %121 = arith.addf %119, %120 : vector<16x128xf32>
    %c0_57 = arith.constant 0 : index
    %c0_58 = arith.constant 0 : index
    %122 = vector.load %arg18[%c0_57, %c0_58] : memref<16x128xf32, #tpu.memory_space<vmem>>, vector<16x128xf32>
    tpu.vector_store %arg18[%c0_57, %c0_58], %121 {strides = array<i32>} : memref<16x128xf32, #tpu.memory_space<vmem>>, vector<16x128xf32>,
    return
  }
  func.func @transform_0(%arg0: i32) -> (i32, i32) {
    %c0_i32 = arith.constant 0 : i32
    %c0_i32_0 = arith.constant 0 : i32
    return %arg0, %c0_i32 : i32, i32
  }
  func.func @transform_1(%arg0: i32) -> (i32, i32) {
    %c0_i32 = arith.constant 0 : i32
    %c0_i32_0 = arith.constant 0 : i32
    %c0_i32_1 = arith.constant 0 : i32
    return %c0_i32, %c0_i32_0 : i32, i32
  }
  func.func @transform_2(%arg0: i32) -> (i32, i32) {
    %c0_i32 = arith.constant 0 : i32
    %c0_i32_0 = arith.constant 0 : i32
    %c0_i32_1 = arith.constant 0 : i32
    return %c0_i32, %c0_i32_0 : i32, i32
  }
  func.func @transform_3(%arg0: i32) -> (i32, i32) {
    %c0_i32 = arith.constant 0 : i32
    %c0_i32_0 = arith.constant 0 : i32
    %c0_i32_1 = arith.constant 0 : i32
    return %c0_i32, %c0_i32_0 : i32, i32
  }
  func.func @transform_4(%arg0: i32) -> (i32, i32) {
    %c0_i32 = arith.constant 0 : i32
    %c0_i32_0 = arith.constant 0 : i32
    %c0_i32_1 = arith.constant 0 : i32
    return %c0_i32, %c0_i32_0 : i32, i32
  }
  func.func @transform_5(%arg0: i32) -> (i32, i32) {
    %c0_i32 = arith.constant 0 : i32
    %c0_i32_0 = arith.constant 0 : i32
    %c0_i32_1 = arith.constant 0 : i32
    return %c0_i32, %c0_i32_0 : i32, i32
  }
  func.func @transform_6(%arg0: i32) -> (i32, i32) {
    %c0_i32 = arith.constant 0 : i32
    %c0_i32_0 = arith.constant 0 : i32
    %c0_i32_1 = arith.constant 0 : i32
    return %c0_i32, %c0_i32_0 : i32, i32
  }
  func.func @transform_7(%arg0: i32) -> (i32, i32) {
    %c0_i32 = arith.constant 0 : i32
    %c0_i32_0 = arith.constant 0 : i32
    %c0_i32_1 = arith.constant 0 : i32
    return %c0_i32, %c0_i32_0 : i32, i32
  }
  func.func @transform_8(%arg0: i32) -> (i32, i32) {
    %c0_i32 = arith.constant 0 : i32
    %c0_i32_0 = arith.constant 0 : i32
    %c0_i32_1 = arith.constant 0 : i32
    return %c0_i32, %c0_i32_0 : i32, i32
  }
  func.func @transform_9(%arg0: i32) -> (i32, i32) {
    %c0_i32 = arith.constant 0 : i32
    %c0_i32_0 = arith.constant 0 : i32
    %c0_i32_1 = arith.constant 0 : i32
    return %c0_i32, %c0_i32_0 : i32, i32
  }
  func.func @transform_10(%arg0: i32) -> (i32, i32) {
    %c0_i32 = arith.constant 0 : i32
    %c0_i32_0 = arith.constant 0 : i32
    %c0_i32_1 = arith.constant 0 : i32
    return %c0_i32, %c0_i32_0 : i32, i32
  }
  func.func @transform_11(%arg0: i32) -> (i32, i32) {
    %c0_i32 = arith.constant 0 : i32
    %c0_i32_0 = arith.constant 0 : i32
    %c0_i32_1 = arith.constant 0 : i32
    return %c0_i32, %c0_i32_0 : i32, i32
  }
  func.func @transform_12(%arg0: i32) -> (i32, i32) {
    %c0_i32 = arith.constant 0 : i32
    %c0_i32_0 = arith.constant 0 : i32
    %c0_i32_1 = arith.constant 0 : i32
    return %c0_i32, %c0_i32_0 : i32, i32
  }
  func.func @transform_13(%arg0: i32) -> (i32, i32) {
    %c0_i32 = arith.constant 0 : i32
    %c0_i32_0 = arith.constant 0 : i32
    %c0_i32_1 = arith.constant 0 : i32
    return %c0_i32, %c0_i32_0 : i32, i32
  }
  func.func @transform_14(%arg0: i32) -> (i32, i32) {
    %c0_i32 = arith.constant 0 : i32
    %c0_i32_0 = arith.constant 0 : i32
    %c0_i32_1 = arith.constant 0 : i32
    return %c0_i32, %c0_i32_0 : i32, i32
  }
  func.func @transform_15(%arg0: i32) -> (i32, i32) {
    %c0_i32 = arith.constant 0 : i32
    %c0_i32_0 = arith.constant 0 : i32
    %c0_i32_1 = arith.constant 0 : i32
    return %c0_i32, %c0_i32_0 : i32, i32
  }
  func.func @transform_16(%arg0: i32) -> (i32, i32) {
    %c0_i32 = arith.constant 0 : i32
    %c0_i32_0 = arith.constant 0 : i32
    %c0_i32_1 = arith.constant 0 : i32
    return %c0_i32, %c0_i32_0 : i32, i32
  }
  func.func @transform_17(%arg0: i32) -> (i32, i32) {
    %c0_i32 = arith.constant 0 : i32
    %c0_i32_0 = arith.constant 0 : i32
    return %arg0, %c0_i32 : i32, i32
  }
}

</mosaic_0001>

<bundles_post_ra>
// kernel: tpu_custom_call.1
= control target key start
LH: loop header
LB: loop body
LE: loop exit
PB: predicated region body
PF: predicated region fallthrough
CT: control target
= control target key end

     0   :  { %s6137_s0 = inlined_call_operand.vmem [shape: f32[32,8], index: 0, kind: input, shape index: {}]   ;;  %s6138_s1 = inlined_call_operand.hbm [shape: f32[128,128], index: 1, kind: input, shape index: {}]   ;;  %s6139_s2 = inlined_call_operand.vmem [shape: f32[1,128], index: 2, kind: input, shape index: {}]   ;;  %s6140_s3 = inlined_call_operand.hbm [shape: bf16[128,128], index: 3, kind: input, shape index: {}]   ;;  %s6141_s4 = inlined_call_operand.hbm [shape: bf16[128,128], index: 4, kind: input, shape index: {}]   ;;  %s6142_s5 = inlined_call_operand.hbm [shape: bf16[128,128], index: 5, kind: input, shape index: {}]   ;;  %s6143_s6 = inlined_call_operand.hbm [shape: bf16[128,128], index: 6, kind: input, shape index: {}]   ;;  %s6144_s7 = inlined_call_operand.vmem [shape: f32[1,128], index: 7, kind: input, shape index: {}]   ;;  %s6145_s8 = inlined_call_operand.vmem [shape: f32[1,128], index: 8, kind: input, shape index: {}]   ;;  %s6146_s9 = inlined_call_operand.vmem [shape: bf16[128,128], index: 9, kind: input, shape index: {}]   ;;  %s6147_s10 = inlined_call_operand.vmem [shape: f32[1,128], index: 10, kind: input, shape index: {}]   ;;  %s6148_s11 = inlined_call_operand.hbm [shape: bf16[128,128], index: 11, kind: input, shape index: {}]   ;;  %s6149_s12 = inlined_call_operand.vmem [shape: f32[1,128], index: 12, kind: input, shape index: {}]   ;;  %s6150_s13 = inlined_call_operand.vmem [shape: f32[1,128], index: 13, kind: input, shape index: {}]   ;;  %s6151_s14 = inlined_call_operand.vmem [shape: f32[1,128], index: 14, kind: input, shape index: {}]   ;;  %s6152_s15 = inlined_call_operand.hbm [shape: bf16[128,128], index: 15, kind: input, shape index: {}]   ;;  %s6153_s16 = inlined_call_operand.vmem [shape: f32[1,128], index: 16, kind: input, shape index: {}]   ;;  %s6154_s17 = inlined_call_operand.hbm [shape: f32[32,128], index: 17, kind: output, shape index: {}]  }
   0x1   :  { %6172 = sst [smem:[#allocation27_spill]] %s6137_s0 }
   0x2   :  { %6173 = sst [smem:[#allocation28_spill]] %s6138_s1 }
   0x3   :  { %6174 = sst [smem:[#allocation29_spill]] %s6140_s3 }
   0x4   :  { %6175 = sst [smem:[#allocation30_spill]] %s6150_s13 }
   0x5   :  { %6176 = sst [smem:[#allocation31_spill]] %s6151_s14 }
   0x6   :  { %6177 = sst [smem:[#allocation32_spill]] %s6153_s16 }
   0x7   :  { %6178 = sst [smem:[#allocation33_spill]] %s6154_s17 }
   0x8   :  { %22 = vsyncpa [#allocation3], 0 }
   0x9   :  { %23 = vsyncpa [#allocation6], 0 }
   0xa   :  { %24 = vsyncpa [#allocation9], 0 }
   0xb   :  { %25 = vsyncpa [#allocation12], 0 }
   0xc   :  { %26 = vsyncpa [#allocation4], 0 }
   0xd   :  { %28 = vsyncpa [#allocation4 + $0x1], 0  ;;  %s5133_s24 = smov 0   ;;  %s5135_s25 = smov 0  }
   0xe   :  { %s5137_s26 = smov 0   ;;  %s5139_s27 = smov 0  }
   0xf LB: > { %6179 = sst [smem:[#allocation20_spill]] %s5013_s24  ;;  %s5154_s28 = sadd.s32 4294967295, %s5025_s27   ;;  %s5025_s27 = sphi %s5139_s27, %s6215_s27   ;;  %s5021_s26 = sphi %s5137_s26, %s6217_s26   ;;  %s5017_s25 = sphi %s5135_s25, %s6219_s25   ;;  %s5013_s24 = sphi %s5133_s24, %s6218_s24  }
  0x10   : > { %6180 = sst [smem:[#allocation21_spill]] %s5021_s26  ;;  %s3863_s29 = sadd.s32 4294967294, %s5025_s27  }
  0x11   : > { %6181 = sst [smem:[#allocation22_spill]] %s5025_s27  ;;  %s5158_s0 = sadd.s32 1, %s5025_s27  }
  0x12   : > { %6182 = sst [smem:[#allocation23_spill]] %s5158_s0  ;;  %s403_s30 = sadd.s32 1, %s5021_s26 }
  0x13   : > { %s400_s18 = ssub.s32 %s5025_s27, %s5158_s0  ;;  %p413_p0 = scmp.ne.s32.totalorder %s5021_s26, %s5017_s25 }
  0x14   : > { %p401_p1 = scmp.eq.s32.totalorder %s400_s18, 0  ;;  %p414_p2 = scmp.eq.s32.totalorder %s5154_s28, 1 }
  0x15   : > { %p419_p3 = scmp.ne.s32.totalorder %s5017_s25, %s5013_s24  ;;  %p420_p4 = scmp.eq.s32.totalorder %s3863_s29, 1 }
  0x16   : > { %s5169_s19 = scalar_select %p401_p1, %s5021_s26, %s403_s30  }
  0x17   : > { %p5171_p5 = por %p414_p2, %p413_p0  ;;  %p5175_p6 = por %p420_p4, %p419_p3 }
  0x18   : > { %6183 = sst [smem:[#allocation24_spill]] %s5169_s19  ;;  %p3864_p7 = scmp.ge.s32.totalorder %s5025_s27, 1 }
  0x19   : > { %s6184_s1 = scalar_select %p5171_p5, 1, 0 }
  0x1a   : > { %s6186_s20 = scalar_select %p5175_p6, 1, 0 }
  0x1b   : > { %6185 = sst [smem:[#allocation25_spill]] %s6184_s1  ;;  %p427_p8 = scmp.lt.s32.totalorder %s5025_s27, 3 }
  0x1c   : > { %6187 = sst [smem:[#allocation26_spill]] %s6186_s20  ;;  %p6163_p9 = scmp.eq.s32.totalorder %s5154_s28, 0 }
  0x1d   : > { %p5182_p10 = pnand %p3864_p7, %p427_p8  ;;  %s5027_s22 = smov [#allocation5]  }
  0x1e   : > { %s455_s23 = sshll.u32 %s5027_s22, 4  ;;  %s5028_s30 = smov [#allocation8]   ;;  %s5188_s23 = int_to_ptr.vmem [resolvable:$true] %s455_s23 }
  0x1f   : > { %s6188_s21 = scalar_select %p5182_p10, 1, 0 }
  0x20   : > { %p4535_p11 = pneg %p5182_p10  ;;  %s481_s18 = sshll.u32 %s5028_s30, 4  ;;  %s5196_s18 = int_to_ptr.vmem [resolvable:$true] %s481_s18 }
  0x21   : > { %s5029_s19 = smov [#allocation11]   ;;  %s6190_s3 = sld [smem:[#allocation29_spill]] }
  0x22   : > { %p5192_p12 = pnand %p6163_p9, %p4535_p11  ;;  %s5198_s26 = sshll.u32 %s5029_s19, 4  ;;  %s520_s26 = int_to_ptr.vmem [resolvable:$true] %s5198_s26 }
  0x24   : > { %p5208_p0 = pneg %p5192_p12 }
  0x27   : > { %s4751_s22 = scalar_lea.hbm %s6190_s3, 1024 }
  0x28   : > { %p4752_p13 = scmp.ne.s32.totalorder %s6190_s3, %s4751_s22  ;;  %p4758_p3 = scmp.lt.u32.totalorder %s4751_s22, %s6190_s3 }
  0x2a   : > { %p4754_p1 = pnand %p5208_p0, %p4752_p13 }
  0x2c   : > { %p4755_p2 = pneg %p4754_p1 }
  0x2e   : > { %p4760_p4 = pnand %p4758_p3, %p4755_p2 }
  0x30   : > { %4763 = shalt.err (!%p4760_p4)
}
  0x31   : > { %s4764_s24 = scalar_lea.vmem %s5188_s23, 1024  ;;  %p4772_p9 = scmp.lt.s32.totalorder %s5188_s23, %s5188_s23 }
  0x32   : > { %p4765_p7 = scmp.ne.s32.totalorder %s5188_s23, %s4764_s24  ;;  %p4773_p6 = scmp.lt.s32.totalorder %s4764_s24, %s4764_s24 }
  0x34   : > { %p4767_p8 = pnand %p4765_p7, %p5208_p0  ;;  %p4774_p13 = por %p4773_p6, %p4772_p9 }
  0x36   : > { %p4768_p11 = pneg %p4767_p8 }
  0x38   : > { %p4775_p1 = pnand %p4774_p13, %p4768_p11 }
  0x3a   : > { %4778 = shalt.err (!%p4775_p1)
}
  0x3b   : > { %s6168_s27 = smov 64   ;;  %s6170_s0 = smov 4  }
  0x3c   : > { %4541 = dma.hbm_to_vmem [thread:$0]  (!%p5192_p12), %s6190_s3, 1024, %s5188_s23, [#allocation6], %s6168_s27, %s6168_s27, %s6170_s0  }
  0x3d   : > { %s4779_s24 = scalar_lea.hbm %s6142_s5, 1024 }
  0x3e   : > { %p4780_p6 = scmp.ne.s32.totalorder %s6142_s5, %s4779_s24  ;;  %p4786_p3 = scmp.lt.u32.totalorder %s4779_s24, %s6142_s5 }
  0x40   : > { %p4782_p9 = pnand %p4780_p6, %p5208_p0 }
  0x42   : > { %p4783_p2 = pneg %p4782_p9 }
  0x44   : > { %p4788_p4 = pnand %p4786_p3, %p4783_p2 }
  0x46   : > { %4791 = shalt.err (!%p4788_p4)
}
  0x47   : > { %s4792_s23 = scalar_lea.vmem %s5196_s18, 1024  ;;  %p4800_p13 = scmp.lt.s32.totalorder %s5196_s18, %s5196_s18 }
  0x48   : > { %p4793_p7 = scmp.ne.s32.totalorder %s5196_s18, %s4792_s23  ;;  %p4801_p1 = scmp.lt.s32.totalorder %s4792_s23, %s4792_s23 }
  0x4a   : > { %p4795_p8 = pnand %p4793_p7, %p5208_p0  ;;  %p4802_p6 = por %p4801_p1, %p4800_p13 }
  0x4c   : > { %p4796_p11 = pneg %p4795_p8 }
  0x4e   : > { %p4803_p9 = pnand %p4802_p6, %p4796_p11 }
  0x50   : > { %4806 = shalt.err (!%p4803_p9)
}
  0x51   : > { %4547 = dma.hbm_to_vmem [thread:$0]  (!%p5192_p12), %s6142_s5, 1024, %s5196_s18, [#allocation9], %s6168_s27, %s6168_s27, %s6170_s0  }
  0x52   : > { %s4807_s20 = scalar_lea.hbm %s6148_s11, 1024 }
  0x53   : > { %p4808_p2 = scmp.ne.s32.totalorder %s6148_s11, %s4807_s20  ;;  %p4814_p7 = scmp.lt.u32.totalorder %s4807_s20, %s6148_s11 }
  0x55   : > { %p4810_p3 = pnand %p4808_p2, %p5208_p0 }
  0x57   : > { %p4811_p4 = pneg %p4810_p3 }
  0x59   : > { %p4816_p8 = pnand %p4814_p7, %p4811_p4 }
  0x5b   : > { %4819 = shalt.err (!%p4816_p8)
}
  0x5c   : > { %s4820_s23 = scalar_lea.vmem %s520_s26, 1024  ;;  %p4828_p6 = scmp.lt.s32.totalorder %s520_s26, %s520_s26 }
  0x5d   : > { %p4821_p11 = scmp.ne.s32.totalorder %s520_s26, %s4820_s23  ;;  %p4829_p9 = scmp.lt.s32.totalorder %s4820_s23, %s4820_s23 }
  0x5f   : > { %p4823_p13 = pnand %p4821_p11, %p5208_p0  ;;  %p4830_p5 = por %p4829_p9, %p4828_p6 }
  0x61   : > { %p4824_p1 = pneg %p4823_p13 }
  0x63   : > { %p4831_p10 = pnand %p4830_p5, %p4824_p1 }
  0x65   : > { %4834 = shalt.err (!%p4831_p10)
}
  0x66   : > { %4553 = dma.hbm_to_vmem [thread:$0]  (!%p5192_p12), %s6148_s11, 1024, %s520_s26, [#allocation12], %s6168_s27, %s6168_s27, %s6170_s0  }
  0x67   : > { %s5032_s14 = smov [#allocation2]   ;;  %s6192_s22 = sld [smem:[#allocation28_spill]] }
  0x68   : > { %s439_s16 = sshll.u32 %s5032_s14, 4  ;;  %s440_s16 = int_to_ptr.vmem [resolvable:$true] %s439_s16 }
  0x6d   : > { %s4835_s30 = scalar_lea.hbm %s6192_s22, 2048 }
  0x6e   : > { %p4836_p5 = scmp.ne.s32.totalorder %s6192_s22, %s4835_s30  ;;  %p4842_p3 = scmp.lt.u32.totalorder %s4835_s30, %s6192_s22 }
  0x70   : > { %p4838_p10 = pnand %p4836_p5, %p5208_p0 }
  0x72   : > { %p4839_p2 = pneg %p4838_p10 }
  0x74   : > { %p4844_p4 = pnand %p4842_p3, %p4839_p2 }
  0x76   : > { %4847 = shalt.err (!%p4844_p4)
}
  0x77   : > { %s4848_s26 = scalar_lea.vmem %s440_s16, 2048  ;;  %p4856_p13 = scmp.lt.s32.totalorder %s440_s16, %s440_s16 }
  0x78   : > { %p4849_p7 = scmp.ne.s32.totalorder %s440_s16, %s4848_s26  ;;  %p4857_p1 = scmp.lt.s32.totalorder %s4848_s26, %s4848_s26 }
  0x7a   : > { %p4851_p8 = pnand %p4849_p7, %p5208_p0  ;;  %p4858_p6 = por %p4857_p1, %p4856_p13 }
  0x7c   : > { %p4852_p11 = pneg %p4851_p8 }
  0x7e   : > { %p4859_p9 = pnand %p4858_p6, %p4852_p11 }
  0x80   : > { %4862 = shalt.err (!%p4859_p9)
}
  0x81   : > { %s5033_s18 = smov 128   ;;  %s5034_s13 = smov 8  }
  0x82   : > { %4538 = dma.hbm_to_vmem [thread:$0]  (!%p5192_p12), %s6192_s22, 2048, %s440_s16, [#allocation3], %s5033_s18, %s5033_s18, %s5034_s13  }
  0x83   : > { %s5035_s1 = smov [#allocation7]   ;;  %s5036_s30 = smov [#allocation10]  }
  0x84   : > { %s468_s20 = sshll.u32 %s5035_s1, 4  ;;  %s494_s19 = sshll.u32 %s5036_s30, 4  ;;  %s469_s20 = int_to_ptr.vmem [resolvable:$true] %s468_s20  ;;  %s5298_s19 = int_to_ptr.vmem [resolvable:$true] %s494_s19 }
  0x85   : > { %s4863_s26 = scalar_lea.hbm %s6141_s4, 1024 }
  0x86   : > { %p4864_p5 = scmp.ne.s32.totalorder %s6141_s4, %s4863_s26  ;;  %p4870_p3 = scmp.lt.u32.totalorder %s4863_s26, %s6141_s4 }
  0x88   : > { %p4866_p10 = pnand %p4864_p5, %p5208_p0 }
  0x8a   : > { %p4867_p2 = pneg %p4866_p10 }
  0x8c   : > { %p4872_p4 = pnand %p4870_p3, %p4867_p2 }
  0x8e   : > { %4875 = shalt.err (!%p4872_p4)
}
  0x8f   : > { %s4876_s18 = scalar_lea.vmem %s469_s20, 1024  ;;  %p4884_p13 = scmp.lt.s32.totalorder %s469_s20, %s469_s20 }
  0x90   : > { %p4877_p7 = scmp.ne.s32.totalorder %s469_s20, %s4876_s18  ;;  %p4885_p1 = scmp.lt.s32.totalorder %s4876_s18, %s4876_s18 }
  0x92   : > { %p4879_p8 = pnand %p4877_p7, %p5208_p0  ;;  %p4886_p6 = por %p4885_p1, %p4884_p13 }
  0x94   : > { %p4880_p11 = pneg %p4879_p8 }
  0x96   : > { %p4887_p9 = pnand %p4886_p6, %p4880_p11 }
  0x98   : > { %4890 = shalt.err (!%p4887_p9)
}
  0x99   : > { %s6193_s27 = smov 4   ;;  %s6194_s0 = smov 64  }
  0x9a   : > { %4544 = dma.hbm_to_vmem [thread:$0]  (!%p5192_p12), %s6141_s4, 1024, %s469_s20, [#allocation6], %s6194_s0, %s6194_s0, %s6193_s27  }
  0x9b   : > { %s4891_s24 = scalar_lea.hbm %s6143_s6, 1024 }
  0x9c   : > { %p4892_p5 = scmp.ne.s32.totalorder %s6143_s6, %s4891_s24  ;;  %p4898_p3 = scmp.lt.u32.totalorder %s4891_s24, %s6143_s6 }
  0x9e   : > { %p4894_p10 = pnand %p4892_p5, %p5208_p0 }
  0xa0   : > { %p4895_p2 = pneg %p4894_p10 }
  0xa2   : > { %p4900_p4 = pnand %p4898_p3, %p4895_p2 }
  0xa4   : > { %4903 = shalt.err (!%p4900_p4)
}
  0xa5   : > { %s4904_s20 = scalar_lea.vmem %s5298_s19, 1024  ;;  %p4912_p13 = scmp.lt.s32.totalorder %s5298_s19, %s5298_s19 }
  0xa6   : > { %p4905_p7 = scmp.ne.s32.totalorder %s5298_s19, %s4904_s20  ;;  %p4913_p1 = scmp.lt.s32.totalorder %s4904_s20, %s4904_s20 }
  0xa8   : > { %p4907_p8 = pnand %p4905_p7, %p5208_p0  ;;  %p4914_p6 = por %p4913_p1, %p4912_p13 }
  0xaa   : > { %p4908_p11 = pneg %p4907_p8 }
  0xac   : > { %p4915_p9 = pnand %p4914_p6, %p4908_p11 }
  0xae   : > { %4918 = shalt.err (!%p4915_p9)
}
  0xaf   : > { %4550 = dma.hbm_to_vmem [thread:$0]  (!%p5192_p12), %s6143_s6, 1024, %s5298_s19, [#allocation9], %s6194_s0, %s6194_s0, %s6193_s27  }
  0xb0   : > { %s5037_s14 = smov [#allocation13]   ;;  %s4919_s23 = scalar_lea.hbm %s6152_s15, 1024 }
  0xb1   : > { %s541_s1 = sshll.u32 %s5037_s14, 4  ;;  %p4920_p5 = scmp.ne.s32.totalorder %s6152_s15, %s4919_s23  ;;  %s542_s1 = int_to_ptr.vmem [resolvable:$true] %s541_s1 }
  0xb2   : > { %p4926_p3 = scmp.lt.u32.totalorder %s4919_s23, %s6152_s15 }
  0xb3   : > { %p4922_p10 = pnand %p4920_p5, %p5208_p0 }
  0xb5   : > { %p4923_p2 = pneg %p4922_p10 }
  0xb7   : > { %p4928_p4 = pnand %p4926_p3, %p4923_p2 }
  0xb9   : > { %4931 = shalt.err (!%p4928_p4)
}
  0xba   : > { %s4932_s19 = scalar_lea.vmem %s542_s1, 1024  ;;  %p4940_p13 = scmp.lt.s32.totalorder %s542_s1, %s542_s1 }
  0xbb   : > { %p4933_p7 = scmp.ne.s32.totalorder %s542_s1, %s4932_s19  ;;  %p4941_p1 = scmp.lt.s32.totalorder %s4932_s19, %s4932_s19 }
  0xbd   : > { %p4935_p8 = pnand %p4933_p7, %p5208_p0  ;;  %p4942_p6 = por %p4941_p1, %p4940_p13 }
  0xbf   : > { %p4936_p11 = pneg %p4935_p8 }
  0xc1   : > { %p4943_p9 = pnand %p4942_p6, %p4936_p11 }
  0xc3   : > { %4946 = shalt.err (!%p4943_p9)
}
  0xc4   : > { %4556 = dma.hbm_to_vmem [thread:$0]  (!%p5192_p12), %s6152_s15, 1024, %s542_s1, [#allocation12], %s6194_s0, %s6194_s0, %s6193_s27  }
  0xc5   : > { %p6195_p5 = scmp.ne.s32.totalorder %s6188_s21, 0 }
  0xc6   : > { %p6196_p0 = scmp.eq.s32.totalorder (!%p6195_p5), %s5154_s28, 0 }
  0xc7   : > { %569 = sbr.rel (%p6195_p5) target bundleno = 2921 (0xb69), region = 88 }
  0xce   : > { %4992 = dma.done.wait (%p6196_p0), [#allocation3], 2048   ;;  %p6197_p10 = pmov %p6196_p0 }
  0xcf   : > { %p6198_p2 = pmov %p6196_p0 }
  0xd0   : > { %4994 = vsyncadd (%p6197_p10), [#allocation3], 4294965248 }
  0xd1   : > { %4996 = dma.done.wait (%p6198_p2), [#allocation6], 2048   ;;  %p6199_p3 = pmov %p6196_p0 }
  0xd2   : > { %p6200_p4 = pmov %p6196_p0 }
  0xd3   : > { %4998 = vsyncadd (%p6199_p3), [#allocation6], 4294965248 }
  0xd4   : > { %5000 = dma.done.wait (%p6200_p4), [#allocation9], 2048   ;;  %p6201_p12 = pmov %p6196_p0 }
  0xd5   : > { %p6202_p7 = pmov %p6196_p0 }
  0xd6   : > { %5002 = vsyncadd (%p6201_p12), [#allocation9], 4294965248 }
  0xd7   : > { %5004 = dma.done.wait (%p6202_p7), [#allocation12], 2048   ;;  %p6203_p8 = pmov %p6196_p0 }
  0xd8   : > { %s3882_s17 = sshll.u32 %s5154_s28, 1  ;;  %v676_v0 = vlaneseq  ;;  %s6204_s0 = sld [smem:[#allocation27_spill]]  ;;  %v4623_v10 = vld [vmem:[#allocation5] sm:$0xff]   ;;  %v4625_v15 = vld [vmem:[#allocation5 + $0x8] sm:$0xff]   ;;  %v4627_v18 = vld [vmem:[#allocation5 + $0x10] sm:$0xff]   ;;  %vm5039_vm0 = vmmov 0  }
  0xd9   : > { %5006 = vsyncadd (%p6203_p8), [#allocation12], 4294965248  ;;  %p646_p11 = scmp.lt.s32.totalorder %s3882_s17, 3  ;;  %v4624_v12 = vld [vmem:[#allocation7] sm:$0xff]   ;;  %v4626_v16 = vld [vmem:[#allocation7 + $0x8] sm:$0xff]   ;;  %4125 = vmatprep.subr.bf16.mxu0 %v4623_v10  ;;  %vm2223_vm1 = vcmask 1043456  }
  0xda   : > { %v5388_v1 = vshrl.u32 %v676_v0, 7  ;;  %4157 = vmatprep.subr.bf16.mxu1 %v4624_v12  ;;  %4126 = vmatpush3.bf16.msra.mxu0 %v4623_v10  ;;  %v4628_v22 = vld [vmem:[#allocation7 + $0x10] sm:$0xff]   ;;  %v4629_v23 = vld [vmem:[#allocation5 + $0x18] sm:$0xff]   ;;  %v4631_v28 = vld [vmem:[#allocation5 + $0x20] sm:$0xff]   ;;  %vm2027_vm2 = vcmask 64512   ;;  %vm3160_vm3 = vcmask 1041409  }
  0xdb   : > { %s6221_s17 = smov (!%p646_p11, %s3882_s17), 3  ;;  %4158 = vmatpush3.bf16.msra.mxu1 %v4624_v12  ;;  %4127 = vmatprep.subr.bf16.mxu0 %v4625_v15  ;;  %v4630_v27 = vld [vmem:[#allocation7 + $0x18] sm:$0xff]   ;;  %v4632_v31 = vld [vmem:[#allocation7 + $0x20] sm:$0xff]   ;;  %v4633_v32 = vld [vmem:[#allocation5 + $0x28] sm:$0xff]   ;;  %vm3163_vm4 = vcmask 1042434   ;;  %vm3166_vm5 = vcmask 1043459  }
  0xdc   : > { %v697_v2 = vsub.s32 2, %v5388_v1  ;;  %v683_v3 = vsub.s32 0, %v5388_v1  ;;  %s3883_s21 = sshll.u32 %s6221_s17, 3  ;;  %v704_v4 = vsub.s32 3, %v5388_v1  ;;  %v690_v5 = vsub.s32 1, %v5388_v1  ;;  %4159 = vmatprep.subr.bf16.mxu1 %v4626_v16  ;;  %v4634_v35 = vld [vmem:[#allocation7 + $0x28] sm:$0xff]  }
  0xdd   : > { %v718_v9 = vsub.s32 5, %v5388_v1  ;;  %v711_v11 = vsub.s32 4, %v5388_v1  ;;  %v732_v17 = vsub.s32 7, %v5388_v1  ;;  %v725_v21 = vsub.s32 6, %v5388_v1  ;;  %v4635_v36 = vld [vmem:[#allocation5 + $0x30] sm:$0xff]   ;;  %v4637_v40 = vld [vmem:[#allocation5 + $0x38] sm:$0xff]  }
  0xde   : > { %s5395_s14 = scalar_lea.vmem %s6204_s0, %s3883_s21  ;;  %4128 = vmatpush3.bf16.msra.mxu0 %v4625_v15  ;;  %v4636_v39 = vld [vmem:[#allocation7 + $0x30] sm:$0xff]   ;;  %v4638_v43 = vld [vmem:[#allocation7 + $0x38] sm:$0xff]   ;;  %v4639_v44 = vld [vmem:[#allocation8] sm:$0xff]   ;;  %vm3169_vm6 = vcmask 1044484   ;;  %vm3172_vm7 = vcmask 1045509   ;;  %vm3175_vm8 = vcmask 1046534  }
  0xdf   : > { %v679_v6 = vld [vmem:[%s5395_s14] sm:$0xff]  ;;  %4160 = vmatpush3.bf16.msra.mxu1 %v4626_v16  ;;  %4129 = vmatprep.subr.bf16.mxu0 %v4627_v18  ;;  %v680_v26 = vld [vmem:[%s5395_s14 + $0x8] sm:$0xff]  ;;  %v655_v48 = vld [vmem:[#allocation2 + $0x10] sm:$0xff]  ;;  %vm3177_vm9 = vcmask 1047559   ;;  %vm3200_vm10 = vcmask 1046528   ;;  %s6205_s17 = sld [smem:[#allocation30_spill]] }
  0xe0   : > { %v698_v7 = vrot.slane %v679_v6, %v697_v2  ;;  %v684_v8 = vrot.slane %v679_v6, %v683_v3  ;;  %v705_v13 = vrot.slane %v679_v6, %v704_v4  ;;  %v691_v14 = vrot.slane %v679_v6, %v690_v5  ;;  %4161 = vmatprep.subr.bf16.mxu1 %v4628_v22  ;;  %v5408_v45 = vld [vmem:[%s6139_s2] ss:$0 sm:$0xff]  ;;  %v656_v53 = vld [vmem:[#allocation2 + $0x18] sm:$0xff]  ;;  %v654_v55 = vld [vmem:[#allocation2 + $0x8] sm:$0xff]  ;;  %s6206_s27 = sld [smem:[#allocation31_spill]]  ;;  %s642_s0 = sand.u32 1, %s5017_s25  }
  0xe1   : > { %v719_v19 = vrot.slane %v679_v6, %v718_v9  ;;  %v712_v20 = vrot.slane %v679_v6, %v711_v11  ;;  %v733_v24 = vrot.slane %v679_v6, %v732_v17  ;;  %v726_v25 = vrot.slane %v679_v6, %v725_v21  ;;  %v653_v51 = vld [vmem:[#allocation2] sm:$0xff]  ;;  %v658_v63 = vld [vmem:[#allocation2 + $0x28] sm:$0xff]  ;;  %s3881_s14 = sshll.u32 %s642_s0, 4  ;;  %s6207_s24 = sld [smem:[#allocation32_spill]] }
  0xe2   : > { %700 = vbcast.lane.b32.xlu1 %v698_v7, 256  ;;  %686 = vbcast.lane.b32.xlu0 %v684_v8, 256  ;;  %v747_v29 = vrot.slane %v680_v26, %v690_v5  ;;  %v740_v30 = vrot.slane %v680_v26, %v683_v3  ;;  %v761_v33 = vrot.slane %v680_v26, %v704_v4  ;;  %v4640_v7 = vld [vmem:[#allocation8 + $0x8] sm:$0xff]   ;;  %s644_s23 = scalar_lea.vmem [#allocation14], %s3881_s14  ;;  %s6208_s26 = sld [smem:[#allocation25_spill]] }
  0xe3   : > { %4130 = vmatpush3.bf16.msra.mxu0 %v4627_v18  ;;  %4162 = vmatpush3.bf16.msra.mxu1 %v4628_v22  ;;  %v754_v34 = vrot.slane %v680_v26, %v697_v2  ;;  %v775_v37 = vrot.slane %v680_v26, %v718_v9  ;;  %v768_v38 = vrot.slane %v680_v26, %v711_v11  ;;  %v657_v2 = vld [vmem:[#allocation2 + $0x20] sm:$0xff]  ;;  %v660_v11 = vld [vmem:[#allocation2 + $0x38] sm:$0xff]  ;;  %s3732_s3 = sshll.u32 %s644_s23, 4  ;;  %s3969_s16 = sshll.u32 %s5154_s28, 8  ;;  %s6089_s3 = int_to_ptr.vmem [resolvable:$true] %s3732_s3 }
  0xe4   : > { %4131 = vmatprep.subr.bf16.mxu0 %v4629_v23  ;;  %4163 = vmatprep.subr.bf16.mxu1 %v4630_v27  ;;  %v789_v41 = vrot.slane %v680_v26, %v732_v17  ;;  %v782_v42 = vrot.slane %v680_v26, %v725_v21  ;;  %v4641_v17 = vld [vmem:[#allocation8 + $0x10] sm:$0xff]   ;;  %v662_v21 = vld [vmem:[#allocation2 + $0x48] sm:$0xff]  ;;  %s6209_s18 = sld [smem:[#allocation33_spill]]  ;;  %s4947_s28 = scalar_lea.vmem %s6089_s3, 256 }
  0xe5   : > { %p4948_p13 = scmp.ne.s32.totalorder %s6089_s3, %s4947_s28  ;;  %s5040_s21 = smov [#allocation14]  }
  0xe6   : > { %707 = vbcast.lane.b32.xlu1 %v705_v13, 256  ;;  %693 = vbcast.lane.b32.xlu0 %v691_v14, 256  ;;  %v659_v13 = vld [vmem:[#allocation2 + $0x30] sm:$0xff]  ;;  %s4951_s29 = sshll.u32 %s5040_s21, 4  ;;  %s4952_s29 = int_to_ptr.vmem [resolvable:$false] %s4951_s29 }
  0xe7   : > { %4132 = vmatpush3.bf16.msra.mxu0 %v4629_v23  ;;  %4164 = vmatpush3.bf16.msra.mxu1 %v4630_v27  ;;  %v661_v23 = vld [vmem:[#allocation2 + $0x40] sm:$0xff]  ;;  %v4642_v27 = vld [vmem:[#allocation8 + $0x18] sm:$0xff]   ;;  %p4954_p5 = scmp.lt.s32.totalorder %s6089_s3, %s4952_s29 }
  0xe8   : > { %4133 = vmatprep.subr.bf16.mxu0 %v4631_v28  ;;  %4165 = vmatprep.subr.bf16.mxu1 %v4632_v31  ;;  %p6210_p1 = scmp.ne.s32.totalorder %s6208_s26, 0 }
  0xea   : > { %721 = vbcast.lane.b32.xlu1 %v719_v19, 256  ;;  %714 = vbcast.lane.b32.xlu0 %v712_v20, 256  ;;  %s6094_s13 = scalar_lea.hbm %s6209_s18, %s3969_s16  ;;  %p4949_p6 = pnand %p4948_p13, %p6210_p1 }
  0xeb   : > { %4134 = vmatpush3.bf16.msra.mxu0 %v4631_v28  ;;  %4166 = vmatpush3.bf16.msra.mxu1 %v4632_v31  ;;  %v664_v31 = vld [vmem:[#allocation2 + $0x58] sm:$0xff] }
  0xec   : > { %4135 = vmatprep.subr.bf16.mxu0 %v4633_v32  ;;  %4167 = vmatprep.subr.bf16.mxu1 %v4634_v35  ;;  %p4950_p9 = pneg %p4949_p6 }
  0xee   : > { %735 = vbcast.lane.b32.xlu1 %v733_v24, 256  ;;  %728 = vbcast.lane.b32.xlu0 %v726_v25, 256 }
  0xef   : > { %4136 = vmatpush3.bf16.msra.mxu0 %v4633_v32  ;;  %4168 = vmatpush3.bf16.msra.mxu1 %v4634_v35 }
  0xf0   : > { %4137 = vmatprep.subr.bf16.mxu0 %v4635_v36  ;;  %4169 = vmatprep.subr.bf16.mxu1 %v4636_v39 }
  0xf2   : > { %749 = vbcast.lane.b32.xlu1 %v747_v29, 256  ;;  %742 = vbcast.lane.b32.xlu0 %v740_v30, 256 }
  0xf3   : > { %4138 = vmatpush3.bf16.msra.mxu0 %v4635_v36  ;;  %4170 = vmatpush3.bf16.msra.mxu1 %v4636_v39 }
  0xf4   : > { %4139 = vmatprep.subr.bf16.mxu0 %v4637_v40  ;;  %4171 = vmatprep.subr.bf16.mxu1 %v4638_v43 }
  0xf6   : > { %763 = vbcast.lane.b32.xlu1 %v761_v33, 256  ;;  %756 = vbcast.lane.b32.xlu0 %v754_v34, 256  ;;  %v663_v33 = vld [vmem:[#allocation2 + $0x50] sm:$0xff] }
  0xf7   : > { %4140 = vmatpush3.bf16.msra.mxu0 %v4637_v40  ;;  %4172 = vmatpush3.bf16.msra.mxu1 %v4638_v43  ;;  %v665_v43 = vld [vmem:[#allocation2 + $0x60] sm:$0xff] }
  0xf8   : > { %4189 = vmatprep.subr.bf16.mxu0 %v4639_v44 }
  0xfa   : > { %777 = vbcast.lane.b32.xlu1 %v775_v37, 256  ;;  %770 = vbcast.lane.b32.xlu0 %v768_v38, 256  ;;  %v4643_v37 = vld [vmem:[#allocation8 + $0x20] sm:$0xff]  }
  0xfe   : > { %791 = vbcast.lane.b32.xlu1 %v789_v41, 256  ;;  %784 = vbcast.lane.b32.xlu0 %v782_v42, 256  ;;  %v666_v41 = vld [vmem:[#allocation2 + $0x68] sm:$0xff] }
 0x154   : > { %v701_v46 = vpop.permute.xlu1 %700  ;;  %v687_v47 = vpop.permute.xlu0 %686 }
 0x155   : > { %v802_v49 = vmul.f32 %v5408_v45, %v701_v46  ;;  %v800_v50 = vmul.f32 %v5408_v45, %v687_v47 }
 0x157   : > { %v5414_v58 = vadd.f32 %v802_v49, %v655_v48  ;;  %v5416_v59 = vadd.f32 %v800_v50, %v653_v51  ;;  %v4644_v48 = vld [vmem:[#allocation8 + $0x28] sm:$0xff]  }
 0x158   : > { %v708_v52 = vpop.permute.xlu1 %707  ;;  %v694_v54 = vpop.permute.xlu0 %693 }
 0x159   : > { %v803_v56 = vmul.f32 %v5408_v45, %v708_v52  ;;  %v801_v57 = vmul.f32 %v5408_v45, %v694_v54  ;;  %v668_v52 = vld [vmem:[#allocation2 + $0x78] sm:$0xff]  ;;  %v667_v54 = vld [vmem:[#allocation2 + $0x70] sm:$0xff] }
 0x15b   : > { %v5418_v60 = vadd.f32 %v803_v56, %v656_v53  ;;  %v5420_v61 = vadd.f32 %v801_v57, %v654_v55 }
 0x15c   : > { %v722_v62 = vpop.permute.xlu1 %721  ;;  %v715_v1 = vpop.permute.xlu0 %714 }
 0x15d   : > { %v805_v3 = vmul.f32 %v5408_v45, %v722_v62  ;;  %v804_v4 = vmul.f32 %v5408_v45, %v715_v1  ;;  %v5426_v5 = vpack.c.bf16 %v5420_v61, %v5416_v59  ;;  %v5430_v6 = vpack.c.bf16 %v5418_v60, %v5414_v58  ;;  %v4645_v62 = vld [vmem:[#allocation8 + $0x30] sm:$0xff]  }
 0x15f   : > { %v5432_v8 = vadd.f32 %v805_v3, %v658_v63  ;;  %v5434_v9 = vadd.f32 %v804_v4, %v657_v2  ;;  %4141 = vmatprep.mubr.bf16.mxu0 %v5426_v5  ;;  %4173 = vmatprep.mubr.bf16.mxu1 %v5426_v5  ;;  %v4646_v3 = vld [vmem:[#allocation8 + $0x38] sm:$0xff]  }
 0x160   : > { %4142 = vmatmul.mubr.bf16.vlgmr.msra.gmra.mrb[0].mxu0 %v5430_v6  ;;  %4174 = vmatmul.mubr.bf16.vlgmr.msra.gmra.mrb[0].mxu1 %v5430_v6  ;;  %v736_v10 = vpop.permute.xlu1 %735  ;;  %v729_v12 = vpop.permute.xlu0 %728 }
 0x161   : > { %v807_v14 = vmul.f32 %v5408_v45, %v736_v10  ;;  %v806_v15 = vmul.f32 %v5408_v45, %v729_v12  ;;  %4190 = vmatpush3.bf16.msra.mxu0 %v4639_v44  ;;  %v5444_v16 = vpack.c.bf16 %v5432_v8, %v5434_v9 }
 0x162   : > { %4191 = vmatprep.subr.bf16.mxu0 %v4640_v7 }
 0x163   : > { %v5446_v18 = vadd.f32 %v807_v14, %v660_v11  ;;  %v5448_v19 = vadd.f32 %v806_v15, %v659_v13  ;;  %4145 = vmatprep.mubr.bf16.mxu0 %v5444_v16  ;;  %4177 = vmatprep.mubr.bf16.mxu1 %v5444_v16 }
 0x164   : > { %v750_v20 = vpop.permute.xlu1 %749  ;;  %v743_v22 = vpop.permute.xlu0 %742 }
 0x165   : > { %v809_v24 = vmul.f32 %v5408_v45, %v750_v20  ;;  %v808_v25 = vmul.f32 %v5408_v45, %v743_v22  ;;  %4192 = vmatpush3.bf16.msra.mxu0 %v4640_v7  ;;  %v835_v26 = vpack.c.bf16 %v5446_v18, %v5448_v19 }
 0x166   : > { %4193 = vmatprep.subr.bf16.mxu0 %v4641_v17 }
 0x167   : > { %v5456_v28 = vadd.f32 %v809_v24, %v662_v21  ;;  %v5458_v29 = vadd.f32 %v808_v25, %v661_v23 }
 0x168   : > { %4146 = vmatmul.mubr.bf16.gmra.mrb[4].mxu0 %v835_v26  ;;  %4178 = vmatmul.mubr.bf16.gmra.mrb[4].mxu1 %v835_v26  ;;  %v764_v30 = vpop.permute.xlu1 %763  ;;  %v757_v32 = vpop.permute.xlu0 %756 }
 0x169   : > { %v811_v34 = vmul.f32 %v5408_v45, %v764_v30  ;;  %v810_v35 = vmul.f32 %v5408_v45, %v757_v32  ;;  %4194 = vmatpush3.bf16.msra.mxu0 %v4641_v17  ;;  %v836_v36 = vpack.c.bf16 %v5456_v28, %v5458_v29 }
 0x16a   : > { %4195 = vmatprep.subr.bf16.mxu0 %v4642_v27 }
 0x16b   : > { %v5464_v38 = vadd.f32 %v811_v34, %v664_v31  ;;  %v5466_v39 = vadd.f32 %v810_v35, %v663_v33  ;;  %4149 = vmatprep.mubr.bf16.mxu0 %v836_v36  ;;  %4181 = vmatprep.mubr.bf16.mxu1 %v836_v36 }
 0x16c   : > { %v778_v40 = vpop.permute.xlu1 %777  ;;  %v771_v42 = vpop.permute.xlu0 %770 }
 0x16d   : > { %v813_v44 = vmul.f32 %v5408_v45, %v778_v40  ;;  %v812_v46 = vmul.f32 %v5408_v45, %v771_v42  ;;  %4196 = vmatpush3.bf16.msra.mxu0 %v4642_v27  ;;  %v837_v47 = vpack.c.bf16 %v5464_v38, %v5466_v39 }
 0x16e   : > { %4197 = vmatprep.subr.bf16.mxu0 %v4643_v37 }
 0x16f   : > { %v5472_v49 = vadd.f32 %v813_v44, %v666_v41  ;;  %v5474_v50 = vadd.f32 %v812_v46, %v665_v43 }
 0x170   : > { %4150 = vmatmul.mubr.bf16.gmra.mrb[8].mxu0 %v837_v47  ;;  %v792_v51 = vpop.permute.xlu1 %791  ;;  %v785_v53 = vpop.permute.xlu0 %784  ;;  %4182 = vmatmul.mubr.bf16.gmra.mrb[8].mxu1 %v837_v47 }
 0x171   : > { %v815_v55 = vmul.f32 %v5408_v45, %v792_v51  ;;  %v814_v56 = vmul.f32 %v5408_v45, %v785_v53  ;;  %4198 = vmatpush3.bf16.msra.mxu0 %v4643_v37  ;;  %v838_v57 = vpack.c.bf16 %v5472_v49, %v5474_v50  ;;  %v5038_v45 = vmov 0.0  }
 0x172   : > { %4199 = vmatprep.subr.bf16.mxu0 %v4644_v48  ;;  %4221 = vmatprep.subr.bf16.mxu1 %v5038_v45 }
 0x173   : > { %v5480_v63 = vadd.f32 %v815_v55, %v668_v52  ;;  %v5482_v1 = vadd.f32 %v814_v56, %v667_v54  ;;  %4153 = vmatprep.mubr.bf16.mxu0 %v838_v57  ;;  %4185 = vmatprep.mubr.bf16.mxu1 %v838_v57 }
 0x175   : > { %4200 = vmatpush3.bf16.msra.mxu0 %v4644_v48  ;;  %v839_v2 = vpack.c.bf16 %v5480_v63, %v5482_v1 }
 0x176   : > { %4201 = vmatprep.subr.bf16.mxu0 %v4645_v62 }
 0x178   : > { %4154 = vmatmul.mubr.bf16.gmra.mrb[12].mxu0 %v839_v2  ;;  %4186 = vmatmul.mubr.bf16.gmra.mrb[12].mxu1 %v839_v2 }
 0x179   : > { %4202 = vmatpush3.bf16.msra.mxu0 %v4645_v62  ;;  %4205 = vmatprep.mubr.bf16.mxu0 %v5426_v5 }
 0x17a   : > { %4203 = vmatprep.subr.bf16.mxu0 %v4646_v3  ;;  %4223 = vmatprep.mubr.msk.bf16.mxu1 %vm5039_vm0, %v5038_v45 }
 0x17d   : > { %4204 = vmatpush3.bf16.msra.mxu0 %v4646_v3 }
 0x17e   : > { %4245 = vmatprep.subr.bf16.mxu0 %v5038_v45 }
 0x180   : > { %4206 = vmatmul.mubr.bf16.vlgmr.msra.gmra.mrb[16].mxu0 %v5430_v6 }
 0x181   : > { %4209 = vmatprep.mubr.bf16.mxu0 %v5444_v16 }
 0x188   : > { %4210 = vmatmul.mubr.bf16.gmra.mrb[20].mxu0 %v835_v26 }
 0x189   : > { %4213 = vmatprep.mubr.bf16.mxu0 %v836_v36 }
 0x190   : > { %4214 = vmatmul.mubr.bf16.gmra.mrb[24].mxu0 %v837_v47 }
 0x191   : > { %4217 = vmatprep.mubr.bf16.mxu0 %v838_v57 }
 0x198   : > { %4218 = vmatmul.mubr.bf16.gmra.mrb[28].mxu0 %v839_v2 }
 0x199   : > { %4247 = vmatprep.mubr.msk.bf16.mxu0 %vm5039_vm0, %v5038_v45 }
 0x233   : > { %v4143_v4 = vpop.f32.mrb[0].mxu0  ;;  %v4175_v5 = vpop.f32.mrb[0].mxu1 }
 0x234   : > { %v938_v6 = vpop.f32.mrb[1].mxu0  ;;  %v1099_v7 = vpop.f32.mrb[1].mxu1  ;;  %v1341_v37 = vpack.c.bf16 %v4175_v5, %v4175_v5  ;;  %v1325_v51 = vpack.c.bf16 %v4143_v4, %v4143_v4 }
 0x235   : > { %v1339_v10 = vpack.c.bf16 %v1099_v7, %v1099_v7  ;;  %v5495_v11 = vpop.f32.mrb[2].mxu0  ;;  %v4176_v12 = vpop.f32.mrb[2].mxu1  ;;  %v1323_v17 = vpack.c.bf16 %v938_v6, %v938_v6 }
 0x236   : > { %v941_v13 = vpop.f32.mrb[3].mxu0  ;;  %v1102_v14 = vpop.f32.mrb[3].mxu1  ;;  %v1342_v54 = vpack.c.bf16 %v4176_v12, %v4176_v12  ;;  %v1326_v5 = vpack.c.bf16 %v5495_v11, %v5495_v11 }
 0x237   : > { %4222 = vmatpush3.bf16.xpose.msra.mxu1 %v1339_v10  ;;  %v1340_v22 = vpack.c.bf16 %v1102_v14, %v1102_v14  ;;  %v1324_v34 = vpack.c.bf16 %v941_v13, %v941_v13 }
 0x238   : > { %4227 = vmatprep.subr.bf16.mxu1 %v5038_v45 }
 0x23b   : > { %v4179_v15 = vpop.f32.mrb[4].mxu1  ;;  %v4147_v16 = vpop.f32.mrb[4].mxu0 }
 0x23c   : > { %v1115_v20 = vpop.f32.mrb[5].mxu1  ;;  %v954_v21 = vpop.f32.mrb[5].mxu0  ;;  %v1345_v31 = vpack.c.bf16 %v4179_v15, %v4179_v15  ;;  %v1329_v44 = vpack.c.bf16 %v4147_v16, %v4147_v16 }
 0x23d   : > { %v1343_v23 = vpack.c.bf16 %v1115_v20, %v1115_v20  ;;  %v5498_v24 = vpop.f32.mrb[6].mxu0  ;;  %v5500_v25 = vpop.f32.mrb[6].mxu1  ;;  %v1327_v30 = vpack.c.bf16 %v954_v21, %v954_v21 }
 0x23e   : > { %4224 = vmatmul.mubr.bf16.vlgmr.msra.gmra.mrb[16].mxu1 %v1323_v17  ;;  %v5502_v26 = vpop.f32.mrb[7].mxu0  ;;  %v1118_v27 = vpop.f32.mrb[7].mxu1 }
 0x23f   : > { %4228 = vmatpush3.bf16.xpose.msra.mxu1 %v1340_v22  ;;  %4246 = vmatpush3.bf16.xpose.msra.mxu0 %v1343_v23  ;;  %v1344_v10 = vpack.c.bf16 %v1118_v27, %v1118_v27  ;;  %v1328_v21 = vpack.c.bf16 %v5502_v26, %v5502_v26  ;;  %v1346_v27 = vpack.c.bf16 %v5500_v25, %v5500_v25 }
 0x240   : > { %4229 = vmatprep.mubr.msk.bf16.mxu1 %vm5039_vm0, %v5038_v45  ;;  %4233 = vmatprep.subr.bf16.mxu1 %v5038_v45 }
 0x241   : > { %4257 = vmatprep.subr.bf16.mxu0 %v5038_v45 }
 0x243   : > { %v5508_v32 = vpop.f32.mrb[8].mxu0  ;;  %v4183_v33 = vpop.f32.mrb[8].mxu1 }
 0x244   : > { %v970_v35 = vpop.f32.mrb[9].mxu0  ;;  %v1131_v36 = vpop.f32.mrb[9].mxu1  ;;  %v1349_v3 = vpack.c.bf16 %v4183_v33, %v4183_v33  ;;  %v1333_v11 = vpack.c.bf16 %v5508_v32, %v5508_v32 }
 0x245   : > { %v5510_v40 = vpop.f32.mrb[10].mxu0  ;;  %v5512_v41 = vpop.f32.mrb[10].mxu1  ;;  %v1347_v46 = vpack.c.bf16 %v1131_v36, %v1131_v36  ;;  %v1331_v2 = vpack.c.bf16 %v970_v35, %v970_v35 }
 0x246   : > { %4230 = vmatmul.mubr.bf16.vlgmr.msra.gmra.mrb[20].mxu1 %v1324_v34  ;;  %4248 = vmatmul.mubr.bf16.vlgmr.msra.gmra.mrb[32].mxu0 %v1327_v30  ;;  %v5514_v42 = vpop.f32.mrb[11].mxu0  ;;  %v5516_v43 = vpop.f32.mrb[11].mxu1 }
 0x247   : > { %4234 = vmatpush3.bf16.xpose.msra.mxu1 %v1341_v37  ;;  %4258 = vmatpush3.bf16.xpose.msra.mxu0 %v1345_v31 }
 0x248   : > { %4235 = vmatprep.mubr.msk.bf16.mxu1 %vm5039_vm0, %v5038_v45  ;;  %4259 = vmatprep.mubr.msk.bf16.mxu0 %vm5039_vm0, %v5038_v45 }
 0x249   : > { %4239 = vmatprep.subr.bf16.mxu1 %v5038_v45  ;;  %4269 = vmatprep.subr.bf16.mxu0 %v5038_v45 }
 0x24b   : > { %v5524_v47 = vpop.f32.mrb[12].mxu0  ;;  %v5526_v48 = vpop.f32.mrb[12].mxu1 }
 0x24c   : > { %v5528_v52 = vpop.f32.mrb[13].mxu0  ;;  %v1147_v53 = vpop.f32.mrb[13].mxu1 }
 0x24d   : > { %v5530_v55 = vpop.f32.mrb[14].mxu0  ;;  %v5532_v56 = vpop.f32.mrb[14].mxu1  ;;  %v1351_v20 = vpack.c.bf16 %v1147_v53, %v1147_v53  ;;  %v1335_v37 = vpack.c.bf16 %v5528_v52, %v5528_v52 }
 0x24e   : > { %4236 = vmatmul.mubr.bf16.vlgmr.msra.gmra.mrb[24].mxu1 %v1325_v51  ;;  %4260 = vmatmul.mubr.bf16.vlgmr.msra.gmra.mrb[36].mxu0 %v1329_v44  ;;  %v5534_v57 = vpop.f32.mrb[15].mxu0  ;;  %v5536_v62 = vpop.f32.mrb[15].mxu1  ;;  %v1353_v44 = vpack.c.bf16 %v5526_v48, %v5526_v48  ;;  %v1330_v51 = vpack.c.bf16 %v5498_v24, %v5498_v24 }
 0x24f   : > { %4240 = vmatpush3.bf16.xpose.msra.mxu1 %v1342_v54  ;;  %4270 = vmatpush3.bf16.xpose.msra.mxu0 %v1347_v46 }
 0x250   : > { %4241 = vmatprep.mubr.msk.bf16.mxu1 %vm5039_vm0, %v5038_v45  ;;  %4271 = vmatprep.mubr.msk.bf16.mxu0 %vm5039_vm0, %v5038_v45 }
 0x251   : > { %4251 = vmatprep.subr.bf16.mxu1 %v5038_v45  ;;  %4281 = vmatprep.subr.bf16.mxu0 %v5038_v45 }
 0x253   : > { %v4207_v4 = vpop.f32.mrb[16].mxu0 }
 0x254   : > { %v1357_v6 = vpack.c.bf16 %v4207_v4, %v4207_v4  ;;  %v5546_v7 = vpop.f32.mrb[17].mxu0 }
 0x255   : > { %v4208_v12 = vpop.f32.mrb[18].mxu0 }
 0x256   : > { %v5549_v13 = vsel %vm2223_vm1, %v1357_v6, 0  ;;  %v1358_v14 = vpack.c.bf16 %v4208_v12, %v4208_v12  ;;  %v5551_v15 = vpop.f32.mrb[19].mxu0  ;;  %4242 = vmatmul.mubr.bf16.vlgmr.msra.gmra.mrb[28].mxu1 %v1326_v5  ;;  %4272 = vmatmul.mubr.bf16.vlgmr.msra.gmra.mrb[40].mxu0 %v1331_v2  ;;  %v1348_v2 = vpack.c.bf16 %v5516_v43, %v5516_v43  ;;  %v1337_v12 = vpack.c.bf16 %v5524_v47, %v5524_v47 }
 0x257   : > { %4252 = vmatpush3.bf16.xpose.msra.mxu1 %v1344_v10  ;;  %4282 = vmatpush3.bf16.xpose.msra.mxu0 %v1349_v3 }
 0x258   : > { %v5554_v16 = vsel %vm2223_vm1, %v1358_v14, 0  ;;  %4253 = vmatprep.mubr.msk.bf16.mxu1 %vm5039_vm0, %v5038_v45  ;;  %4283 = vmatprep.mubr.msk.bf16.mxu0 %vm5039_vm0, %v5038_v45  ;;  %v1355_v14 = vpack.c.bf16 %v5546_v7, %v5546_v7 }
 0x259   : > { %4263 = vmatprep.subr.bf16.mxu1 %v5038_v45  ;;  %4293 = vmatprep.subr.bf16.mxu0 %v5038_v45 }
 0x25b   : > { %v4211_v17 = vpop.f32.mrb[20].mxu0 }
 0x25c   : > { %v1361_v22 = vpack.c.bf16 %v4211_v17, %v4211_v17  ;;  %v1276_v23 = vpop.f32.mrb[21].mxu0  ;;  %v1332_v17 = vpack.c.bf16 %v5514_v42, %v5514_v42 }
 0x25d   : > { %v1359_v30 = vpack.c.bf16 %v1276_v23, %v1276_v23  ;;  %v4212_v31 = vpop.f32.mrb[22].mxu0 }
 0x25e   : > { %v5569_v33 = vsel %vm2223_vm1, %v1361_v22, 0  ;;  %v1362_v34 = vpack.c.bf16 %v4212_v31, %v4212_v31  ;;  %v1279_v35 = vpop.f32.mrb[23].mxu0  ;;  %4254 = vmatmul.mubr.bf16.vlgmr.msra.gmra.mrb[32].mxu1 %v1328_v21  ;;  %4284 = vmatmul.mubr.bf16.vlgmr.msra.gmra.mrb[44].mxu0 %v1333_v11  ;;  %v1350_v22 = vpack.c.bf16 %v5512_v41, %v5512_v41 }
 0x25f   : > { %v5572_v32 = vsel %vm2223_vm1, %v1359_v30, 0  ;;  %v1360_v36 = vpack.c.bf16 %v1279_v35, %v1279_v35  ;;  %4264 = vmatpush3.bf16.xpose.msra.mxu1 %v1346_v27  ;;  %4294 = vmatpush3.bf16.xpose.msra.mxu0 %v1351_v20  ;;  %v2225_v30 = vsel %vm2223_vm1, %v1355_v14, 0 }
 0x260   : > { %v5575_v26 = vsel %vm2223_vm1, %v1362_v34, 0  ;;  %4265 = vmatprep.mubr.msk.bf16.mxu1 %vm5039_vm0, %v5038_v45  ;;  %4295 = vmatprep.mubr.msk.bf16.mxu0 %vm5039_vm0, %v5038_v45 }
 0x261   : > { %v5582_v25 = vsel %vm2223_vm1, %v1360_v36, 0  ;;  %4275 = vmatprep.subr.bf16.mxu1 %v5038_v45  ;;  %4305 = vmatprep.subr.bf16.mxu0 %v5038_v45  ;;  %v1334_v36 = vpack.c.bf16 %v5510_v40, %v5510_v40  ;;  %v1356_v40 = vpack.c.bf16 %v5551_v15, %v5551_v15 }
 0x263   : > { %v4215_v46 = vpop.f32.mrb[24].mxu0 }
 0x264   : > { %v1365_v53 = vpack.c.bf16 %v4215_v46, %v4215_v46  ;;  %v1292_v54 = vpop.f32.mrb[25].mxu0  ;;  %v1354_v46 = vpack.c.bf16 %v5532_v56, %v5532_v56 }
 0x265   : > { %v1363_v3 = vpack.c.bf16 %v1292_v54, %v1292_v54  ;;  %v4216_v4 = vpop.f32.mrb[26].mxu0 }
 0x266   : > { %4266 = vmatmul.mubr.bf16.vlgmr.msra.gmra.mrb[36].mxu1 %v1330_v51  ;;  %4296 = vmatmul.mubr.bf16.vlgmr.msra.gmra.mrb[48].mxu0 %v1335_v37  ;;  %v5595_v5 = vsel %vm2223_vm1, %v1365_v53, 0  ;;  %v1366_v52 = vpack.c.bf16 %v4216_v4, %v4216_v4  ;;  %v1295_v6 = vpop.f32.mrb[27].mxu0  ;;  %v1352_v37 = vpack.c.bf16 %v5536_v62, %v5536_v62  ;;  %v1338_v62 = vpack.c.bf16 %v5530_v55, %v5530_v55 }
 0x267   : > { %4276 = vmatpush3.bf16.xpose.msra.mxu1 %v1348_v2  ;;  %4306 = vmatpush3.bf16.xpose.msra.mxu0 %v1353_v44  ;;  %v5598_v48 = vsel %vm2223_vm1, %v1363_v3, 0  ;;  %v1364_v24 = vpack.c.bf16 %v1295_v6, %v1295_v6  ;;  %v1336_v44 = vpack.c.bf16 %v5534_v57, %v5534_v57  ;;  %v2271_v51 = vsel %vm2223_vm1, %v1356_v40, 0 }
 0x268   : > { %4277 = vmatprep.mubr.msk.bf16.mxu1 %vm5039_vm0, %v5038_v45  ;;  %4307 = vmatprep.mubr.msk.bf16.mxu0 %vm5039_vm0, %v5038_v45  ;;  %v5605_v43 = vsel %vm2223_vm1, %v1366_v52, 0 }
 0x269   : > { %4287 = vmatprep.subr.bf16.mxu1 %v5038_v45  ;;  %4317 = vmatprep.subr.bf16.mxu0 %v5038_v45  ;;  %v5610_v10 = vsel %vm2223_vm1, %v1364_v24, 0 }
 0x26b   : > { %v4219_v11 = vpop.f32.mrb[28].mxu0 }
 0x26c   : > { %v1369_v20 = vpack.c.bf16 %v4219_v11, %v4219_v11  ;;  %v1308_v21 = vpop.f32.mrb[29].mxu0 }
 0x26d   : > { %v1367_v23 = vpack.c.bf16 %v1308_v21, %v1308_v21  ;;  %v4220_v27 = vpop.f32.mrb[30].mxu0 }
 0x26e   : > { %4278 = vmatmul.mubr.bf16.vlgmr.msra.gmra.mrb[40].mxu1 %v1332_v17  ;;  %4308 = vmatmul.mubr.bf16.vlgmr.msra.gmra.mrb[52].mxu0 %v1337_v12  ;;  %v5622_v47 = vsel %vm2223_vm1, %v1369_v20, 0  ;;  %v1370_v31 = vpack.c.bf16 %v4220_v27, %v4220_v27  ;;  %v1311_v7 = vpop.f32.mrb[31].mxu0 }
 0x26f   : > { %4288 = vmatpush3.bf16.xpose.msra.mxu1 %v1350_v22  ;;  %4318 = vmatpush3.bf16.msra.mxu0 %v2225_v30  ;;  %v5625_v42 = vsel %vm2223_vm1, %v1367_v23, 0  ;;  %v1368_v34 = vpack.c.bf16 %v1311_v7, %v1311_v7 }
 0x270   : > { %4289 = vmatprep.mubr.msk.bf16.mxu1 %vm5039_vm0, %v5038_v45  ;;  %4299 = vmatprep.subr.bf16.mxu1 %v5038_v45  ;;  %v5631_v41 = vsel %vm2223_vm1, %v1370_v31, 0 }
 0x271   : > { %v5634_v35 = vsel %vm2223_vm1, %v1368_v34, 0  ;;  %4319 = vmatprep.mubr.msk.bf16.mxu0 %vm5039_vm0, %v5038_v45  ;;  %4329 = vmatprep.subr.bf16.mxu0 %v5038_v45 }
 0x276   : > { %4290 = vmatmul.mubr.bf16.vlgmr.msra.gmra.mrb[44].mxu1 %v1334_v36 }
 0x277   : > { %4300 = vmatpush3.bf16.xpose.msra.mxu1 %v1352_v37  ;;  %4301 = vmatprep.mubr.msk.bf16.mxu1 %vm5039_vm0, %v5038_v45 }
 0x278   : > { %4311 = vmatprep.subr.bf16.mxu1 %v5038_v45 }
 0x27e   : > { %4302 = vmatmul.mubr.bf16.vlgmr.msra.gmra.mrb[48].mxu1 %v1336_v44 }
 0x27f   : > { %4312 = vmatpush3.bf16.xpose.msra.mxu1 %v1354_v46  ;;  %4313 = vmatprep.mubr.msk.bf16.mxu1 %vm5039_vm0, %v5038_v45 }
 0x280   : > { %4323 = vmatprep.subr.bf16.mxu1 %v5038_v45 }
 0x286   : > { %4314 = vmatmul.mubr.bf16.vlgmr.msra.gmra.mrb[52].mxu1 %v1338_v62 }
 0x287   : > { %4324 = vmatpush3.bf16.msra.mxu1 %v2271_v51  ;;  %4325 = vmatprep.mubr.msk.bf16.mxu1 %vm5039_vm0, %v5038_v45 }
 0x288   : > { %4335 = vmatprep.subr.bf16.mxu1 %v5038_v45 }
 0x311   : > { %v1405_v56 = vpop.f32.mrb[16].mxu1 }
 0x312   : > { %v5661_v57 = vmul.f32 0.17677669, %v1405_v56  ;;  %v4225_v53 = vpop.f32.mrb[17].mxu1 }
 0x313   : > { %v1408_v54 = vpop.f32.mrb[18].mxu1 }
 0x314   : > { %v4226_v2 = vpop.f32.mrb[19].mxu1  ;;  %v2028_v15 = vsel %vm2027_vm2, %v5661_v57, -inf }
 0x315   : > { %2029 = vmax.xlane.f32.xlu0 %v2028_v15 }
 0x319   : > { %v1445_v55 = vpop.f32.mrb[20].mxu1  ;;  %v1565_v3 = vpop.f32.mrb[32].mxu0 }
 0x31a   : > { %v5665_v4 = vmul.f32 0.17677669, %v1445_v55  ;;  %v4231_v52 = vpop.f32.mrb[21].mxu1  ;;  %v5667_v6 = vmul.f32 0.17677669, %v1565_v3  ;;  %v4249_v24 = vpop.f32.mrb[33].mxu0 }
 0x31b   : > { %v1448_v12 = vpop.f32.mrb[22].mxu1  ;;  %v1568_v14 = vpop.f32.mrb[34].mxu0 }
 0x31c   : > { %v4232_v11 = vpop.f32.mrb[23].mxu1  ;;  %v2031_v17 = vsel %vm2027_vm2, %v5665_v4, -inf  ;;  %v4250_v20 = vpop.f32.mrb[35].mxu0  ;;  %v2040_v21 = vsel %vm2027_vm2, %v5667_v6, -inf }
 0x31d   : > { %2032 = vmax.xlane.f32.xlu1 %v2031_v17 }
 0x321   : > { %v1485_v22 = vpop.f32.mrb[24].mxu1  ;;  %2041 = vmax.xlane.f32.xlu1 %v2040_v21  ;;  %v1645_v23 = vpop.f32.mrb[36].mxu0 }
 0x322   : > { %v5673_v27 = vmul.f32 0.17677669, %v1485_v22  ;;  %v5675_v30 = vmul.f32 0.17677669, %v1645_v23  ;;  %v4237_v31 = vpop.f32.mrb[25].mxu1  ;;  %v4261_v7 = vpop.f32.mrb[37].mxu0 }
 0x323   : > { %v1488_v34 = vpop.f32.mrb[26].mxu1  ;;  %v1648_v36 = vpop.f32.mrb[38].mxu0 }
 0x324   : > { %v4238_v37 = vpop.f32.mrb[27].mxu1  ;;  %v2034_v44 = vsel %vm2027_vm2, %v5673_v27, -inf  ;;  %v2046_v46 = vsel %vm2027_vm2, %v5675_v30, -inf  ;;  %v4262_v40 = vpop.f32.mrb[39].mxu0 }
 0x325   : > { %2035 = vmax.xlane.f32.xlu0 %v2034_v44  ;;  %2047 = vmax.xlane.f32.xlu1 %v2046_v46 }
 0x329   : > { %v1525_v62 = vpop.f32.mrb[28].mxu1  ;;  %v1725_v51 = vpop.f32.mrb[40].mxu0 }
 0x32a   : > { %v5681_v56 = vmul.f32 0.17677669, %v1525_v62  ;;  %v5683_v53 = vmul.f32 0.17677669, %v1725_v51  ;;  %v4243_v54 = vpop.f32.mrb[29].mxu1  ;;  %v4273_v2 = vpop.f32.mrb[41].mxu0 }
 0x32b   : > { %v1528_v15 = vpop.f32.mrb[30].mxu1  ;;  %v1728_v55 = vpop.f32.mrb[42].mxu0 }
 0x32c   : > { %v4244_v3 = vpop.f32.mrb[31].mxu1  ;;  %v2037_v52 = vsel %vm2027_vm2, %v5681_v56, -inf  ;;  %v2052_v24 = vsel %vm2027_vm2, %v5683_v53, -inf  ;;  %v4274_v12 = vpop.f32.mrb[43].mxu0 }
 0x32d   : > { %2038 = vmax.xlane.f32.xlu0 %v2037_v52  ;;  %2053 = vmax.xlane.f32.xlu1 %v2052_v24 }
 0x331   : > { %v1605_v14 = vpop.f32.mrb[32].mxu1  ;;  %v1805_v11 = vpop.f32.mrb[44].mxu0 }
 0x332   : > { %v5689_v17 = vmul.f32 0.17677669, %v1605_v14  ;;  %v5691_v20 = vmul.f32 0.17677669, %v1805_v11  ;;  %v4255_v21 = vpop.f32.mrb[33].mxu1  ;;  %v4285_v22 = vpop.f32.mrb[45].mxu0 }
 0x333   : > { %v1608_v23 = vpop.f32.mrb[34].mxu1  ;;  %v1808_v31 = vpop.f32.mrb[46].mxu0 }
 0x334   : > { %v4256_v7 = vpop.f32.mrb[35].mxu1  ;;  %v2043_v34 = vsel %vm2027_vm2, %v5689_v17, -inf  ;;  %v2058_v36 = vsel %vm2027_vm2, %v5691_v20, -inf  ;;  %v4286_v37 = vpop.f32.mrb[47].mxu0 }
 0x335   : > { %2044 = vmax.xlane.f32.xlu0 %v2043_v34  ;;  %2059 = vmax.xlane.f32.xlu1 %v2058_v36 }
 0x339   : > { %v1685_v44 = vpop.f32.mrb[36].mxu1  ;;  %v1885_v46 = vpop.f32.mrb[48].mxu0 }
 0x33a   : > { %v5697_v40 = vmul.f32 0.17677669, %v1685_v44  ;;  %v5699_v62 = vmul.f32 0.17677669, %v1885_v46  ;;  %v4267_v51 = vpop.f32.mrb[37].mxu1  ;;  %v4297_v54 = vpop.f32.mrb[49].mxu0 }
 0x33b   : > { %v1688_v2 = vpop.f32.mrb[38].mxu1  ;;  %v1888_v15 = vpop.f32.mrb[50].mxu0 }
 0x33c   : > { %v4268_v55 = vpop.f32.mrb[39].mxu1  ;;  %v2049_v3 = vsel %vm2027_vm2, %v5697_v40, -inf  ;;  %v2064_v52 = vsel %vm2027_vm2, %v5699_v62, -inf  ;;  %v4298_v24 = vpop.f32.mrb[51].mxu0 }
 0x33d   : > { %2050 = vmax.xlane.f32.xlu0 %v2049_v3  ;;  %2065 = vmax.xlane.f32.xlu1 %v2064_v52 }
 0x341   : > { %v1765_v12 = vpop.f32.mrb[40].mxu1  ;;  %v1965_v14 = vpop.f32.mrb[52].mxu0 }
 0x342   : > { %v5705_v11 = vmul.f32 0.17677669, %v1765_v12  ;;  %v5707_v21 = vmul.f32 0.17677669, %v1965_v14  ;;  %v4279_v22 = vpop.f32.mrb[41].mxu1  ;;  %v4309_v23 = vpop.f32.mrb[53].mxu0 }
 0x343   : > { %v1768_v31 = vpop.f32.mrb[42].mxu1  ;;  %v1968_v7 = vpop.f32.mrb[54].mxu0 }
 0x344   : > { %v2055_v34 = vsel %vm2027_vm2, %v5705_v11, -inf  ;;  %v2070_v36 = vsel %vm2027_vm2, %v5707_v21, -inf  ;;  %v4280_v37 = vpop.f32.mrb[43].mxu1  ;;  %v4310_v44 = vpop.f32.mrb[55].mxu0 }
 0x345   : > { %2056 = vmax.xlane.f32.xlu0 %v2055_v34  ;;  %2071 = vmax.xlane.f32.xlu1 %v2070_v36 }
 0x349   : > { %v1845_v46 = vpop.f32.mrb[44].mxu1 }
 0x34a   : > { %v5713_v51 = vmul.f32 0.17677669, %v1845_v46  ;;  %v4291_v54 = vpop.f32.mrb[45].mxu1 }
 0x34b   : > { %v1848_v2 = vpop.f32.mrb[46].mxu1 }
 0x34c   : > { %v2061_v15 = vsel %vm2027_vm2, %v5713_v51, -inf  ;;  %v4292_v55 = vpop.f32.mrb[47].mxu1 }
 0x34d   : > { %2062 = vmax.xlane.f32.xlu0 %v2061_v15 }
 0x351   : > { %v1925_v3 = vpop.f32.mrb[48].mxu1 }
 0x352   : > { %v5717_v52 = vmul.f32 0.17677669, %v1925_v3  ;;  %v4303_v24 = vpop.f32.mrb[49].mxu1 }
 0x353   : > { %v1928_v12 = vpop.f32.mrb[50].mxu1 }
 0x354   : > { %v2067_v14 = vsel %vm2027_vm2, %v5717_v52, -inf  ;;  %v4304_v22 = vpop.f32.mrb[51].mxu1 }
 0x355   : > { %2068 = vmax.xlane.f32.xlu0 %v2067_v14 }
 0x359   : > { %v2005_v23 = vpop.f32.mrb[52].mxu1 }
 0x35a   : > { %v5721_v31 = vmul.f32 0.17677669, %v2005_v23  ;;  %v4315_v7 = vpop.f32.mrb[53].mxu1 }
 0x35b   : > { %v2008_v34 = vpop.f32.mrb[54].mxu1 }
 0x35c   : > { %v2073_v36 = vsel %vm2027_vm2, %v5721_v31, -inf  ;;  %v4316_v37 = vpop.f32.mrb[55].mxu1 }
 0x35d   : > { %2074 = vmax.xlane.f32.xlu0 %v2073_v36 }
 0x3a2   : > { %v2030_v44 = vpop.xlane.xlu0 %2029 }
 0x3a3   : > { %v2076_v46 = vsub.f32 %v5661_v57, %v2030_v44 }
 0x3a5   : > { %v2092_v54 = vmul.f32 1.442695, %v2076_v46 }
 0x3a7   : > { %4679 = vpow2.f32 %v2092_v54 }
 0x3aa   : > { %v2033_v2 = vpop.xlane.xlu1 %2032 }
 0x3ab   : > { %v2077_v15 = vsub.f32 %v5665_v4, %v2033_v2 }
 0x3ad   : > { %v2094_v55 = vmul.f32 1.442695, %v2077_v15 }
 0x3ae   : > { %v2042_v3 = vpop.xlane.xlu1 %2041 }
 0x3af   : > { %4681 = vpow2.f32 %v2094_v55  ;;  %v2080_v12 = vsub.f32 %v5667_v6, %v2042_v3 }
 0x3b1   : > { %v5727_v24 = vpop.eup %4679  ;;  %v2100_v57 = vmul.f32 1.442695, %v2080_v12 }
 0x3b2   : > { %v2036_v14 = vpop.xlane.xlu0 %2035  ;;  %v2048_v22 = vpop.xlane.xlu1 %2047  ;;  %v2124_v23 = vsel %vm2027_vm2, %v5727_v24, 0.0 }
 0x3b3   : > { %v2078_v7 = vsub.f32 %v5673_v27, %v2036_v14  ;;  %2125 = vadd.xlane.f32.xlu1 %v2124_v23  ;;  %v2082_v36 = vsub.f32 %v5675_v30, %v2048_v22 }
 0x3b5   : > { %v2096_v34 = vmul.f32 1.442695, %v2078_v7  ;;  %v2104_v37 = vmul.f32 1.442695, %v2082_v36 }
 0x3b7   : > { %4683 = vpow2.f32 %v2096_v34 }
 0x3b8   : > { %4685 = vpow2.f32 %v2100_v57 }
 0x3b9   : > { %v5734_v4 = vpop.eup %4681  ;;  %4687 = vpow2.f32 %v2104_v37 }
 0x3ba   : > { %v2039_v44 = vpop.xlane.xlu0 %2038  ;;  %v2054_v46 = vpop.xlane.xlu1 %2053  ;;  %v2127_v6 = vsel %vm2027_vm2, %v5734_v4, 0.0 }
 0x3bb   : > { %v2079_v54 = vsub.f32 %v5681_v56, %v2039_v44  ;;  %v2084_v2 = vsub.f32 %v5683_v53, %v2054_v46  ;;  %2128 = vadd.xlane.f32.xlu0 %v2127_v6 }
 0x3bd   : > { %v2098_v27 = vmul.f32 1.442695, %v2079_v54  ;;  %v2108_v15 = vmul.f32 1.442695, %v2084_v2 }
 0x3bf   : > { %4689 = vpow2.f32 %v2098_v27 }
 0x3c0   : > { %4691 = vpow2.f32 %v2108_v15 }
 0x3c1   : > { %v5740_v30 = vpop.eup %4683 }
 0x3c2   : > { %v2045_v55 = vpop.xlane.xlu0 %2044  ;;  %v2060_v3 = vpop.xlane.xlu1 %2059  ;;  %v2130_v12 = vsel %vm2027_vm2, %v5740_v30, 0.0 }
 0x3c3   : > { %v5744_v14 = vpop.eup %4685  ;;  %v2081_v22 = vsub.f32 %v5689_v17, %v2045_v55  ;;  %v2086_v56 = vsub.f32 %v5691_v20, %v2060_v3  ;;  %2131 = vadd.xlane.f32.xlu1 %v2130_v12 }
 0x3c4   : > { %v2136_v7 = vsel %vm2027_vm2, %v5744_v14, 0.0  ;;  %v5750_v57 = vpop.eup %4687 }
 0x3c5   : > { %v2102_v53 = vmul.f32 1.442695, %v2081_v22  ;;  %v2112_v23 = vmul.f32 1.442695, %v2086_v56  ;;  %v2142_v20 = vsel %vm2027_vm2, %v5750_v57, 0.0 }
 0x3c7   : > { %4693 = vpow2.f32 %v2102_v53  ;;  %2137 = vadd.xlane.f32.xlu1 %v2136_v7 }
 0x3c8   : > { %4695 = vpow2.f32 %v2112_v23 }
 0x3c9   : > { %v5752_v34 = vpop.eup %4689 }
 0x3ca   : > { %v2051_v36 = vpop.xlane.xlu0 %2050  ;;  %v2066_v37 = vpop.xlane.xlu1 %2065  ;;  %v2133_v17 = vsel %vm2027_vm2, %v5752_v34, 0.0 }
 0x3cb   : > { %v5758_v44 = vpop.eup %4691  ;;  %v2083_v46 = vsub.f32 %v5697_v40, %v2051_v36  ;;  %v2088_v6 = vsub.f32 %v5699_v62, %v2066_v37  ;;  %2134 = vadd.xlane.f32.xlu0 %v2133_v17  ;;  %2143 = vadd.xlane.f32.xlu1 %v2142_v20 }
 0x3cc   : > { %v2148_v27 = vsel %vm2027_vm2, %v5758_v44, 0.0 }
 0x3cd   : > { %v2106_v54 = vmul.f32 1.442695, %v2083_v46  ;;  %v2116_v2 = vmul.f32 1.442695, %v2088_v6 }
 0x3cf   : > { %4697 = vpow2.f32 %v2106_v54  ;;  %2149 = vadd.xlane.f32.xlu1 %v2148_v27 }
 0x3d0   : > { %4699 = vpow2.f32 %v2116_v2 }
 0x3d1   : > { %v5764_v15 = vpop.eup %4693 }
 0x3d2   : > { %v5766_v55 = vpop.eup %4695  ;;  %v2057_v3 = vpop.xlane.xlu0 %2056  ;;  %v2139_v40 = vsel %vm2027_vm2, %v5764_v15, 0.0 }
 0x3d3   : > { %v2072_v12 = vpop.xlane.xlu1 %2071  ;;  %v2085_v62 = vsub.f32 %v5705_v11, %v2057_v3  ;;  %2140 = vadd.xlane.f32.xlu0 %v2139_v40  ;;  %v2154_v56 = vsel %vm2027_vm2, %v5766_v55, 0.0 }
 0x3d4   : > { %v2090_v22 = vsub.f32 %v5707_v21, %v2072_v12  ;;  %2155 = vadd.xlane.f32.xlu1 %v2154_v56 }
 0x3d5   : > { %v2110_v53 = vmul.f32 1.442695, %v2085_v62 }
 0x3d6   : > { %v2120_v23 = vmul.f32 1.442695, %v2090_v22 }
 0x3d7   : > { %4701 = vpow2.f32 %v2110_v53 }
 0x3d8   : > { %4703 = vpow2.f32 %v2120_v23 }
 0x3d9   : > { %v5774_v7 = vpop.eup %4697 }
 0x3da   : > { %v5776_v36 = vpop.eup %4699  ;;  %v2063_v37 = vpop.xlane.xlu0 %2062  ;;  %v2145_v17 = vsel %vm2027_vm2, %v5774_v7, 0.0 }
 0x3db   : > { %v2087_v11 = vsub.f32 %v5713_v51, %v2063_v37  ;;  %2146 = vadd.xlane.f32.xlu0 %v2145_v17  ;;  %v2160_v21 = vsel %vm2027_vm2, %v5776_v36, 0.0 }
 0x3dc   : > { %2161 = vadd.xlane.f32.xlu1 %v2160_v21 }
 0x3dd   : > { %v2114_v20 = vmul.f32 1.442695, %v2087_v11 }
 0x3df   : > { %4705 = vpow2.f32 %v2114_v20 }
 0x3e1   : > { %v5783_v46 = vpop.eup %4701 }
 0x3e2   : > { %v5785_v6 = vpop.eup %4703  ;;  %v2069_v54 = vpop.xlane.xlu0 %2068  ;;  %v2151_v2 = vsel %vm2027_vm2, %v5783_v46, 0.0 }
 0x3e3   : > { %v2089_v27 = vsub.f32 %v5717_v52, %v2069_v54  ;;  %2152 = vadd.xlane.f32.xlu0 %v2151_v2  ;;  %v2166_v51 = vsel %vm2027_vm2, %v5785_v6, 0.0 }
 0x3e4   : > { %2167 = vadd.xlane.f32.xlu1 %v2166_v51 }
 0x3e5   : > { %v2118_v3 = vmul.f32 1.442695, %v2089_v27 }
 0x3e7   : > { %4707 = vpow2.f32 %v2118_v3 }
 0x3e9   : > { %v5792_v12 = vpop.eup %4705 }
 0x3ea   : > { %v2075_v40 = vpop.xlane.xlu0 %2074  ;;  %v2157_v62 = vsel %vm2027_vm2, %v5792_v12, 0.0 }
 0x3eb   : > { %v2091_v22 = vsub.f32 %v5721_v31, %v2075_v40  ;;  %2158 = vadd.xlane.f32.xlu0 %v2157_v62 }
 0x3ed   : > { %v2122_v56 = vmul.f32 1.442695, %v2091_v22 }
 0x3ef   : > { %4709 = vpow2.f32 %v2122_v56 }
 0x3f1   : > { %v5797_v53 = vpop.eup %4707 }
 0x3f2   : > { %v2163_v52 = vsel %vm2027_vm2, %v5797_v53, 0.0 }
 0x3f3   : > { %2164 = vadd.xlane.f32.xlu0 %v2163_v52 }
 0x3f9   : > { %v5801_v23 = vpop.eup %4709 }
 0x3fa   : > { %v2169_v37 = vsel %vm2027_vm2, %v5801_v23, 0.0 }
 0x3fb   : > { %2170 = vadd.xlane.f32.xlu0 %v2169_v37 }
 0x440   : > { %v2126_v17 = vpop.xlane.xlu1 %2125 }
 0x441   : > { %4711 = vrcp.f32 %v2126_v17 }
 0x448   : > { %v2129_v11 = vpop.xlane.xlu0 %2128 }
 0x449   : > { %4713 = vrcp.f32 %v2129_v11 }
 0x44b   : > { %v4712_v31 = vpop.eup %4711 }
 0x44c   : > { %v2188_v21 = vmul.f32 %v4712_v31, %v5727_v24 }
 0x44e   : > { %v2204_v20 = vpack.c.bf16 %v2188_v21, %v2188_v21 }
 0x450   : > { %4320 = vmatmul.mubr.msk.bf16.vlgmr.msra.gmra.mrb[56].mxu0 %vm2027_vm2, %v2204_v20  ;;  %v2132_v54 = vpop.xlane.xlu1 %2131 }
 0x451   : > { %4330 = vmatpush3.bf16.msra.mxu0 %v5549_v13  ;;  %4715 = vrcp.f32 %v2132_v54  ;;  %4331 = vmatprep.mubr.msk.bf16.mxu0 %vm5039_vm0, %v5038_v45 }
 0x452   : > { %4341 = vmatprep.subr.bf16.mxu0 %v5038_v45 }
 0x453   : > { %v4714_v2 = vpop.eup %4713 }
 0x454   : > { %v2189_v27 = vmul.f32 %v4714_v2, %v5734_v4  ;;  %v2138_v51 = vpop.xlane.xlu1 %2137 }
 0x455   : > { %4717 = vrcp.f32 %v2138_v51 }
 0x456   : > { %v2205_v3 = vpack.c.bf16 %v2189_v27, %v2189_v27 }
 0x458   : > { %v2135_v40 = vpop.xlane.xlu0 %2134  ;;  %4326 = vmatmul.mubr.msk.bf16.vlgmr.msra.gmra.mrb[56].mxu1 %vm2027_vm2, %v2205_v3  ;;  %v2144_v13 = vpop.xlane.xlu1 %2143 }
 0x459   : > { %4719 = vrcp.f32 %v2135_v40  ;;  %4336 = vmatpush3.bf16.msra.mxu1 %v5554_v16  ;;  %4337 = vmatprep.mubr.msk.bf16.mxu1 %vm5039_vm0, %v5038_v45 }
 0x45a   : > { %4347 = vmatprep.subr.bf16.mxu1 %v5038_v45  ;;  %4721 = vrcp.f32 %v2144_v13 }
 0x45b   : > { %v4716_v24 = vpop.eup %4715 }
 0x45c   : > { %v2190_v62 = vmul.f32 %v4716_v24, %v5740_v30  ;;  %v2150_v52 = vpop.xlane.xlu1 %2149 }
 0x45e   : > { %v2206_v4 = vpack.c.bf16 %v2190_v62, %v2190_v62 }
 0x45f   : > { %v4718_v22 = vpop.eup %4717 }
 0x460   : > { %v2141_v56 = vpop.xlane.xlu0 %2140  ;;  %4332 = vmatmul.mubr.msk.bf16.vlgmr.msra.gmra.mrb[60].mxu0 %vm2027_vm2, %v2206_v4  ;;  %v2192_v16 = vmul.f32 %v4718_v22, %v5744_v14 }
 0x461   : > { %4723 = vrcp.f32 %v2141_v56  ;;  %4342 = vmatpush3.bf16.msra.mxu0 %v5572_v32  ;;  %4343 = vmatprep.mubr.msk.bf16.mxu0 %vm5039_vm0, %v5038_v45  ;;  %v2156_v14 = vpop.xlane.xlu1 %2155 }
 0x462   : > { %4353 = vmatprep.subr.bf16.mxu0 %v5038_v45  ;;  %4725 = vrcp.f32 %v2150_v52  ;;  %v2208_v11 = vpack.c.bf16 %v2192_v16, %v2192_v16  ;;  %v4647_v52 = vld [vmem:[#allocation10] sm:$0xff]  }
 0x463   : > { %v4720_v37 = vpop.eup %4719 }
 0x464   : > { %v2191_v30 = vmul.f32 %v4720_v37, %v5752_v34  ;;  %v4722_v31 = vpop.eup %4721 }
 0x465   : > { %v2194_v32 = vmul.f32 %v4722_v31, %v5750_v57  ;;  %v4650_v31 = vld [vmem:[#allocation10 + $0x18] sm:$0xff]  }
 0x466   : > { %v2207_v17 = vpack.c.bf16 %v2191_v30, %v2191_v30 }
 0x467   : > { %v2210_v54 = vpack.c.bf16 %v2194_v32, %v2194_v32  ;;  %v4654_v32 = vld [vmem:[#allocation10 + $0x38] sm:$0xff]  }
 0x468   : > { %v2147_v21 = vpop.xlane.xlu0 %2146  ;;  %4338 = vmatmul.mubr.msk.bf16.vlgmr.msra.gmra.mrb[60].mxu1 %vm2027_vm2, %v2207_v17  ;;  %4344 = vmatmul.mubr.msk.bf16.vlgmr.msra.gmra.mrb[64].mxu0 %vm2027_vm2, %v2208_v11  ;;  %v4648_v11 = vld [vmem:[#allocation10 + $0x8] sm:$0xff]  }
 0x469   : > { %4727 = vrcp.f32 %v2147_v21  ;;  %4348 = vmatpush3.bf16.msra.mxu1 %v5582_v25  ;;  %4354 = vmatpush3.bf16.msra.mxu0 %v5569_v33  ;;  %v2162_v27 = vpop.xlane.xlu1 %2161  ;;  %v4652_v21 = vld [vmem:[#allocation10 + $0x28] sm:$0xff]  }
 0x46a   : > { %4349 = vmatprep.mubr.msk.bf16.mxu1 %vm5039_vm0, %v5038_v45  ;;  %4355 = vmatprep.mubr.msk.bf16.mxu0 %vm5039_vm0, %v5038_v45  ;;  %4729 = vrcp.f32 %v2156_v14 }
 0x46b   : > { %v4724_v34 = vpop.eup %4723  ;;  %4359 = vmatprep.subr.bf16.mxu1 %v5038_v45  ;;  %4365 = vmatprep.subr.bf16.mxu0 %v5038_v45 }
 0x46c   : > { %v2193_v20 = vmul.f32 %v4724_v34, %v5764_v15  ;;  %v4726_v33 = vpop.eup %4725 }
 0x46d   : > { %v2196_v57 = vmul.f32 %v4726_v33, %v5758_v44 }
 0x46e   : > { %v2209_v25 = vpack.c.bf16 %v2193_v20, %v2193_v20 }
 0x46f   : > { %v2212_v3 = vpack.c.bf16 %v2196_v57, %v2196_v57 }
 0x470   : > { %v2153_v2 = vpop.xlane.xlu0 %2152  ;;  %4350 = vmatmul.mubr.msk.bf16.vlgmr.msra.gmra.mrb[64].mxu1 %vm2027_vm2, %v2209_v25  ;;  %4356 = vmatmul.mubr.msk.bf16.vlgmr.msra.gmra.mrb[68].mxu0 %vm2027_vm2, %v2210_v54 }
 0x471   : > { %4731 = vrcp.f32 %v2153_v2  ;;  %4360 = vmatpush3.bf16.msra.mxu1 %v5575_v26  ;;  %4366 = vmatpush3.bf16.msra.mxu0 %v5598_v48  ;;  %v2168_v13 = vpop.xlane.xlu1 %2167 }
 0x472   : > { %4361 = vmatprep.mubr.msk.bf16.mxu1 %vm5039_vm0, %v5038_v45  ;;  %4367 = vmatprep.mubr.msk.bf16.mxu0 %vm5039_vm0, %v5038_v45  ;;  %4733 = vrcp.f32 %v2162_v27 }
 0x473   : > { %v4728_v15 = vpop.eup %4727  ;;  %4371 = vmatprep.subr.bf16.mxu1 %v5038_v45  ;;  %4377 = vmatprep.subr.bf16.mxu0 %v5038_v45 }
 0x474   : > { %v2195_v51 = vmul.f32 %v4728_v15, %v5774_v7  ;;  %v4730_v48 = vpop.eup %4729 }
 0x475   : > { %v2198_v44 = vmul.f32 %v4730_v48, %v5766_v55 }
 0x476   : > { %v2211_v26 = vpack.c.bf16 %v2195_v51, %v2195_v51 }
 0x477   : > { %v2214_v62 = vpack.c.bf16 %v2198_v44, %v2198_v44 }
 0x478   : > { %v2159_v40 = vpop.xlane.xlu0 %2158  ;;  %4362 = vmatmul.mubr.msk.bf16.vlgmr.msra.gmra.mrb[68].mxu1 %vm2027_vm2, %v2211_v26  ;;  %4368 = vmatmul.mubr.msk.bf16.vlgmr.msra.gmra.mrb[72].mxu0 %vm2027_vm2, %v2212_v3 }
 0x479   : > { %4735 = vrcp.f32 %v2159_v40  ;;  %4372 = vmatpush3.bf16.msra.mxu1 %v5610_v10  ;;  %4378 = vmatpush3.bf16.msra.mxu0 %v5595_v5 }
 0x47a   : > { %4373 = vmatprep.mubr.msk.bf16.mxu1 %vm5039_vm0, %v5038_v45  ;;  %4379 = vmatprep.mubr.msk.bf16.mxu0 %vm5039_vm0, %v5038_v45  ;;  %4737 = vrcp.f32 %v2168_v13 }
 0x47b   : > { %v4732_v7 = vpop.eup %4731  ;;  %4383 = vmatprep.subr.bf16.mxu1 %v5038_v45  ;;  %4389 = vmatprep.subr.bf16.mxu0 %v5038_v45 }
 0x47c   : > { %v2197_v24 = vmul.f32 %v4732_v7, %v5783_v46  ;;  %v4734_v5 = vpop.eup %4733 }
 0x47d   : > { %v2200_v55 = vmul.f32 %v4734_v5, %v5776_v36 }
 0x47e   : > { %v2213_v10 = vpack.c.bf16 %v2197_v24, %v2197_v24 }
 0x47f   : > { %v2216_v16 = vpack.c.bf16 %v2200_v55, %v2200_v55 }
 0x480   : > { %v2165_v4 = vpop.xlane.xlu0 %2164  ;;  %4374 = vmatmul.mubr.msk.bf16.vlgmr.msra.gmra.mrb[72].mxu1 %vm2027_vm2, %v2213_v10  ;;  %4380 = vmatmul.mubr.msk.bf16.vlgmr.msra.gmra.mrb[76].mxu0 %vm2027_vm2, %v2214_v62 }
 0x481   : > { %4739 = vrcp.f32 %v2165_v4  ;;  %4384 = vmatpush3.bf16.msra.mxu1 %v5605_v43  ;;  %4390 = vmatpush3.bf16.msra.mxu0 %v5625_v42 }
 0x482   : > { %4385 = vmatprep.mubr.msk.bf16.mxu1 %vm5039_vm0, %v5038_v45  ;;  %4391 = vmatprep.mubr.msk.bf16.mxu0 %vm5039_vm0, %v5038_v45 }
 0x483   : > { %v4736_v46 = vpop.eup %4735  ;;  %4395 = vmatprep.subr.bf16.mxu1 %v5038_v45  ;;  %4401 = vmatprep.subr.bf16.mxu0 %v5038_v45 }
 0x484   : > { %v2199_v22 = vmul.f32 %v4736_v46, %v5792_v12  ;;  %v4738_v43 = vpop.eup %4737 }
 0x485   : > { %v2202_v36 = vmul.f32 %v4738_v43, %v5785_v6 }
 0x486   : > { %v2215_v56 = vpack.c.bf16 %v2199_v22, %v2199_v22 }
 0x487   : > { %v2218_v17 = vpack.c.bf16 %v2202_v36, %v2202_v36 }
 0x488   : > { %v2171_v42 = vpop.xlane.xlu0 %2170  ;;  %4386 = vmatmul.mubr.msk.bf16.vlgmr.msra.gmra.mrb[76].mxu1 %vm2027_vm2, %v2215_v56  ;;  %4392 = vmatmul.mubr.msk.bf16.vlgmr.msra.gmra.mrb[80].mxu0 %vm2027_vm2, %v2216_v16 }
 0x489   : > { %4741 = vrcp.f32 %v2171_v42  ;;  %4396 = vmatpush3.bf16.msra.mxu1 %v5634_v35  ;;  %4402 = vmatpush3.bf16.msra.mxu0 %v5622_v47 }
 0x48a   : > { %4397 = vmatprep.mubr.msk.bf16.mxu1 %vm5039_vm0, %v5038_v45  ;;  %4403 = vmatprep.mubr.msk.bf16.mxu0 %vm5039_vm0, %v5038_v45 }
 0x48b   : > { %v4740_v12 = vpop.eup %4739  ;;  %4407 = vmatprep.subr.bf16.mxu1 %v5038_v45  ;;  %4413 = vmatprep.subr.bf16.mxu0 %v4647_v52 }
 0x48c   : > { %v2201_v37 = vmul.f32 %v4740_v12, %v5797_v53  ;;  %v4649_v53 = vld [vmem:[#allocation10 + $0x10] sm:$0xff]  }
 0x48e   : > { %v2217_v30 = vpack.c.bf16 %v2201_v37, %v2201_v37 }
 0x490   : > { %4398 = vmatmul.mubr.msk.bf16.vlgmr.msra.gmra.mrb[80].mxu1 %vm2027_vm2, %v2217_v30  ;;  %4404 = vmatmul.mubr.msk.bf16.vlgmr.msra.gmra.mrb[84].mxu0 %vm2027_vm2, %v2218_v17 }
 0x491   : > { %4408 = vmatpush3.bf16.msra.mxu1 %v5631_v41  ;;  %4409 = vmatprep.mubr.msk.bf16.mxu1 %vm5039_vm0, %v5038_v45  ;;  %v4651_v41 = vld [vmem:[#allocation10 + $0x20] sm:$0xff]  }
 0x492   : > { %4414 = vmatpush3.bf16.msra.mxu0 %v4647_v52  ;;  %4445 = vmatprep.subr.bf16.mxu1 %v5038_v45 }
 0x493   : > { %v4742_v47 = vpop.eup %4741  ;;  %4415 = vmatprep.subr.bf16.mxu0 %v4648_v11 }
 0x494   : > { %v2203_v35 = vmul.f32 %v4742_v47, %v5801_v23  ;;  %v4653_v23 = vld [vmem:[#allocation10 + $0x30] sm:$0xff]  }
 0x496   : > { %v2219_v6 = vpack.c.bf16 %v2203_v35, %v2203_v35  ;;  %4416 = vmatpush3.bf16.msra.mxu0 %v4648_v11 }
 0x497   : > { %4417 = vmatprep.subr.bf16.mxu0 %v4649_v53 }
 0x498   : > { %4410 = vmatmul.mubr.msk.bf16.vlgmr.msra.gmra.mrb[84].mxu1 %vm2027_vm2, %v2219_v6 }
 0x499   : > { %4461 = vmatprep.mubr.msk.bf16.mxu1 %vm5039_vm0, %v5038_v45 }
 0x49a   : > { %4418 = vmatpush3.bf16.msra.mxu0 %v4649_v53 }
 0x49b   : > { %4419 = vmatprep.subr.bf16.mxu0 %v4650_v31 }
 0x49e   : > { %4420 = vmatpush3.bf16.msra.mxu0 %v4650_v31 }
 0x49f   : > { %4421 = vmatprep.subr.bf16.mxu0 %v4651_v41 }
 0x4a2   : > { %4422 = vmatpush3.bf16.msra.mxu0 %v4651_v41 }
 0x4a3   : > { %4423 = vmatprep.subr.bf16.mxu0 %v4652_v21 }
 0x4a6   : > { %4424 = vmatpush3.bf16.msra.mxu0 %v4652_v21 }
 0x4a7   : > { %4425 = vmatprep.subr.bf16.mxu0 %v4653_v23 }
 0x4aa   : > { %4426 = vmatpush3.bf16.msra.mxu0 %v4653_v23 }
 0x4ab   : > { %4427 = vmatprep.subr.bf16.mxu0 %v4654_v32 }
 0x4ae   : > { %4428 = vmatpush3.bf16.msra.mxu0 %v4654_v32 }
 0x4af   : > { %4465 = vmatprep.subr.bf16.mxu0 %v5038_v45 }
 0x523   : > { %v2261_v14 = vpop.f32.mrb[56].mxu0 }
 0x524   : > { %v4321_v34 = vpop.f32.mrb[57].mxu0 }
 0x525   : > { %v2264_v20 = vpop.f32.mrb[58].mxu0 }
 0x526   : > { %v4322_v25 = vpop.f32.mrb[59].mxu0 }
 0x52b   : > { %v2307_v54 = vpop.f32.mrb[56].mxu1 }
 0x52c   : > { %v2957_v33 = vpack.c.bf16 %v2307_v54, %v2261_v14  ;;  %v4327_v2 = vpop.f32.mrb[57].mxu1 }
 0x52d   : > { %v2310_v57 = vpop.f32.mrb[58].mxu1 }
 0x52e   : > { %v4328_v27 = vpop.f32.mrb[59].mxu1  ;;  %4429 = vmatprep.mubr.bf16.mxu0 %v2957_v33 }
 0x533   : > { %v2353_v15 = vpop.f32.mrb[60].mxu0 }
 0x534   : > { %v4333_v51 = vpop.f32.mrb[61].mxu0 }
 0x535   : > { %v2356_v26 = vpop.f32.mrb[62].mxu0 }
 0x536   : > { %v4334_v3 = vpop.f32.mrb[63].mxu0 }
 0x53b   : > { %v2399_v48 = vpop.f32.mrb[60].mxu1  ;;  %v2445_v40 = vpop.f32.mrb[64].mxu0 }
 0x53c   : > { %v2958_v44 = vpack.c.bf16 %v2399_v48, %v2353_v15  ;;  %v4339_v13 = vpop.f32.mrb[61].mxu1  ;;  %v4345_v7 = vpop.f32.mrb[65].mxu0 }
 0x53d   : > { %v2402_v24 = vpop.f32.mrb[62].mxu1  ;;  %v2448_v10 = vpop.f32.mrb[66].mxu0 }
 0x53e   : > { %v4340_v62 = vpop.f32.mrb[63].mxu1  ;;  %v4346_v5 = vpop.f32.mrb[67].mxu0  ;;  %4430 = vmatmul.mubr.bf16.vlgmr.msra.gmra.mrb[88].mxu0 %v2958_v44 }
 0x543   : > { %v2491_v4 = vpop.f32.mrb[64].mxu1  ;;  %v2537_v55 = vpop.f32.mrb[68].mxu0 }
 0x544   : > { %v2959_v46 = vpack.c.bf16 %v2491_v4, %v2445_v40  ;;  %v4351_v22 = vpop.f32.mrb[65].mxu1  ;;  %v4357_v56 = vpop.f32.mrb[69].mxu0 }
 0x545   : > { %v2494_v16 = vpop.f32.mrb[66].mxu1  ;;  %v2540_v43 = vpop.f32.mrb[70].mxu0 }
 0x546   : > { %v4352_v52 = vpop.f32.mrb[67].mxu1  ;;  %v4358_v42 = vpop.f32.mrb[71].mxu0  ;;  %4433 = vmatprep.mubr.bf16.mxu0 %v2959_v46 }
 0x54b   : > { %v2583_v36 = vpop.f32.mrb[68].mxu1  ;;  %v2629_v12 = vpop.f32.mrb[72].mxu0 }
 0x54c   : > { %v2960_v37 = vpack.c.bf16 %v2583_v36, %v2537_v55  ;;  %v4363_v30 = vpop.f32.mrb[69].mxu1  ;;  %v4369_v17 = vpop.f32.mrb[73].mxu0 }
 0x54d   : > { %v2586_v11 = vpop.f32.mrb[70].mxu1  ;;  %v2632_v47 = vpop.f32.mrb[74].mxu0 }
 0x54e   : > { %v4364_v35 = vpop.f32.mrb[71].mxu1  ;;  %v4370_v6 = vpop.f32.mrb[75].mxu0  ;;  %4434 = vmatmul.mubr.bf16.gmra.mrb[92].mxu0 %v2960_v37 }
 0x553   : > { %v2675_v53 = vpop.f32.mrb[72].mxu1  ;;  %v2721_v31 = vpop.f32.mrb[76].mxu0 }
 0x554   : > { %v2961_v41 = vpack.c.bf16 %v2675_v53, %v2629_v12  ;;  %v4375_v21 = vpop.f32.mrb[73].mxu1  ;;  %v4381_v23 = vpop.f32.mrb[77].mxu0 }
 0x555   : > { %v2678_v32 = vpop.f32.mrb[74].mxu1  ;;  %v2724_v14 = vpop.f32.mrb[78].mxu0 }
 0x556   : > { %v4376_v34 = vpop.f32.mrb[75].mxu1  ;;  %v4382_v20 = vpop.f32.mrb[79].mxu0  ;;  %4437 = vmatprep.mubr.bf16.mxu0 %v2961_v41 }
 0x55b   : > { %v2767_v25 = vpop.f32.mrb[76].mxu1  ;;  %v2813_v54 = vpop.f32.mrb[80].mxu0 }
 0x55c   : > { %v2962_v33 = vpack.c.bf16 %v2767_v25, %v2721_v31  ;;  %v4387_v2 = vpop.f32.mrb[77].mxu1  ;;  %v4393_v57 = vpop.f32.mrb[81].mxu0 }
 0x55d   : > { %v2770_v27 = vpop.f32.mrb[78].mxu1  ;;  %v2816_v15 = vpop.f32.mrb[82].mxu0 }
 0x55e   : > { %v4388_v51 = vpop.f32.mrb[79].mxu1  ;;  %v4394_v26 = vpop.f32.mrb[83].mxu0  ;;  %4438 = vmatmul.mubr.bf16.gmra.mrb[96].mxu0 %v2962_v33 }
 0x563   : > { %v2859_v3 = vpop.f32.mrb[80].mxu1  ;;  %v2905_v48 = vpop.f32.mrb[84].mxu0 }
 0x564   : > { %v2963_v40 = vpack.c.bf16 %v2859_v3, %v2813_v54  ;;  %v4399_v44 = vpop.f32.mrb[81].mxu1  ;;  %v4405_v13 = vpop.f32.mrb[85].mxu0 }
 0x565   : > { %v2862_v7 = vpop.f32.mrb[82].mxu1  ;;  %v2908_v24 = vpop.f32.mrb[86].mxu0 }
 0x566   : > { %v4400_v10 = vpop.f32.mrb[83].mxu1  ;;  %v4406_v62 = vpop.f32.mrb[87].mxu0  ;;  %4441 = vmatprep.mubr.bf16.mxu0 %v2963_v40 }
 0x56b   : > { %v2951_v5 = vpop.f32.mrb[84].mxu1 }
 0x56c   : > { %v2964_v4 = vpack.c.bf16 %v2951_v5, %v2905_v48  ;;  %v4411_v55 = vpop.f32.mrb[85].mxu1 }
 0x56d   : > { %v2954_v46 = vpop.f32.mrb[86].mxu1 }
 0x56e   : > { %v4412_v22 = vpop.f32.mrb[87].mxu1  ;;  %4442 = vmatmul.mubr.bf16.gmra.mrb[100].mxu0 %v2964_v4 }
 0x56f   : > { %4481 = vmatprep.mubr.msk.bf16.mxu0 %vm5039_vm0, %v5038_v45 }
 0x611   : > { %v4431_v56 = vpop.f32.mrb[88].mxu0 }
 0x612   : > { %v3063_v16 = vpop.f32.mrb[89].mxu0  ;;  %v5901_v36 = vadd.f32 %v4431_v56, %v5414_v58 }
 0x613   : > { %v4432_v43 = vpop.f32.mrb[90].mxu0  ;;  %v3126_v2 = vadd.f32 %v3063_v16, %v5416_v59 }
 0x614   : > { %v3066_v52 = vpop.f32.mrb[91].mxu0  ;;  %v5908_v47 = vadd.f32 %v4432_v43, %v5418_v60  ;;  %v3159_v6 = vrot.slane %v5901_v36, 6 }
 0x615   : > { %v5898_v42 = vadd.f32 %v3066_v52, %v5420_v61  ;;  %v3195_v27 = vsel %vm3177_vm9, %v3126_v2, 0.0 }
 0x616   : > { %v3162_v31 = vrot.slane %v5908_v47, 5 }
 0x617   : > { %v3158_v30 = vrot.slane %v5898_v42, 7 }
 0x619   : > { %v3161_v58 = vsel %vm3160_vm3, %v3159_v6, %v3158_v30 }
 0x621   : > { %v4435_v12 = vpop.f32.mrb[92].mxu0 }
 0x622   : > { %v3079_v37 = vpop.f32.mrb[93].mxu0  ;;  %v5920_v41 = vadd.f32 %v4435_v12, %v5448_v19 }
 0x623   : > { %v5905_v17 = vadd.f32 %v3079_v37, %v5434_v9  ;;  %v4436_v11 = vpop.f32.mrb[94].mxu0  ;;  %v3164_v9 = vsel %vm3163_vm4, %v3162_v31, %v3161_v58 }
 0x624   : > { %v3082_v35 = vpop.f32.mrb[95].mxu0  ;;  %v3171_v32 = vrot.slane %v5920_v41, 2 }
 0x625   : > { %v5912_v61 = vadd.f32 %v3082_v35, %v5432_v8  ;;  %v3165_v53 = vrot.slane %v5905_v17, 4  ;;  %v5924_v8 = vadd.f32 %v4436_v11, %v5446_v18 }
 0x627   : > { %v3168_v60 = vrot.slane %v5912_v61, 3  ;;  %v3167_v21 = vsel %vm3166_vm5, %v3165_v53, %v3164_v9  ;;  %v3174_v20 = vrot.slane %v5924_v8, 1 }
 0x629   : > { %v3170_v23 = vsel %vm3169_vm6, %v3168_v60, %v3167_v21 }
 0x62a   : > { %v3173_v34 = vsel %vm3172_vm7, %v3171_v32, %v3170_v23 }
 0x62b   : > { %v3176_v18 = vsel %vm3175_vm8, %v3174_v20, %v3173_v34  ;;  %v5980_v20 = vand.u32 127, %v676_v0 }
 0x62d   : > { %vm678_vm11 = vcmp.lt.s32.totalorder %v5980_v20, 32  ;;  %v4678_v20 = vld [vmem:[#allocation13 + $0x38] sm:$0xff]  }
 0x631   : > { %v4439_v14 = vpop.f32.mrb[96].mxu0 }
 0x632   : > { %v3095_v25 = vpop.f32.mrb[97].mxu0 }
 0x633   : > { %v5931_v19 = vadd.f32 %v3095_v25, %v5458_v29  ;;  %v4440_v54 = vpop.f32.mrb[98].mxu0  ;;  %v5942_v29 = vadd.f32 %v4439_v14, %v5466_v39 }
 0x634   : > { %v3098_v33 = vpop.f32.mrb[99].mxu0  ;;  %v5946_v26 = vadd.f32 %v4440_v54, %v5464_v38 }
 0x635   : > { %v3178_v57 = vsel %vm3177_vm9, %v5931_v19, %v3176_v18  ;;  %v5939_v15 = vadd.f32 %v3098_v33, %v5456_v28  ;;  %v3180_v59 = vrot.slane %v5942_v29, 6 }
 0x636   : > { %3198 = vadd.xlane.f32.xlu1 %v3178_v57  ;;  %v3182_v28 = vrot.slane %v5946_v26, 5 }
 0x637   : > { %v3179_v51 = vrot.slane %v5939_v15, 7 }
 0x639   : > { %v3181_v40 = vsel %vm3160_vm3, %v3180_v59, %v3179_v51 }
 0x63a   : > { %3196 = vadd.xlane.f32.xlu1 %v3195_v27  ;;  %v3183_v62 = vsel %vm3163_vm4, %v3182_v28, %v3181_v40 }
 0x641   : > { %v4443_v3 = vpop.f32.mrb[100].mxu0 }
 0x642   : > { %v3111_v48 = vpop.f32.mrb[101].mxu0  ;;  %v5955_v39 = vadd.f32 %v4443_v3, %v5482_v1 }
 0x643   : > { %v5951_v44 = vadd.f32 %v3111_v48, %v5474_v50  ;;  %v4444_v13 = vpop.f32.mrb[102].mxu0 }
 0x644   : > { %v3114_v7 = vpop.f32.mrb[103].mxu0  ;;  %v5959_v38 = vadd.f32 %v4444_v13, %v5480_v63  ;;  %v3188_v4 = vrot.slane %v5955_v39, 2 }
 0x645   : > { %v3184_v24 = vrot.slane %v5951_v44, 4  ;;  %v5962_v10 = vadd.f32 %v3114_v7, %v5472_v49 }
 0x646   : > { %v3190_v1 = vrot.slane %v5959_v38, 1 }
 0x647   : > { %v3185_v50 = vsel %vm3166_vm5, %v3184_v24, %v3183_v62  ;;  %v3186_v5 = vrot.slane %v5962_v10, 3 }
 0x649   : > { %v3187_v55 = vsel %vm3169_vm6, %v3186_v5, %v3185_v50 }
 0x64a   : > { %v3189_v46 = vsel %vm3172_vm7, %v3188_v4, %v3187_v55 }
 0x64b   : > { %v3191_v63 = vsel %vm3175_vm8, %v3190_v1, %v3189_v46 }
 0x64c   : > { %v3201_v22 = vsel %vm3200_vm10, %v3191_v63, 0.0 }
 0x64d   : > { %3202 = vadd.xlane.f32.xlu0 %v3201_v22 }
 0x6c3   : > { %v3199_v49 = vpop.xlane.xlu1 %3198 }
 0x6c4   : > { %v3205_v56 = vmul.f32 0.03125, %v3199_v49 }
 0x6c6   : > { %v3210_v16 = vrot.slane %v3205_v56, 1  ;;  %v3211_v43 = vrot.slane %v3205_v56, 2  ;;  %v3212_v52 = vrot.slane %v3205_v56, 3  ;;  %v3213_v37 = vrot.slane %v3205_v56, 4 }
 0x6c7   : > { %v3197_v12 = vpop.xlane.xlu1 %3196  ;;  %v3214_v35 = vrot.slane %v3205_v56, 5  ;;  %v3215_v58 = vrot.slane %v3205_v56, 6  ;;  %v3248_v3 = vsub.f32 %v5931_v19, %v3205_v56 }
 0x6c8   : > { %v3241_v30 = vsub.f32 %v5898_v42, %v3210_v16  ;;  %v3204_v11 = vmul.f32 0.03125, %v3197_v12  ;;  %v3242_v6 = vsub.f32 %v5901_v36, %v3211_v43  ;;  %v3243_v53 = vsub.f32 %v5908_v47, %v3212_v52 }
 0x6c9   : > { %v3244_v9 = vsub.f32 %v5905_v17, %v3213_v37  ;;  %v3245_v23 = vsub.f32 %v5912_v61, %v3214_v35  ;;  %v3246_v14 = vsub.f32 %v5920_v41, %v3215_v58  ;;  %v3216_v36 = vrot.slane %v3205_v56, 7  ;;  %v4658_v35 = vld [vmem:[%s6146_s9 + $0x18] sm:$0xff]   ;;  %v4660_v58 = vld [vmem:[%s6146_s9 + $0x28] sm:$0xff]  }
 0x6ca   : > { %v3240_v31 = vsub.f32 %v3126_v2, %v3204_v11  ;;  %v3275_v60 = vrot.slane %v3241_v30, 6  ;;  %v3277_v32 = vrot.slane %v3242_v6, 5  ;;  %v3279_v34 = vrot.slane %v3243_v53, 4  ;;  %v4655_v30 = vld [vmem:[%s6146_s9] sm:$0xff]   ;;  %v4657_v11 = vld [vmem:[%s6146_s9 + $0x10] sm:$0xff]  }
 0x6cb   : > { %v3281_v47 = vrot.slane %v3244_v9, 3  ;;  %v3283_v17 = vrot.slane %v3245_v23, 2  ;;  %v3285_v18 = vrot.slane %v3246_v14, 1  ;;  %v3247_v61 = vsub.f32 %v5924_v8, %v3216_v36  ;;  %4446 = vmatpush3.bf16.msra.mxu1 %v4655_v30  ;;  %v4659_v6 = vld [vmem:[%s6146_s9 + $0x20] sm:$0xff]   ;;  %v4661_v53 = vld [vmem:[%s6146_s9 + $0x30] sm:$0xff]   ;;  %v4666_v23 = vld [vmem:[#allocation11 + $0x18] sm:$0xff]  }
 0x6cc   : > { %v3274_v21 = vrot.slane %v3240_v31, 7  ;;  %v3288_v1 = vrot.slane %v3248_v3, 7  ;;  %4447 = vmatprep.subr.bf16.mxu1 %v5038_v45  ;;  %v4662_v31 = vld [vmem:[%s6146_s9 + $0x38] sm:$0xff]   ;;  %v4663_v9 = vld [vmem:[#allocation11] sm:$0xff]   ;;  %v4668_v14 = vld [vmem:[#allocation11 + $0x28] sm:$0xff]  }
 0x6cd   : > { %4466 = vmatpush3.bf16.msra.mxu0 %v4663_v9 }
 0x6ce   : > { %v3276_v42 = vsel %vm3160_vm3, %v3275_v60, %v3274_v21  ;;  %v4664_v60 = vld [vmem:[#allocation11 + $0x8] sm:$0xff]   ;;  %4467 = vmatprep.subr.bf16.mxu0 %v5038_v45  ;;  %v4665_v21 = vld [vmem:[#allocation11 + $0x10] sm:$0xff]  }
 0x6cf   : > { %v3278_v25 = vsel %vm3163_vm4, %v3277_v32, %v3276_v42  ;;  %v4667_v32 = vld [vmem:[#allocation11 + $0x20] sm:$0xff]  }
 0x6d0   : > { %v3280_v54 = vsel %vm3166_vm5, %v3279_v34, %v3278_v25 }
 0x6d1   : > { %v3282_v33 = vsel %vm3169_vm6, %v3281_v47, %v3280_v54  ;;  %4468 = vmatpush3.bf16.msra.mxu0 %v4664_v60 }
 0x6d2   : > { %v3284_v41 = vsel %vm3172_vm7, %v3283_v17, %v3282_v33  ;;  %4469 = vmatprep.subr.bf16.mxu0 %v5038_v45 }
 0x6d3   : > { %v3286_v2 = vsel %vm3175_vm8, %v3285_v18, %v3284_v41  ;;  %v3933_v18 = vld [vmem:[%s6144_s7] ss:$0 sm:$0xff] }
 0x6d4   : > { %v3287_v0 = vsel %vm3177_vm9, %v3247_v61, %v3286_v2 }
 0x6d5   : > { %v5992_v57 = vsel %vm678_vm11, %v3287_v0, 0.0  ;;  %4470 = vmatpush3.bf16.msra.mxu0 %v4665_v21  ;;  %v3934_v0 = vld [vmem:[%s6145_s8] ss:$0 sm:$0xff] }
 0x6d6   : > { %v3306_v27 = vmul.f32 %v5992_v57, %v5992_v57  ;;  %4471 = vmatprep.subr.bf16.mxu0 %v5038_v45 }
 0x6d8   : > { %3308 = vadd.xlane.f32.xlu0 %v3306_v27 }
 0x6d9   : > { %4472 = vmatpush3.bf16.msra.mxu0 %v4666_v23 }
 0x6da   : > { %v3203_v51 = vpop.xlane.xlu0 %3202  ;;  %4473 = vmatprep.subr.bf16.mxu0 %v5038_v45 }
 0x6db   : > { %v3206_v59 = vmul.f32 0.03125, %v3203_v51 }
 0x6dd   : > { %v3217_v48 = vrot.slane %v3206_v59, 1  ;;  %v3218_v8 = vrot.slane %v3206_v59, 2  ;;  %v3219_v40 = vrot.slane %v3206_v59, 3  ;;  %v3220_v13 = vrot.slane %v3206_v59, 4  ;;  %4474 = vmatpush3.bf16.msra.mxu0 %v4667_v32 }
 0x6de   : > { %v3221_v28 = vrot.slane %v3206_v59, 5  ;;  %v3222_v7 = vrot.slane %v3206_v59, 6  ;;  %v3223_v63 = vrot.slane %v3206_v59, 7  ;;  %4475 = vmatprep.subr.bf16.mxu0 %v5038_v45 }
 0x6df   : > { %v3249_v24 = vsub.f32 %v5939_v15, %v3217_v48  ;;  %v3250_v62 = vsub.f32 %v5942_v29, %v3218_v8  ;;  %v3251_v50 = vsub.f32 %v5946_v26, %v3219_v40  ;;  %v3252_v5 = vsub.f32 %v5951_v44, %v3220_v13  ;;  %v4670_v48 = vld [vmem:[#allocation11 + $0x38] sm:$0xff]   ;;  %v3935_v8 = vld [vmem:[%s6147_s10] ss:$0 sm:$0xff] }
 0x6e0   : > { %v3253_v4 = vsub.f32 %v5962_v10, %v3221_v28  ;;  %v3254_v19 = vsub.f32 %v5955_v39, %v3222_v7  ;;  %v3255_v10 = vsub.f32 %v5959_v38, %v3223_v63  ;;  %v4656_v38 = vld [vmem:[%s6146_s9 + $0x8] sm:$0xff]  }
 0x6e1   : > { %v3289_v55 = vrot.slane %v3249_v24, 6  ;;  %v3291_v46 = vrot.slane %v3250_v62, 5  ;;  %v3293_v49 = vrot.slane %v3251_v50, 4  ;;  %v3295_v15 = vrot.slane %v3252_v5, 3  ;;  %4448 = vmatpush3.bf16.msra.mxu1 %v4656_v38  ;;  %4476 = vmatpush3.bf16.msra.mxu0 %v4668_v14 }
 0x6e2   : > { %v3297_v16 = vrot.slane %v3253_v4, 2  ;;  %v3299_v44 = vrot.slane %v3254_v19, 1  ;;  %4449 = vmatprep.subr.bf16.mxu1 %v5038_v45  ;;  %4477 = vmatprep.subr.bf16.mxu0 %v5038_v45 }
 0x6e3   : > { %v3290_v22 = vsel %vm3160_vm3, %v3289_v55, %v3288_v1  ;;  %v3944_v1 = vld [vmem:[%s6149_s12] ss:$0 sm:$0xff] }
 0x6e4   : > { %v3292_v56 = vsel %vm3163_vm4, %v3291_v46, %v3290_v22 }
 0x6e5   : > { %v3294_v29 = vsel %vm3166_vm5, %v3293_v49, %v3292_v56  ;;  %4450 = vmatpush3.bf16.msra.mxu1 %v4657_v11  ;;  %v4673_v11 = vld [vmem:[#allocation13 + $0x10] sm:$0xff]  }
 0x6e6   : > { %v3296_v26 = vsel %vm3169_vm6, %v3295_v15, %v3294_v29  ;;  %4451 = vmatprep.subr.bf16.mxu1 %v5038_v45  ;;  %v4671_v29 = vld [vmem:[#allocation13] sm:$0xff]  }
 0x6e7   : > { %v3298_v43 = vsel %vm3172_vm7, %v3297_v16, %v3296_v26  ;;  %v4672_v16 = vld [vmem:[#allocation13 + $0x8] sm:$0xff]  }
 0x6e8   : > { %v3300_v52 = vsel %vm3175_vm8, %v3299_v44, %v3298_v43 }
 0x6e9   : > { %v3301_v39 = vsel %vm3177_vm9, %v3255_v10, %v3300_v52  ;;  %4452 = vmatpush3.bf16.msra.mxu1 %v4658_v35  ;;  %v4674_v35 = vld [vmem:[#allocation13 + $0x18] sm:$0xff]  }
 0x6ea   : > { %v3305_v12 = vsel %vm678_vm11, %v3301_v39, 0.0  ;;  %4453 = vmatprep.subr.bf16.mxu1 %v5038_v45 }
 0x6eb   : > { %v3307_v37 = vmul.f32 %v3305_v12, %v3305_v12 }
 0x6ed   : > { %3310 = vadd.xlane.f32.xlu1 %v3307_v37  ;;  %4454 = vmatpush3.bf16.msra.mxu1 %v4659_v6  ;;  %v4675_v6 = vld [vmem:[#allocation13 + $0x20] sm:$0xff]  }
 0x6ee   : > { %4455 = vmatprep.subr.bf16.mxu1 %v5038_v45 }
 0x6f1   : > { %4456 = vmatpush3.bf16.msra.mxu1 %v4660_v58  ;;  %v4676_v58 = vld [vmem:[#allocation13 + $0x28] sm:$0xff]  }
 0x6f2   : > { %4457 = vmatprep.subr.bf16.mxu1 %v5038_v45 }
 0x6f5   : > { %4458 = vmatpush3.bf16.msra.mxu1 %v4661_v53  ;;  %v4677_v53 = vld [vmem:[#allocation13 + $0x30] sm:$0xff]  }
 0x6f6   : > { %4459 = vmatprep.subr.bf16.mxu1 %v5038_v45 }
 0x6f9   : > { %4460 = vmatpush3.bf16.msra.mxu1 %v4662_v31 }
 0x6fa   : > { %4485 = vmatprep.subr.bf16.mxu1 %v5038_v45 }
 0x765   : > { %v3309_v34 = vpop.xlane.xlu0 %3308 }
 0x766   : > { %v3312_v42 = vmul.f32 0.03125, %v3309_v34  ;;  %v3953_v34 = vld [vmem:[%s6205_s17] ss:$0 sm:$0xff]  ;;  %s6096_s17 = scalar_lea.sflag [#allocation4], %s642_s0 }
 0x768   : > { %v3314_v36 = vadd.f32 1e-05, %v3312_v42 }
 0x76a   : > { %4743 = vrsqrt.f32 %v3314_v36 }
 0x774   : > { %v4744_v17 = vpop.eup %4743 }
 0x775   : > { %v3318_v33 = vmul.f32 %v4744_v17, %v5992_v57  ;;  %v4669_v57 = vld [vmem:[#allocation11 + $0x30] sm:$0xff]  }
 0x776   : > { %4478 = vmatpush3.bf16.msra.mxu0 %v4669_v57 }
 0x777   : > { %v3326_v2 = vmul.f32 %v3933_v18, %v3318_v33  ;;  %4479 = vmatprep.subr.bf16.mxu0 %v5038_v45 }
 0x779   : > { %v3334_v51 = vadd.f32 %v3934_v0, %v3326_v2 }
 0x77a   : > { %v3311_v25 = vpop.xlane.xlu1 %3310  ;;  %4480 = vmatpush3.bf16.msra.mxu0 %v4670_v48 }
 0x77b   : > { %v3313_v47 = vmul.f32 0.03125, %v3311_v25 }
 0x77d   : > { %v3315_v54 = vadd.f32 1e-05, %v3313_v47  ;;  %v3954_v47 = vld [vmem:[%s6206_s27] ss:$0 sm:$0xff]  ;;  %s4953_s27 = scalar_lea.vmem %s4952_s29, 512 }
 0x77e   : > { %p4955_p0 = scmp.lt.s32.totalorder %s4953_s27, %s4947_s28 }
 0x77f   : > { %4745 = vrsqrt.f32 %v3315_v54 }
 0x780   : > { %p4956_p10 = por %p4955_p0, %p4954_p5 }
 0x782   : > { %p4957_p2 = pnand %p4956_p10, %p4950_p9 }
 0x789   : > { %v4746_v61 = vpop.eup %4745 }
 0x78a   : > { %v3319_v41 = vmul.f32 %v4746_v61, %v3305_v12  ;;  %v3955_v61 = vld [vmem:[%s6207_s24] ss:$0 sm:$0xff] }
 0x78c   : > { %v3327_v27 = vmul.f32 %v3933_v18, %v3319_v41 }
 0x78e   : > { %v3335_v59 = vadd.f32 %v3934_v0, %v3327_v27 }
 0x790   : > { %v3336_v3 = vpack.c.bf16 %v3335_v59, %v3334_v51 }
 0x792   : > { %4462 = vmatmul.mubr.bf16.vlgmr.msra.gmra.mrb[88].mxu1 %v3336_v3 }
 0x793   : > { %4501 = vmatprep.mubr.msk.bf16.mxu1 %vm5039_vm0, %v5038_v45  ;;  %4486 = vmatpush3.bf16.msra.mxu1 %v4671_v29 }
 0x794   : > { %4487 = vmatprep.subr.bf16.mxu1 %v5038_v45 }
 0x797   : > { %4488 = vmatpush3.bf16.msra.mxu1 %v4672_v16 }
 0x798   : > { %4489 = vmatprep.subr.bf16.mxu1 %v5038_v45 }
 0x79b   : > { %4490 = vmatpush3.bf16.msra.mxu1 %v4673_v11 }
 0x79c   : > { %4491 = vmatprep.subr.bf16.mxu1 %v5038_v45 }
 0x79f   : > { %4492 = vmatpush3.bf16.msra.mxu1 %v4674_v35 }
 0x7a0   : > { %4493 = vmatprep.subr.bf16.mxu1 %v5038_v45 }
 0x7a3   : > { %4494 = vmatpush3.bf16.msra.mxu1 %v4675_v6 }
 0x7a4   : > { %4495 = vmatprep.subr.bf16.mxu1 %v5038_v45 }
 0x7a7   : > { %4496 = vmatpush3.bf16.msra.mxu1 %v4676_v58 }
 0x7a8   : > { %4497 = vmatprep.subr.bf16.mxu1 %v5038_v45 }
 0x7ab   : > { %4498 = vmatpush3.bf16.msra.mxu1 %v4677_v53 }
 0x7ac   : > { %4499 = vmatprep.subr.bf16.mxu1 %v5038_v45 }
 0x7af   : > { %4500 = vmatpush3.bf16.msra.mxu1 %v4678_v20 }
 0x865   : > { %v3441_v40 = vpop.f32.mrb[88].mxu1 }
 0x866   : > { %v3442_v13 = vadd.f32 %v3935_v8, %v3441_v40  ;;  %v4463_v28 = vpop.f32.mrb[89].mxu1 }
 0x867   : > { %v3444_v7 = vpop.f32.mrb[90].mxu1 }
 0x868   : > { %v3445_v24 = vadd.f32 %v3935_v8, %v3444_v7  ;;  %v4464_v62 = vpop.f32.mrb[91].mxu1  ;;  %v3448_v50 = vmax.f32 %v3442_v13, 0.0 }
 0x86a   : > { %v3449_v5 = vmax.f32 %v3445_v24, 0.0 }
 0x86c   : > { %v3450_v4 = vpack.c.bf16 %v3449_v5, %v3448_v50 }
 0x86e   : > { %4482 = vmatmul.mubr.bf16.vlgmr.msra.gmra.mrb[104].mxu0 %v3450_v4 }
 0x941   : > { %v3555_v55 = vpop.f32.mrb[104].mxu0 }
 0x942   : > { %v3556_v46 = vadd.f32 %v3944_v1, %v3555_v55  ;;  %v4483_v19 = vpop.f32.mrb[105].mxu0 }
 0x943   : > { %v3558_v63 = vpop.f32.mrb[106].mxu0 }
 0x944   : > { %v3559_v22 = vadd.f32 %v3944_v1, %v3558_v63  ;;  %v4484_v49 = vpop.f32.mrb[107].mxu0  ;;  %v3562_v56 = vadd.f32 %v3556_v46, %v3334_v51 }
 0x946   : > { %3564 = vadd.xlane.f32.xlu0 %v3562_v56  ;;  %v3563_v15 = vadd.f32 %v3559_v22, %v3335_v59 }
 0x948   : > { %3566 = vadd.xlane.f32.xlu1 %v3563_v15 }
 0x9d3   : > { %v3565_v26 = vpop.xlane.xlu0 %3564 }
 0x9d4   : > { %v3568_v44 = vmul.f32 0.03125, %v3565_v26 }
 0x9d5   : > { %v3567_v10 = vpop.xlane.xlu1 %3566 }
 0x9d6   : > { %v3570_v43 = vsub.f32 %v3562_v56, %v3568_v44  ;;  %v3569_v52 = vmul.f32 0.03125, %v3567_v10 }
 0x9d8   : > { %v3571_v39 = vsub.f32 %v3563_v15, %v3569_v52  ;;  %v3572_v12 = vsel %vm678_vm11, %v3570_v43, 0.0 }
 0x9d9   : > { %v3574_v37 = vmul.f32 %v3572_v12, %v3572_v12 }
 0x9da   : > { %v3573_v30 = vsel %vm678_vm11, %v3571_v39, 0.0 }
 0x9db   : > { %3576 = vadd.xlane.f32.xlu0 %v3574_v37  ;;  %v3575_v38 = vmul.f32 %v3573_v30, %v3573_v30 }
 0x9dd   : > { %3578 = vadd.xlane.f32.xlu1 %v3575_v38 }
 0xa68   : > { %v3577_v31 = vpop.xlane.xlu0 %3576 }
 0xa69   : > { %v3580_v9 = vmul.f32 0.03125, %v3577_v31 }
 0xa6a   : > { %v3579_v60 = vpop.xlane.xlu1 %3578 }
 0xa6b   : > { %v3582_v21 = vadd.f32 1e-05, %v3580_v9  ;;  %v3581_v23 = vmul.f32 0.03125, %v3579_v60 }
 0xa6d   : > { %4747 = vrsqrt.f32 %v3582_v21  ;;  %v3583_v32 = vadd.f32 1e-05, %v3581_v23 }
 0xa6f   : > { %4749 = vrsqrt.f32 %v3583_v32 }
 0xa77   : > { %v4748_v14 = vpop.eup %4747 }
 0xa78   : > { %v3586_v42 = vmul.f32 %v4748_v14, %v3572_v12 }
 0xa79   : > { %v4750_v36 = vpop.eup %4749 }
 0xa7a   : > { %v3587_v25 = vmul.f32 %v4750_v36, %v3573_v30  ;;  %v3594_v45 = vmul.f32 %v3953_v34, %v3586_v42 }
 0xa7c   : > { %v3595_v54 = vmul.f32 %v3953_v34, %v3587_v25  ;;  %v3602_v17 = vadd.f32 %v3954_v47, %v3594_v45 }
 0xa7e   : > { %v3603_v33 = vadd.f32 %v3954_v47, %v3595_v54 }
 0xa80   : > { %v3604_v18 = vpack.c.bf16 %v3603_v33, %v3602_v17 }
 0xa82   : > { %4502 = vmatmul.mubr.bf16.vlgmr.msra.gmra.mrb[92].mxu1 %v3604_v18 }
 0xb55   : > { %v3709_v41 = vpop.f32.mrb[92].mxu1 }
 0xb56   : > { %v3710_v2 = vadd.f32 %v3955_v61, %v3709_v41  ;;  %v4503_v0 = vpop.f32.mrb[93].mxu1 }
 0xb57   : > { %v3712_v27 = vpop.f32.mrb[94].mxu1 }
 0xb58   : > { %3716 = vst [vmem:[%s644_s23] sm:$0xff] %v3710_v2  ;;  %v3713_v51 = vadd.f32 %v3955_v61, %v3712_v27  ;;  %v4504_v59 = vpop.f32.mrb[95].mxu1 }
 0xb5a   : > { %3717 = vst [vmem:[%s644_s23 + $0x8] sm:$0xff] %v3713_v51 }
 0xb5b   : > { %4960 = shalt.err (!%p4957_p2)
}
 0xb5c   : > { %s4961_s0 = scalar_lea.hbm %s6094_s13, 256  ;;  %s4965_s30 = scalar_lea.hbm %s6209_s18, 512 }
 0xb5d   : > { %p4962_p3 = scmp.ne.s32.totalorder %s6094_s13, %s4961_s0  ;;  %p4966_p7 = scmp.lt.u32.totalorder %s6094_s13, %s6209_s18 }
 0xb5e   : > { %p4967_p8 = scmp.lt.u32.totalorder %s4965_s30, %s4961_s0  ;;  %p4969_p13 = scmp.lt.u32.totalorder %s4961_s0, %s6094_s13 }
 0xb5f   : > { %p4963_p4 = pnand %p4962_p3, %p6210_p1 }
 0xb60   : > { %p4968_p11 = por %p4967_p8, %p4966_p7 }
 0xb61   : > { %p4964_p12 = pneg %p4963_p4 }
 0xb62   : > { %p4970_p6 = por %p4969_p13, %p4968_p11 }
 0xb64   : > { %p4971_p9 = pnand %p4970_p6, %p4964_p12 }
 0xb66   : > { %4974 = shalt.err (!%p4971_p9)
}
 0xb67   : > { %s5041_s16 = smov 128   ;;  %s5042_s20 = smov 8  }
 0xb68   : > { %4533 = dma.vmem_to_hbm [thread:$0]  (%p6210_p1), %s6089_s3, 256, %s6094_s13, %s6096_s17, %s5041_s16, %s5041_s16, %s5042_s20  }
 0xb69 PF: > { %s6211_s19 = sld [smem:[#allocation22_spill]]  ;;  %s6212_s28 = sld [smem:[#allocation20_spill]] }
 0xb6a   : > { %s6213_s21 = sld [smem:[#allocation26_spill]] }
 0xb6f   : > { %p4575_p5 = scmp.ge.s32.totalorder %s6211_s19, 2  ;;  %s3747_s29 = sand.u32 1, %s6212_s28  }
 0xb70   : > { %p6214_p0 = scmp.ne.s32.totalorder %s6213_s21, 0  ;;  %s3748_s27 = scalar_lea.sflag [#allocation4], %s3747_s29 }
 0xb72   : > { %p4558_p10 = pnand %p4575_p5, %p6214_p0 }
 0xb74   : > { %5008 = dma.done.wait (!%p4558_p10), %s3748_s27, 256  }
 0xb75   : > { %5010 = vsyncadd (!%p4558_p10), %s3748_s27, 4294967040  ;;  %s6215_s27 = sld [smem:[#allocation23_spill]]  ;;  %s6216_s0 = sld [smem:[#allocation21_spill]] }
 0xb76   : > { %s6217_s26 = sld [smem:[#allocation24_spill]]  ;;  %s6218_s24 = smov %s5017_s25 }
 0xb7b   : > { %p31_p2 = scmp.ge.s32.totalorder %s6215_s27, 4   ;;  %s6219_s25 = smov %s6216_s0 }
 0xb7d   :  { %33 = sbr.rel (!%p31_p2) target bundleno = 15 (0xf), region = 152 }
 0xb84   :  { %3753 = vsyncpa [#allocation3], 1 }
 0xb85   :  { %3755 = vsyncpa [#allocation3 + $0x1], 1 }
 0xb86   :  { %3756 = vsyncpa [#allocation6], 1 }
 0xb87   :  { %3757 = vsyncpa [#allocation9], 1 }
 0xb88   :  { %3758 = vsyncpa [#allocation12], 1 }
 0xb89   :  { %3759 = vsyncpa [#allocation4], 1 }
 0xb8a   :  { %3761 = vsyncpa [#allocation4 + $0x1], 1 }

// kernel: tpu_custom_call.1
= control target key start
LH: loop header
LB: loop body
LE: loop exit
PB: predicated region body
PF: predicated region fallthrough
CT: control target
= control target key end

     0   :  { %s6137_s0 = inlined_call_operand.vmem [shape: f32[32,8], index: 0, kind: input, shape index: {}]   ;;  %s6138_s1 = inlined_call_operand.hbm [shape: f32[128,128], index: 1, kind: input, shape index: {}]   ;;  %s6139_s2 = inlined_call_operand.vmem [shape: f32[1,128], index: 2, kind: input, shape index: {}]   ;;  %s6140_s3 = inlined_call_operand.hbm [shape: bf16[128,128], index: 3, kind: input, shape index: {}]   ;;  %s6141_s4 = inlined_call_operand.hbm [shape: bf16[128,128], index: 4, kind: input, shape index: {}]   ;;  %s6142_s5 = inlined_call_operand.hbm [shape: bf16[128,128], index: 5, kind: input, shape index: {}]   ;;  %s6143_s6 = inlined_call_operand.hbm [shape: bf16[128,128], index: 6, kind: input, shape index: {}]   ;;  %s6144_s7 = inlined_call_operand.vmem [shape: f32[1,128], index: 7, kind: input, shape index: {}]   ;;  %s6145_s8 = inlined_call_operand.vmem [shape: f32[1,128], index: 8, kind: input, shape index: {}]   ;;  %s6146_s9 = inlined_call_operand.vmem [shape: bf16[128,128], index: 9, kind: input, shape index: {}]   ;;  %s6147_s10 = inlined_call_operand.vmem [shape: f32[1,128], index: 10, kind: input, shape index: {}]   ;;  %s6148_s11 = inlined_call_operand.hbm [shape: bf16[128,128], index: 11, kind: input, shape index: {}]   ;;  %s6149_s12 = inlined_call_operand.vmem [shape: f32[1,128], index: 12, kind: input, shape index: {}]   ;;  %s6150_s13 = inlined_call_operand.vmem [shape: f32[1,128], index: 13, kind: input, shape index: {}]   ;;  %s6151_s14 = inlined_call_operand.vmem [shape: f32[1,128], index: 14, kind: input, shape index: {}]   ;;  %s6152_s15 = inlined_call_operand.hbm [shape: bf16[128,128], index: 15, kind: input, shape index: {}]   ;;  %s6153_s16 = inlined_call_operand.vmem [shape: f32[1,128], index: 16, kind: input, shape index: {}]   ;;  %s6154_s17 = inlined_call_operand.hbm [shape: f32[32,128], index: 17, kind: output, shape index: {}]  }
   0x1   :  { %6172 = sst [smem:[#allocation27_spill]] %s6137_s0 }
   0x2   :  { %6173 = sst [smem:[#allocation28_spill]] %s6138_s1 }
   0x3   :  { %6174 = sst [smem:[#allocation29_spill]] %s6140_s3 }
   0x4   :  { %6175 = sst [smem:[#allocation30_spill]] %s6150_s13 }
   0x5   :  { %6176 = sst [smem:[#allocation31_spill]] %s6151_s14 }
   0x6   :  { %6177 = sst [smem:[#allocation32_spill]] %s6153_s16 }
   0x7   :  { %6178 = sst [smem:[#allocation33_spill]] %s6154_s17 }
   0x8   :  { %22 = vsyncpa [#allocation3], 0 }
   0x9   :  { %23 = vsyncpa [#allocation6], 0 }
   0xa   :  { %24 = vsyncpa [#allocation9], 0 }
   0xb   :  { %25 = vsyncpa [#allocation12], 0 }
   0xc   :  { %26 = vsyncpa [#allocation4], 0 }
   0xd   :  { %28 = vsyncpa [#allocation4 + $0x1], 0  ;;  %s5133_s24 = smov 0   ;;  %s5135_s25 = smov 0  }
   0xe   :  { %s5137_s26 = smov 0   ;;  %s5139_s27 = smov 0  }
   0xf LB: > { %6179 = sst [smem:[#allocation20_spill]] %s5013_s24  ;;  %s5154_s28 = sadd.s32 4294967295, %s5025_s27   ;;  %s5025_s27 = sphi %s5139_s27, %s6215_s27   ;;  %s5021_s26 = sphi %s5137_s26, %s6217_s26   ;;  %s5017_s25 = sphi %s5135_s25, %s6219_s25   ;;  %s5013_s24 = sphi %s5133_s24, %s6218_s24  }
  0x10   : > { %6180 = sst [smem:[#allocation21_spill]] %s5021_s26  ;;  %s3863_s29 = sadd.s32 4294967294, %s5025_s27  }
  0x11   : > { %6181 = sst [smem:[#allocation22_spill]] %s5025_s27  ;;  %s5158_s0 = sadd.s32 1, %s5025_s27  }
  0x12   : > { %6182 = sst [smem:[#allocation23_spill]] %s5158_s0  ;;  %s403_s30 = sadd.s32 1, %s5021_s26 }
  0x13   : > { %s400_s18 = ssub.s32 %s5025_s27, %s5158_s0  ;;  %p413_p0 = scmp.ne.s32.totalorder %s5021_s26, %s5017_s25 }
  0x14   : > { %p401_p1 = scmp.eq.s32.totalorder %s400_s18, 0  ;;  %p414_p2 = scmp.eq.s32.totalorder %s5154_s28, 1 }
  0x15   : > { %p419_p3 = scmp.ne.s32.totalorder %s5017_s25, %s5013_s24  ;;  %p420_p4 = scmp.eq.s32.totalorder %s3863_s29, 1 }
  0x16   : > { %s5169_s19 = scalar_select %p401_p1, %s5021_s26, %s403_s30  }
  0x17   : > { %p5171_p5 = por %p414_p2, %p413_p0  ;;  %p5175_p6 = por %p420_p4, %p419_p3 }
  0x18   : > { %6183 = sst [smem:[#allocation24_spill]] %s5169_s19  ;;  %p3864_p7 = scmp.ge.s32.totalorder %s5025_s27, 1 }
  0x19   : > { %s6184_s1 = scalar_select %p5171_p5, 1, 0 }
  0x1a   : > { %s6186_s20 = scalar_select %p5175_p6, 1, 0 }
  0x1b   : > { %6185 = sst [smem:[#allocation25_spill]] %s6184_s1  ;;  %p427_p8 = scmp.lt.s32.totalorder %s5025_s27, 3 }
  0x1c   : > { %6187 = sst [smem:[#allocation26_spill]] %s6186_s20  ;;  %p6163_p9 = scmp.eq.s32.totalorder %s5154_s28, 0 }
  0x1d   : > { %p5182_p10 = pnand %p3864_p7, %p427_p8  ;;  %s5027_s22 = smov [#allocation5]  }
  0x1e   : > { %s455_s23 = sshll.u32 %s5027_s22, 4  ;;  %s5028_s30 = smov [#allocation8]   ;;  %s5188_s23 = int_to_ptr.vmem [resolvable:$true] %s455_s23 }
  0x1f   : > { %s6188_s21 = scalar_select %p5182_p10, 1, 0 }
  0x20   : > { %p4535_p11 = pneg %p5182_p10  ;;  %s481_s18 = sshll.u32 %s5028_s30, 4  ;;  %s5196_s18 = int_to_ptr.vmem [resolvable:$true] %s481_s18 }
  0x21   : > { %s5029_s19 = smov [#allocation11]   ;;  %s6190_s3 = sld [smem:[#allocation29_spill]] }
  0x22   : > { %p5192_p12 = pnand %p6163_p9, %p4535_p11  ;;  %s5198_s26 = sshll.u32 %s5029_s19, 4  ;;  %s520_s26 = int_to_ptr.vmem [resolvable:$true] %s5198_s26 }
  0x24   : > { %p5208_p0 = pneg %p5192_p12 }
  0x27   : > { %s4751_s22 = scalar_lea.hbm %s6190_s3, 1024 }
  0x28   : > { %p4752_p13 = scmp.ne.s32.totalorder %s6190_s3, %s4751_s22  ;;  %p4758_p3 = scmp.lt.u32.totalorder %s4751_s22, %s6190_s3 }
  0x2a   : > { %p4754_p1 = pnand %p5208_p0, %p4752_p13 }
  0x2c   : > { %p4755_p2 = pneg %p4754_p1 }
  0x2e   : > { %p4760_p4 = pnand %p4758_p3, %p4755_p2 }
  0x30   : > { %4763 = shalt.err (!%p4760_p4)
}
  0x31   : > { %s4764_s24 = scalar_lea.vmem %s5188_s23, 1024  ;;  %p4772_p9 = scmp.lt.s32.totalorder %s5188_s23, %s5188_s23 }
  0x32   : > { %p4765_p7 = scmp.ne.s32.totalorder %s5188_s23, %s4764_s24  ;;  %p4773_p6 = scmp.lt.s32.totalorder %s4764_s24, %s4764_s24 }
  0x34   : > { %p4767_p8 = pnand %p4765_p7, %p5208_p0  ;;  %p4774_p13 = por %p4773_p6, %p4772_p9 }
  0x36   : > { %p4768_p11 = pneg %p4767_p8 }
  0x38   : > { %p4775_p1 = pnand %p4774_p13, %p4768_p11 }
  0x3a   : > { %4778 = shalt.err (!%p4775_p1)
}
  0x3b   : > { %s6168_s27 = smov 64   ;;  %s6170_s0 = smov 4  }
  0x3c   : > { %4541 = dma.hbm_to_vmem [thread:$0]  (!%p5192_p12), %s6190_s3, 1024, %s5188_s23, [#allocation6], %s6168_s27, %s6168_s27, %s6170_s0  }
  0x3d   : > { %s4779_s24 = scalar_lea.hbm %s6142_s5, 1024 }
  0x3e   : > { %p4780_p6 = scmp.ne.s32.totalorder %s6142_s5, %s4779_s24  ;;  %p4786_p3 = scmp.lt.u32.totalorder %s4779_s24, %s6142_s5 }
  0x40   : > { %p4782_p9 = pnand %p4780_p6, %p5208_p0 }
  0x42   : > { %p4783_p2 = pneg %p4782_p9 }
  0x44   : > { %p4788_p4 = pnand %p4786_p3, %p4783_p2 }
  0x46   : > { %4791 = shalt.err (!%p4788_p4)
}
  0x47   : > { %s4792_s23 = scalar_lea.vmem %s5196_s18, 1024  ;;  %p4800_p13 = scmp.lt.s32.totalorder %s5196_s18, %s5196_s18 }
  0x48   : > { %p4793_p7 = scmp.ne.s32.totalorder %s5196_s18, %s4792_s23  ;;  %p4801_p1 = scmp.lt.s32.totalorder %s4792_s23, %s4792_s23 }
  0x4a   : > { %p4795_p8 = pnand %p4793_p7, %p5208_p0  ;;  %p4802_p6 = por %p4801_p1, %p4800_p13 }
  0x4c   : > { %p4796_p11 = pneg %p4795_p8 }
  0x4e   : > { %p4803_p9 = pnand %p4802_p6, %p4796_p11 }
  0x50   : > { %4806 = shalt.err (!%p4803_p9)
}
  0x51   : > { %4547 = dma.hbm_to_vmem [thread:$0]  (!%p5192_p12), %s6142_s5, 1024, %s5196_s18, [#allocation9], %s6168_s27, %s6168_s27, %s6170_s0  }
  0x52   : > { %s4807_s20 = scalar_lea.hbm %s6148_s11, 1024 }
  0x53   : > { %p4808_p2 = scmp.ne.s32.totalorder %s6148_s11, %s4807_s20  ;;  %p4814_p7 = scmp.lt.u32.totalorder %s4807_s20, %s6148_s11 }
  0x55   : > { %p4810_p3 = pnand %p4808_p2, %p5208_p0 }
  0x57   : > { %p4811_p4 = pneg %p4810_p3 }
  0x59   : > { %p4816_p8 = pnand %p4814_p7, %p4811_p4 }
  0x5b   : > { %4819 = shalt.err (!%p4816_p8)
}
  0x5c   : > { %s4820_s23 = scalar_lea.vmem %s520_s26, 1024  ;;  %p4828_p6 = scmp.lt.s32.totalorder %s520_s26, %s520_s26 }
  0x5d   : > { %p4821_p11 = scmp.ne.s32.totalorder %s520_s26, %s4820_s23  ;;  %p4829_p9 = scmp.lt.s32.totalorder %s4820_s23, %s4820_s23 }
  0x5f   : > { %p4823_p13 = pnand %p4821_p11, %p5208_p0  ;;  %p4830_p5 = por %p4829_p9, %p4828_p6 }
  0x61   : > { %p4824_p1 = pneg %p4823_p13 }
  0x63   : > { %p4831_p10 = pnand %p4830_p5, %p4824_p1 }
  0x65   : > { %4834 = shalt.err (!%p4831_p10)
}
  0x66   : > { %4553 = dma.hbm_to_vmem [thread:$0]  (!%p5192_p12), %s6148_s11, 1024, %s520_s26, [#allocation12], %s6168_s27, %s6168_s27, %s6170_s0  }
  0x67   : > { %s5032_s14 = smov [#allocation2]   ;;  %s6192_s22 = sld [smem:[#allocation28_spill]] }
  0x68   : > { %s439_s16 = sshll.u32 %s5032_s14, 4  ;;  %s440_s16 = int_to_ptr.vmem [resolvable:$true] %s439_s16 }
  0x6d   : > { %s4835_s30 = scalar_lea.hbm %s6192_s22, 2048 }
  0x6e   : > { %p4836_p5 = scmp.ne.s32.totalorder %s6192_s22, %s4835_s30  ;;  %p4842_p3 = scmp.lt.u32.totalorder %s4835_s30, %s6192_s22 }
  0x70   : > { %p4838_p10 = pnand %p4836_p5, %p5208_p0 }
  0x72   : > { %p4839_p2 = pneg %p4838_p10 }
  0x74   : > { %p4844_p4 = pnand %p4842_p3, %p4839_p2 }
  0x76   : > { %4847 = shalt.err (!%p4844_p4)
}
  0x77   : > { %s4848_s26 = scalar_lea.vmem %s440_s16, 2048  ;;  %p4856_p13 = scmp.lt.s32.totalorder %s440_s16, %s440_s16 }
  0x78   : > { %p4849_p7 = scmp.ne.s32.totalorder %s440_s16, %s4848_s26  ;;  %p4857_p1 = scmp.lt.s32.totalorder %s4848_s26, %s4848_s26 }
  0x7a   : > { %p4851_p8 = pnand %p4849_p7, %p5208_p0  ;;  %p4858_p6 = por %p4857_p1, %p4856_p13 }
  0x7c   : > { %p4852_p11 = pneg %p4851_p8 }
  0x7e   : > { %p4859_p9 = pnand %p4858_p6, %p4852_p11 }
  0x80   : > { %4862 = shalt.err (!%p4859_p9)
}
  0x81   : > { %s5033_s18 = smov 128   ;;  %s5034_s13 = smov 8  }
  0x82   : > { %4538 = dma.hbm_to_vmem [thread:$0]  (!%p5192_p12), %s6192_s22, 2048, %s440_s16, [#allocation3], %s5033_s18, %s5033_s18, %s5034_s13  }
  0x83   : > { %s5035_s1 = smov [#allocation7]   ;;  %s5036_s30 = smov [#allocation10]  }
  0x84   : > { %s468_s20 = sshll.u32 %s5035_s1, 4  ;;  %s494_s19 = sshll.u32 %s5036_s30, 4  ;;  %s469_s20 = int_to_ptr.vmem [resolvable:$true] %s468_s20  ;;  %s5298_s19 = int_to_ptr.vmem [resolvable:$true] %s494_s19 }
  0x85   : > { %s4863_s26 = scalar_lea.hbm %s6141_s4, 1024 }
  0x86   : > { %p4864_p5 = scmp.ne.s32.totalorder %s6141_s4, %s4863_s26  ;;  %p4870_p3 = scmp.lt.u32.totalorder %s4863_s26, %s6141_s4 }
  0x88   : > { %p4866_p10 = pnand %p4864_p5, %p5208_p0 }
  0x8a   : > { %p4867_p2 = pneg %p4866_p10 }
  0x8c   : > { %p4872_p4 = pnand %p4870_p3, %p4867_p2 }
  0x8e   : > { %4875 = shalt.err (!%p4872_p4)
}
  0x8f   : > { %s4876_s18 = scalar_lea.vmem %s469_s20, 1024  ;;  %p4884_p13 = scmp.lt.s32.totalorder %s469_s20, %s469_s20 }
  0x90   : > { %p4877_p7 = scmp.ne.s32.totalorder %s469_s20, %s4876_s18  ;;  %p4885_p1 = scmp.lt.s32.totalorder %s4876_s18, %s4876_s18 }
  0x92   : > { %p4879_p8 = pnand %p4877_p7, %p5208_p0  ;;  %p4886_p6 = por %p4885_p1, %p4884_p13 }
  0x94   : > { %p4880_p11 = pneg %p4879_p8 }
  0x96   : > { %p4887_p9 = pnand %p4886_p6, %p4880_p11 }
  0x98   : > { %4890 = shalt.err (!%p4887_p9)
}
  0x99   : > { %s6193_s27 = smov 4   ;;  %s6194_s0 = smov 64  }
  0x9a   : > { %4544 = dma.hbm_to_vmem [thread:$0]  (!%p5192_p12), %s6141_s4, 1024, %s469_s20, [#allocation6], %s6194_s0, %s6194_s0, %s6193_s27  }
  0x9b   : > { %s4891_s24 = scalar_lea.hbm %s6143_s6, 1024 }
  0x9c   : > { %p4892_p5 = scmp.ne.s32.totalorder %s6143_s6, %s4891_s24  ;;  %p4898_p3 = scmp.lt.u32.totalorder %s4891_s24, %s6143_s6 }
  0x9e   : > { %p4894_p10 = pnand %p4892_p5, %p5208_p0 }
  0xa0   : > { %p4895_p2 = pneg %p4894_p10 }
  0xa2   : > { %p4900_p4 = pnand %p4898_p3, %p4895_p2 }
  0xa4   : > { %4903 = shalt.err (!%p4900_p4)
}
  0xa5   : > { %s4904_s20 = scalar_lea.vmem %s5298_s19, 1024  ;;  %p4912_p13 = scmp.lt.s32.totalorder %s5298_s19, %s5298_s19 }
  0xa6   : > { %p4905_p7 = scmp.ne.s32.totalorder %s5298_s19, %s4904_s20  ;;  %p4913_p1 = scmp.lt.s32.totalorder %s4904_s20, %s4904_s20 }
  0xa8   : > { %p4907_p8 = pnand %p4905_p7, %p5208_p0  ;;  %p4914_p6 = por %p4913_p1, %p4912_p13 }
  0xaa   : > { %p4908_p11 = pneg %p4907_p8 }
  0xac   : > { %p4915_p9 = pnand %p4914_p6, %p4908_p11 }
  0xae   : > { %4918 = shalt.err (!%p4915_p9)
}
  0xaf   : > { %4550 = dma.hbm_to_vmem [thread:$0]  (!%p5192_p12), %s6143_s6, 1024, %s5298_s19, [#allocation9], %s6194_s0, %s6194_s0, %s6193_s27  }
  0xb0   : > { %s5037_s14 = smov [#allocation13]   ;;  %s4919_s23 = scalar_lea.hbm %s6152_s15, 1024 }
  0xb1   : > { %s541_s1 = sshll.u32 %s5037_s14, 4  ;;  %p4920_p5 = scmp.ne.s32.totalorder %s6152_s15, %s4919_s23  ;;  %s542_s1 = int_to_ptr.vmem [resolvable:$true] %s541_s1 }
  0xb2   : > { %p4926_p3 = scmp.lt.u32.totalorder %s4919_s23, %s6152_s15 }
  0xb3   : > { %p4922_p10 = pnand %p4920_p5, %p5208_p0 }
  0xb5   : > { %p4923_p2 = pneg %p4922_p10 }
  0xb7   : > { %p4928_p4 = pnand %p4926_p3, %p4923_p2 }
  0xb9   : > { %4931 = shalt.err (!%p4928_p4)
}
  0xba   : > { %s4932_s19 = scalar_lea.vmem %s542_s1, 1024  ;;  %p4940_p13 = scmp.lt.s32.totalorder %s542_s1, %s542_s1 }
  0xbb   : > { %p4933_p7 = scmp.ne.s32.totalorder %s542_s1, %s4932_s19  ;;  %p4941_p1 = scmp.lt.s32.totalorder %s4932_s19, %s4932_s19 }
  0xbd   : > { %p4935_p8 = pnand %p4933_p7, %p5208_p0  ;;  %p4942_p6 = por %p4941_p1, %p4940_p13 }
  0xbf   : > { %p4936_p11 = pneg %p4935_p8 }
  0xc1   : > { %p4943_p9 = pnand %p4942_p6, %p4936_p11 }
  0xc3   : > { %4946 = shalt.err (!%p4943_p9)
}
  0xc4   : > { %4556 = dma.hbm_to_vmem [thread:$0]  (!%p5192_p12), %s6152_s15, 1024, %s542_s1, [#allocation12], %s6194_s0, %s6194_s0, %s6193_s27  }
  0xc5   : > { %p6195_p5 = scmp.ne.s32.totalorder %s6188_s21, 0 }
  0xc6   : > { %p6196_p0 = scmp.eq.s32.totalorder (!%p6195_p5), %s5154_s28, 0 }
  0xc7   : > { %569 = sbr.rel (%p6195_p5) target bundleno = 2921 (0xb69), region = 88 }
  0xce   : > { %4992 = dma.done.wait (%p6196_p0), [#allocation3], 2048   ;;  %p6197_p10 = pmov %p6196_p0 }
  0xcf   : > { %p6198_p2 = pmov %p6196_p0 }
  0xd0   : > { %4994 = vsyncadd (%p6197_p10), [#allocation3], 4294965248 }
  0xd1   : > { %4996 = dma.done.wait (%p6198_p2), [#allocation6], 2048   ;;  %p6199_p3 = pmov %p6196_p0 }
  0xd2   : > { %p6200_p4 = pmov %p6196_p0 }
  0xd3   : > { %4998 = vsyncadd (%p6199_p3), [#allocation6], 4294965248 }
  0xd4   : > { %5000 = dma.done.wait (%p6200_p4), [#allocation9], 2048   ;;  %p6201_p12 = pmov %p6196_p0 }
  0xd5   : > { %p6202_p7 = pmov %p6196_p0 }
  0xd6   : > { %5002 = vsyncadd (%p6201_p12), [#allocation9], 4294965248 }
  0xd7   : > { %5004 = dma.done.wait (%p6202_p7), [#allocation12], 2048   ;;  %p6203_p8 = pmov %p6196_p0 }
  0xd8   : > { %s3882_s17 = sshll.u32 %s5154_s28, 1  ;;  %v676_v0 = vlaneseq  ;;  %s6204_s0 = sld [smem:[#allocation27_spill]]  ;;  %v4623_v10 = vld [vmem:[#allocation5] sm:$0xff]   ;;  %v4625_v15 = vld [vmem:[#allocation5 + $0x8] sm:$0xff]   ;;  %v4627_v18 = vld [vmem:[#allocation5 + $0x10] sm:$0xff]   ;;  %vm5039_vm0 = vmmov 0  }
  0xd9   : > { %5006 = vsyncadd (%p6203_p8), [#allocation12], 4294965248  ;;  %p646_p11 = scmp.lt.s32.totalorder %s3882_s17, 3  ;;  %v4624_v12 = vld [vmem:[#allocation7] sm:$0xff]   ;;  %v4626_v16 = vld [vmem:[#allocation7 + $0x8] sm:$0xff]   ;;  %4125 = vmatprep.subr.bf16.mxu0 %v4623_v10  ;;  %vm2223_vm1 = vcmask 1043456  }
  0xda   : > { %v5388_v1 = vshrl.u32 %v676_v0, 7  ;;  %4157 = vmatprep.subr.bf16.mxu1 %v4624_v12  ;;  %4126 = vmatpush3.bf16.msra.mxu0 %v4623_v10  ;;  %v4628_v22 = vld [vmem:[#allocation7 + $0x10] sm:$0xff]   ;;  %v4629_v23 = vld [vmem:[#allocation5 + $0x18] sm:$0xff]   ;;  %v4631_v28 = vld [vmem:[#allocation5 + $0x20] sm:$0xff]   ;;  %vm2027_vm2 = vcmask 64512   ;;  %vm3160_vm3 = vcmask 1041409  }
  0xdb   : > { %s6221_s17 = smov (!%p646_p11, %s3882_s17), 3  ;;  %4158 = vmatpush3.bf16.msra.mxu1 %v4624_v12  ;;  %4127 = vmatprep.subr.bf16.mxu0 %v4625_v15  ;;  %v4630_v27 = vld [vmem:[#allocation7 + $0x18] sm:$0xff]   ;;  %v4632_v31 = vld [vmem:[#allocation7 + $0x20] sm:$0xff]   ;;  %v4633_v32 = vld [vmem:[#allocation5 + $0x28] sm:$0xff]   ;;  %vm3163_vm4 = vcmask 1042434   ;;  %vm3166_vm5 = vcmask 1043459  }
  0xdc   : > { %v697_v2 = vsub.s32 2, %v5388_v1  ;;  %v683_v3 = vsub.s32 0, %v5388_v1  ;;  %s3883_s21 = sshll.u32 %s6221_s17, 3  ;;  %v704_v4 = vsub.s32 3, %v5388_v1  ;;  %v690_v5 = vsub.s32 1, %v5388_v1  ;;  %4159 = vmatprep.subr.bf16.mxu1 %v4626_v16  ;;  %v4634_v35 = vld [vmem:[#allocation7 + $0x28] sm:$0xff]  }
  0xdd   : > { %v718_v9 = vsub.s32 5, %v5388_v1  ;;  %v711_v11 = vsub.s32 4, %v5388_v1  ;;  %v732_v17 = vsub.s32 7, %v5388_v1  ;;  %v725_v21 = vsub.s32 6, %v5388_v1  ;;  %v4635_v36 = vld [vmem:[#allocation5 + $0x30] sm:$0xff]   ;;  %v4637_v40 = vld [vmem:[#allocation5 + $0x38] sm:$0xff]  }
  0xde   : > { %s5395_s14 = scalar_lea.vmem %s6204_s0, %s3883_s21  ;;  %4128 = vmatpush3.bf16.msra.mxu0 %v4625_v15  ;;  %v4636_v39 = vld [vmem:[#allocation7 + $0x30] sm:$0xff]   ;;  %v4638_v43 = vld [vmem:[#allocation7 + $0x38] sm:$0xff]   ;;  %v4639_v44 = vld [vmem:[#allocation8] sm:$0xff]   ;;  %vm3169_vm6 = vcmask 1044484   ;;  %vm3172_vm7 = vcmask 1045509   ;;  %vm3175_vm8 = vcmask 1046534  }
  0xdf   : > { %v679_v6 = vld [vmem:[%s5395_s14] sm:$0xff]  ;;  %4160 = vmatpush3.bf16.msra.mxu1 %v4626_v16  ;;  %4129 = vmatprep.subr.bf16.mxu0 %v4627_v18  ;;  %v680_v26 = vld [vmem:[%s5395_s14 + $0x8] sm:$0xff]  ;;  %v655_v48 = vld [vmem:[#allocation2 + $0x10] sm:$0xff]  ;;  %vm3177_vm9 = vcmask 1047559   ;;  %vm3200_vm10 = vcmask 1046528   ;;  %s6205_s17 = sld [smem:[#allocation30_spill]] }
  0xe0   : > { %v698_v7 = vrot.slane %v679_v6, %v697_v2  ;;  %v684_v8 = vrot.slane %v679_v6, %v683_v3  ;;  %v705_v13 = vrot.slane %v679_v6, %v704_v4  ;;  %v691_v14 = vrot.slane %v679_v6, %v690_v5  ;;  %4161 = vmatprep.subr.bf16.mxu1 %v4628_v22  ;;  %v5408_v45 = vld [vmem:[%s6139_s2] ss:$0 sm:$0xff]  ;;  %v656_v53 = vld [vmem:[#allocation2 + $0x18] sm:$0xff]  ;;  %v654_v55 = vld [vmem:[#allocation2 + $0x8] sm:$0xff]  ;;  %s6206_s27 = sld [smem:[#allocation31_spill]]  ;;  %s642_s0 = sand.u32 1, %s5017_s25  }
  0xe1   : > { %v719_v19 = vrot.slane %v679_v6, %v718_v9  ;;  %v712_v20 = vrot.slane %v679_v6, %v711_v11  ;;  %v733_v24 = vrot.slane %v679_v6, %v732_v17  ;;  %v726_v25 = vrot.slane %v679_v6, %v725_v21  ;;  %v653_v51 = vld [vmem:[#allocation2] sm:$0xff]  ;;  %v658_v63 = vld [vmem:[#allocation2 + $0x28] sm:$0xff]  ;;  %s3881_s14 = sshll.u32 %s642_s0, 4  ;;  %s6207_s24 = sld [smem:[#allocation32_spill]] }
  0xe2   : > { %700 = vbcast.lane.b32.xlu1 %v698_v7, 256  ;;  %686 = vbcast.lane.b32.xlu0 %v684_v8, 256  ;;  %v747_v29 = vrot.slane %v680_v26, %v690_v5  ;;  %v740_v30 = vrot.slane %v680_v26, %v683_v3  ;;  %v761_v33 = vrot.slane %v680_v26, %v704_v4  ;;  %v4640_v7 = vld [vmem:[#allocation8 + $0x8] sm:$0xff]   ;;  %s644_s23 = scalar_lea.vmem [#allocation14], %s3881_s14  ;;  %s6208_s26 = sld [smem:[#allocation25_spill]] }
  0xe3   : > { %4130 = vmatpush3.bf16.msra.mxu0 %v4627_v18  ;;  %4162 = vmatpush3.bf16.msra.mxu1 %v4628_v22  ;;  %v754_v34 = vrot.slane %v680_v26, %v697_v2  ;;  %v775_v37 = vrot.slane %v680_v26, %v718_v9  ;;  %v768_v38 = vrot.slane %v680_v26, %v711_v11  ;;  %v657_v2 = vld [vmem:[#allocation2 + $0x20] sm:$0xff]  ;;  %v660_v11 = vld [vmem:[#allocation2 + $0x38] sm:$0xff]  ;;  %s3732_s3 = sshll.u32 %s644_s23, 4  ;;  %s3969_s16 = sshll.u32 %s5154_s28, 8  ;;  %s6089_s3 = int_to_ptr.vmem [resolvable:$true] %s3732_s3 }
  0xe4   : > { %4131 = vmatprep.subr.bf16.mxu0 %v4629_v23  ;;  %4163 = vmatprep.subr.bf16.mxu1 %v4630_v27  ;;  %v789_v41 = vrot.slane %v680_v26, %v732_v17  ;;  %v782_v42 = vrot.slane %v680_v26, %v725_v21  ;;  %v4641_v17 = vld [vmem:[#allocation8 + $0x10] sm:$0xff]   ;;  %v662_v21 = vld [vmem:[#allocation2 + $0x48] sm:$0xff]  ;;  %s6209_s18 = sld [smem:[#allocation33_spill]]  ;;  %s4947_s28 = scalar_lea.vmem %s6089_s3, 256 }
  0xe5   : > { %p4948_p13 = scmp.ne.s32.totalorder %s6089_s3, %s4947_s28  ;;  %s5040_s21 = smov [#allocation14]  }
  0xe6   : > { %707 = vbcast.lane.b32.xlu1 %v705_v13, 256  ;;  %693 = vbcast.lane.b32.xlu0 %v691_v14, 256  ;;  %v659_v13 = vld [vmem:[#allocation2 + $0x30] sm:$0xff]  ;;  %s4951_s29 = sshll.u32 %s5040_s21, 4  ;;  %s4952_s29 = int_to_ptr.vmem [resolvable:$false] %s4951_s29 }
  0xe7   : > { %4132 = vmatpush3.bf16.msra.mxu0 %v4629_v23  ;;  %4164 = vmatpush3.bf16.msra.mxu1 %v4630_v27  ;;  %v661_v23 = vld [vmem:[#allocation2 + $0x40] sm:$0xff]  ;;  %v4642_v27 = vld [vmem:[#allocation8 + $0x18] sm:$0xff]   ;;  %p4954_p5 = scmp.lt.s32.totalorder %s6089_s3, %s4952_s29 }
  0xe8   : > { %4133 = vmatprep.subr.bf16.mxu0 %v4631_v28  ;;  %4165 = vmatprep.subr.bf16.mxu1 %v4632_v31  ;;  %p6210_p1 = scmp.ne.s32.totalorder %s6208_s26, 0 }
  0xea   : > { %721 = vbcast.lane.b32.xlu1 %v719_v19, 256  ;;  %714 = vbcast.lane.b32.xlu0 %v712_v20, 256  ;;  %s6094_s13 = scalar_lea.hbm %s6209_s18, %s3969_s16  ;;  %p4949_p6 = pnand %p4948_p13, %p6210_p1 }
  0xeb   : > { %4134 = vmatpush3.bf16.msra.mxu0 %v4631_v28  ;;  %4166 = vmatpush3.bf16.msra.mxu1 %v4632_v31  ;;  %v664_v31 = vld [vmem:[#allocation2 + $0x58] sm:$0xff] }
  0xec   : > { %4135 = vmatprep.subr.bf16.mxu0 %v4633_v32  ;;  %4167 = vmatprep.subr.bf16.mxu1 %v4634_v35  ;;  %p4950_p9 = pneg %p4949_p6 }
  0xee   : > { %735 = vbcast.lane.b32.xlu1 %v733_v24, 256  ;;  %728 = vbcast.lane.b32.xlu0 %v726_v25, 256 }
  0xef   : > { %4136 = vmatpush3.bf16.msra.mxu0 %v4633_v32  ;;  %4168 = vmatpush3.bf16.msra.mxu1 %v4634_v35 }
  0xf0   : > { %4137 = vmatprep.subr.bf16.mxu0 %v4635_v36  ;;  %4169 = vmatprep.subr.bf16.mxu1 %v4636_v39 }
  0xf2   : > { %749 = vbcast.lane.b32.xlu1 %v747_v29, 256  ;;  %742 = vbcast.lane.b32.xlu0 %v740_v30, 256 }
  0xf3   : > { %4138 = vmatpush3.bf16.msra.mxu0 %v4635_v36  ;;  %4170 = vmatpush3.bf16.msra.mxu1 %v4636_v39 }
  0xf4   : > { %4139 = vmatprep.subr.bf16.mxu0 %v4637_v40  ;;  %4171 = vmatprep.subr.bf16.mxu1 %v4638_v43 }
  0xf6   : > { %763 = vbcast.lane.b32.xlu1 %v761_v33, 256  ;;  %756 = vbcast.lane.b32.xlu0 %v754_v34, 256  ;;  %v663_v33 = vld [vmem:[#allocation2 + $0x50] sm:$0xff] }
  0xf7   : > { %4140 = vmatpush3.bf16.msra.mxu0 %v4637_v40  ;;  %4172 = vmatpush3.bf16.msra.mxu1 %v4638_v43  ;;  %v665_v43 = vld [vmem:[#allocation2 + $0x60] sm:$0xff] }
  0xf8   : > { %4189 = vmatprep.subr.bf16.mxu0 %v4639_v44 }
  0xfa   : > { %777 = vbcast.lane.b32.xlu1 %v775_v37, 256  ;;  %770 = vbcast.lane.b32.xlu0 %v768_v38, 256  ;;  %v4643_v37 = vld [vmem:[#allocation8 + $0x20] sm:$0xff]  }
  0xfe   : > { %791 = vbcast.lane.b32.xlu1 %v789_v41, 256  ;;  %784 = vbcast.lane.b32.xlu0 %v782_v42, 256  ;;  %v666_v41 = vld [vmem:[#allocation2 + $0x68] sm:$0xff] }
 0x154   : > { %v701_v46 = vpop.permute.xlu1 %700  ;;  %v687_v47 = vpop.permute.xlu0 %686 }
 0x155   : > { %v802_v49 = vmul.f32 %v5408_v45, %v701_v46  ;;  %v800_v50 = vmul.f32 %v5408_v45, %v687_v47 }
 0x157   : > { %v5414_v58 = vadd.f32 %v802_v49, %v655_v48  ;;  %v5416_v59 = vadd.f32 %v800_v50, %v653_v51  ;;  %v4644_v48 = vld [vmem:[#allocation8 + $0x28] sm:$0xff]  }
 0x158   : > { %v708_v52 = vpop.permute.xlu1 %707  ;;  %v694_v54 = vpop.permute.xlu0 %693 }
 0x159   : > { %v803_v56 = vmul.f32 %v5408_v45, %v708_v52  ;;  %v801_v57 = vmul.f32 %v5408_v45, %v694_v54  ;;  %v668_v52 = vld [vmem:[#allocation2 + $0x78] sm:$0xff]  ;;  %v667_v54 = vld [vmem:[#allocation2 + $0x70] sm:$0xff] }
 0x15b   : > { %v5418_v60 = vadd.f32 %v803_v56, %v656_v53  ;;  %v5420_v61 = vadd.f32 %v801_v57, %v654_v55 }
 0x15c   : > { %v722_v62 = vpop.permute.xlu1 %721  ;;  %v715_v1 = vpop.permute.xlu0 %714 }
 0x15d   : > { %v805_v3 = vmul.f32 %v5408_v45, %v722_v62  ;;  %v804_v4 = vmul.f32 %v5408_v45, %v715_v1  ;;  %v5426_v5 = vpack.c.bf16 %v5420_v61, %v5416_v59  ;;  %v5430_v6 = vpack.c.bf16 %v5418_v60, %v5414_v58  ;;  %v4645_v62 = vld [vmem:[#allocation8 + $0x30] sm:$0xff]  }
 0x15f   : > { %v5432_v8 = vadd.f32 %v805_v3, %v658_v63  ;;  %v5434_v9 = vadd.f32 %v804_v4, %v657_v2  ;;  %4141 = vmatprep.mubr.bf16.mxu0 %v5426_v5  ;;  %4173 = vmatprep.mubr.bf16.mxu1 %v5426_v5  ;;  %v4646_v3 = vld [vmem:[#allocation8 + $0x38] sm:$0xff]  }
 0x160   : > { %4142 = vmatmul.mubr.bf16.vlgmr.msra.gmra.mrb[0].mxu0 %v5430_v6  ;;  %4174 = vmatmul.mubr.bf16.vlgmr.msra.gmra.mrb[0].mxu1 %v5430_v6  ;;  %v736_v10 = vpop.permute.xlu1 %735  ;;  %v729_v12 = vpop.permute.xlu0 %728 }
 0x161   : > { %v807_v14 = vmul.f32 %v5408_v45, %v736_v10  ;;  %v806_v15 = vmul.f32 %v5408_v45, %v729_v12  ;;  %4190 = vmatpush3.bf16.msra.mxu0 %v4639_v44  ;;  %v5444_v16 = vpack.c.bf16 %v5432_v8, %v5434_v9 }
 0x162   : > { %4191 = vmatprep.subr.bf16.mxu0 %v4640_v7 }
 0x163   : > { %v5446_v18 = vadd.f32 %v807_v14, %v660_v11  ;;  %v5448_v19 = vadd.f32 %v806_v15, %v659_v13  ;;  %4145 = vmatprep.mubr.bf16.mxu0 %v5444_v16  ;;  %4177 = vmatprep.mubr.bf16.mxu1 %v5444_v16 }
 0x164   : > { %v750_v20 = vpop.permute.xlu1 %749  ;;  %v743_v22 = vpop.permute.xlu0 %742 }
 0x165   : > { %v809_v24 = vmul.f32 %v5408_v45, %v750_v20  ;;  %v808_v25 = vmul.f32 %v5408_v45, %v743_v22  ;;  %4192 = vmatpush3.bf16.msra.mxu0 %v4640_v7  ;;  %v835_v26 = vpack.c.bf16 %v5446_v18, %v5448_v19 }
 0x166   : > { %4193 = vmatprep.subr.bf16.mxu0 %v4641_v17 }
 0x167   : > { %v5456_v28 = vadd.f32 %v809_v24, %v662_v21  ;;  %v5458_v29 = vadd.f32 %v808_v25, %v661_v23 }
 0x168   : > { %4146 = vmatmul.mubr.bf16.gmra.mrb[4].mxu0 %v835_v26  ;;  %4178 = vmatmul.mubr.bf16.gmra.mrb[4].mxu1 %v835_v26  ;;  %v764_v30 = vpop.permute.xlu1 %763  ;;  %v757_v32 = vpop.permute.xlu0 %756 }
 0x169   : > { %v811_v34 = vmul.f32 %v5408_v45, %v764_v30  ;;  %v810_v35 = vmul.f32 %v5408_v45, %v757_v32  ;;  %4194 = vmatpush3.bf16.msra.mxu0 %v4641_v17  ;;  %v836_v36 = vpack.c.bf16 %v5456_v28, %v5458_v29 }
 0x16a   : > { %4195 = vmatprep.subr.bf16.mxu0 %v4642_v27 }
 0x16b   : > { %v5464_v38 = vadd.f32 %v811_v34, %v664_v31  ;;  %v5466_v39 = vadd.f32 %v810_v35, %v663_v33  ;;  %4149 = vmatprep.mubr.bf16.mxu0 %v836_v36  ;;  %4181 = vmatprep.mubr.bf16.mxu1 %v836_v36 }
 0x16c   : > { %v778_v40 = vpop.permute.xlu1 %777  ;;  %v771_v42 = vpop.permute.xlu0 %770 }
 0x16d   : > { %v813_v44 = vmul.f32 %v5408_v45, %v778_v40  ;;  %v812_v46 = vmul.f32 %v5408_v45, %v771_v42  ;;  %4196 = vmatpush3.bf16.msra.mxu0 %v4642_v27  ;;  %v837_v47 = vpack.c.bf16 %v5464_v38, %v5466_v39 }
 0x16e   : > { %4197 = vmatprep.subr.bf16.mxu0 %v4643_v37 }
 0x16f   : > { %v5472_v49 = vadd.f32 %v813_v44, %v666_v41  ;;  %v5474_v50 = vadd.f32 %v812_v46, %v665_v43 }
 0x170   : > { %4150 = vmatmul.mubr.bf16.gmra.mrb[8].mxu0 %v837_v47  ;;  %v792_v51 = vpop.permute.xlu1 %791  ;;  %v785_v53 = vpop.permute.xlu0 %784  ;;  %4182 = vmatmul.mubr.bf16.gmra.mrb[8].mxu1 %v837_v47 }
 0x171   : > { %v815_v55 = vmul.f32 %v5408_v45, %v792_v51  ;;  %v814_v56 = vmul.f32 %v5408_v45, %v785_v53  ;;  %4198 = vmatpush3.bf16.msra.mxu0 %v4643_v37  ;;  %v838_v57 = vpack.c.bf16 %v5472_v49, %v5474_v50  ;;  %v5038_v45 = vmov 0.0  }
 0x172   : > { %4199 = vmatprep.subr.bf16.mxu0 %v4644_v48  ;;  %4221 = vmatprep.subr.bf16.mxu1 %v5038_v45 }
 0x173   : > { %v5480_v63 = vadd.f32 %v815_v55, %v668_v52  ;;  %v5482_v1 = vadd.f32 %v814_v56, %v667_v54  ;;  %4153 = vmatprep.mubr.bf16.mxu0 %v838_v57  ;;  %4185 = vmatprep.mubr.bf16.mxu1 %v838_v57 }
 0x175   : > { %4200 = vmatpush3.bf16.msra.mxu0 %v4644_v48  ;;  %v839_v2 = vpack.c.bf16 %v5480_v63, %v5482_v1 }
 0x176   : > { %4201 = vmatprep.subr.bf16.mxu0 %v4645_v62 }
 0x178   : > { %4154 = vmatmul.mubr.bf16.gmra.mrb[12].mxu0 %v839_v2  ;;  %4186 = vmatmul.mubr.bf16.gmra.mrb[12].mxu1 %v839_v2 }
 0x179   : > { %4202 = vmatpush3.bf16.msra.mxu0 %v4645_v62  ;;  %4205 = vmatprep.mubr.bf16.mxu0 %v5426_v5 }
 0x17a   : > { %4203 = vmatprep.subr.bf16.mxu0 %v4646_v3  ;;  %4223 = vmatprep.mubr.msk.bf16.mxu1 %vm5039_vm0, %v5038_v45 }
 0x17d   : > { %4204 = vmatpush3.bf16.msra.mxu0 %v4646_v3 }
 0x17e   : > { %4245 = vmatprep.subr.bf16.mxu0 %v5038_v45 }
 0x180   : > { %4206 = vmatmul.mubr.bf16.vlgmr.msra.gmra.mrb[16].mxu0 %v5430_v6 }
 0x181   : > { %4209 = vmatprep.mubr.bf16.mxu0 %v5444_v16 }
 0x188   : > { %4210 = vmatmul.mubr.bf16.gmra.mrb[20].mxu0 %v835_v26 }
 0x189   : > { %4213 = vmatprep.mubr.bf16.mxu0 %v836_v36 }
 0x190   : > { %4214 = vmatmul.mubr.bf16.gmra.mrb[24].mxu0 %v837_v47 }
 0x191   : > { %4217 = vmatprep.mubr.bf16.mxu0 %v838_v57 }
 0x198   : > { %4218 = vmatmul.mubr.bf16.gmra.mrb[28].mxu0 %v839_v2 }
 0x199   : > { %4247 = vmatprep.mubr.msk.bf16.mxu0 %vm5039_vm0, %v5038_v45 }
 0x233   : > { %v4143_v4 = vpop.f32.mrb[0].mxu0  ;;  %v4175_v5 = vpop.f32.mrb[0].mxu1 }
 0x234   : > { %v938_v6 = vpop.f32.mrb[1].mxu0  ;;  %v1099_v7 = vpop.f32.mrb[1].mxu1  ;;  %v1341_v37 = vpack.c.bf16 %v4175_v5, %v4175_v5  ;;  %v1325_v51 = vpack.c.bf16 %v4143_v4, %v4143_v4 }
 0x235   : > { %v1339_v10 = vpack.c.bf16 %v1099_v7, %v1099_v7  ;;  %v5495_v11 = vpop.f32.mrb[2].mxu0  ;;  %v4176_v12 = vpop.f32.mrb[2].mxu1  ;;  %v1323_v17 = vpack.c.bf16 %v938_v6, %v938_v6 }
 0x236   : > { %v941_v13 = vpop.f32.mrb[3].mxu0  ;;  %v1102_v14 = vpop.f32.mrb[3].mxu1  ;;  %v1342_v54 = vpack.c.bf16 %v4176_v12, %v4176_v12  ;;  %v1326_v5 = vpack.c.bf16 %v5495_v11, %v5495_v11 }
 0x237   : > { %4222 = vmatpush3.bf16.xpose.msra.mxu1 %v1339_v10  ;;  %v1340_v22 = vpack.c.bf16 %v1102_v14, %v1102_v14  ;;  %v1324_v34 = vpack.c.bf16 %v941_v13, %v941_v13 }
 0x238   : > { %4227 = vmatprep.subr.bf16.mxu1 %v5038_v45 }
 0x23b   : > { %v4179_v15 = vpop.f32.mrb[4].mxu1  ;;  %v4147_v16 = vpop.f32.mrb[4].mxu0 }
 0x23c   : > { %v1115_v20 = vpop.f32.mrb[5].mxu1  ;;  %v954_v21 = vpop.f32.mrb[5].mxu0  ;;  %v1345_v31 = vpack.c.bf16 %v4179_v15, %v4179_v15  ;;  %v1329_v44 = vpack.c.bf16 %v4147_v16, %v4147_v16 }
 0x23d   : > { %v1343_v23 = vpack.c.bf16 %v1115_v20, %v1115_v20  ;;  %v5498_v24 = vpop.f32.mrb[6].mxu0  ;;  %v5500_v25 = vpop.f32.mrb[6].mxu1  ;;  %v1327_v30 = vpack.c.bf16 %v954_v21, %v954_v21 }
 0x23e   : > { %4224 = vmatmul.mubr.bf16.vlgmr.msra.gmra.mrb[16].mxu1 %v1323_v17  ;;  %v5502_v26 = vpop.f32.mrb[7].mxu0  ;;  %v1118_v27 = vpop.f32.mrb[7].mxu1 }
 0x23f   : > { %4228 = vmatpush3.bf16.xpose.msra.mxu1 %v1340_v22  ;;  %4246 = vmatpush3.bf16.xpose.msra.mxu0 %v1343_v23  ;;  %v1344_v10 = vpack.c.bf16 %v1118_v27, %v1118_v27  ;;  %v1328_v21 = vpack.c.bf16 %v5502_v26, %v5502_v26  ;;  %v1346_v27 = vpack.c.bf16 %v5500_v25, %v5500_v25 }
 0x240   : > { %4229 = vmatprep.mubr.msk.bf16.mxu1 %vm5039_vm0, %v5038_v45  ;;  %4233 = vmatprep.subr.bf16.mxu1 %v5038_v45 }
 0x241   : > { %4257 = vmatprep.subr.bf16.mxu0 %v5038_v45 }
 0x243   : > { %v5508_v32 = vpop.f32.mrb[8].mxu0  ;;  %v4183_v33 = vpop.f32.mrb[8].mxu1 }
 0x244   : > { %v970_v35 = vpop.f32.mrb[9].mxu0  ;;  %v1131_v36 = vpop.f32.mrb[9].mxu1  ;;  %v1349_v3 = vpack.c.bf16 %v4183_v33, %v4183_v33  ;;  %v1333_v11 = vpack.c.bf16 %v5508_v32, %v5508_v32 }
 0x245   : > { %v5510_v40 = vpop.f32.mrb[10].mxu0  ;;  %v5512_v41 = vpop.f32.mrb[10].mxu1  ;;  %v1347_v46 = vpack.c.bf16 %v1131_v36, %v1131_v36  ;;  %v1331_v2 = vpack.c.bf16 %v970_v35, %v970_v35 }
 0x246   : > { %4230 = vmatmul.mubr.bf16.vlgmr.msra.gmra.mrb[20].mxu1 %v1324_v34  ;;  %4248 = vmatmul.mubr.bf16.vlgmr.msra.gmra.mrb[32].mxu0 %v1327_v30  ;;  %v5514_v42 = vpop.f32.mrb[11].mxu0  ;;  %v5516_v43 = vpop.f32.mrb[11].mxu1 }
 0x247   : > { %4234 = vmatpush3.bf16.xpose.msra.mxu1 %v1341_v37  ;;  %4258 = vmatpush3.bf16.xpose.msra.mxu0 %v1345_v31 }
 0x248   : > { %4235 = vmatprep.mubr.msk.bf16.mxu1 %vm5039_vm0, %v5038_v45  ;;  %4259 = vmatprep.mubr.msk.bf16.mxu0 %vm5039_vm0, %v5038_v45 }
 0x249   : > { %4239 = vmatprep.subr.bf16.mxu1 %v5038_v45  ;;  %4269 = vmatprep.subr.bf16.mxu0 %v5038_v45 }
 0x24b   : > { %v5524_v47 = vpop.f32.mrb[12].mxu0  ;;  %v5526_v48 = vpop.f32.mrb[12].mxu1 }
 0x24c   : > { %v5528_v52 = vpop.f32.mrb[13].mxu0  ;;  %v1147_v53 = vpop.f32.mrb[13].mxu1 }
 0x24d   : > { %v5530_v55 = vpop.f32.mrb[14].mxu0  ;;  %v5532_v56 = vpop.f32.mrb[14].mxu1  ;;  %v1351_v20 = vpack.c.bf16 %v1147_v53, %v1147_v53  ;;  %v1335_v37 = vpack.c.bf16 %v5528_v52, %v5528_v52 }
 0x24e   : > { %4236 = vmatmul.mubr.bf16.vlgmr.msra.gmra.mrb[24].mxu1 %v1325_v51  ;;  %4260 = vmatmul.mubr.bf16.vlgmr.msra.gmra.mrb[36].mxu0 %v1329_v44  ;;  %v5534_v57 = vpop.f32.mrb[15].mxu0  ;;  %v5536_v62 = vpop.f32.mrb[15].mxu1  ;;  %v1353_v44 = vpack.c.bf16 %v5526_v48, %v5526_v48  ;;  %v1330_v51 = vpack.c.bf16 %v5498_v24, %v5498_v24 }
 0x24f   : > { %4240 = vmatpush3.bf16.xpose.msra.mxu1 %v1342_v54  ;;  %4270 = vmatpush3.bf16.xpose.msra.mxu0 %v1347_v46 }
 0x250   : > { %4241 = vmatprep.mubr.msk.bf16.mxu1 %vm5039_vm0, %v5038_v45  ;;  %4271 = vmatprep.mubr.msk.bf16.mxu0 %vm5039_vm0, %v5038_v45 }
 0x251   : > { %4251 = vmatprep.subr.bf16.mxu1 %v5038_v45  ;;  %4281 = vmatprep.subr.bf16.mxu0 %v5038_v45 }
 0x253   : > { %v4207_v4 = vpop.f32.mrb[16].mxu0 }
 0x254   : > { %v1357_v6 = vpack.c.bf16 %v4207_v4, %v4207_v4  ;;  %v5546_v7 = vpop.f32.mrb[17].mxu0 }
 0x255   : > { %v4208_v12 = vpop.f32.mrb[18].mxu0 }
 0x256   : > { %v5549_v13 = vsel %vm2223_vm1, %v1357_v6, 0  ;;  %v1358_v14 = vpack.c.bf16 %v4208_v12, %v4208_v12  ;;  %v5551_v15 = vpop.f32.mrb[19].mxu0  ;;  %4242 = vmatmul.mubr.bf16.vlgmr.msra.gmra.mrb[28].mxu1 %v1326_v5  ;;  %4272 = vmatmul.mubr.bf16.vlgmr.msra.gmra.mrb[40].mxu0 %v1331_v2  ;;  %v1348_v2 = vpack.c.bf16 %v5516_v43, %v5516_v43  ;;  %v1337_v12 = vpack.c.bf16 %v5524_v47, %v5524_v47 }
 0x257   : > { %4252 = vmatpush3.bf16.xpose.msra.mxu1 %v1344_v10  ;;  %4282 = vmatpush3.bf16.xpose.msra.mxu0 %v1349_v3 }
 0x258   : > { %v5554_v16 = vsel %vm2223_vm1, %v1358_v14, 0  ;;  %4253 = vmatprep.mubr.msk.bf16.mxu1 %vm5039_vm0, %v5038_v45  ;;  %4283 = vmatprep.mubr.msk.bf16.mxu0 %vm5039_vm0, %v5038_v45  ;;  %v1355_v14 = vpack.c.bf16 %v5546_v7, %v5546_v7 }
 0x259   : > { %4263 = vmatprep.subr.bf16.mxu1 %v5038_v45  ;;  %4293 = vmatprep.subr.bf16.mxu0 %v5038_v45 }
 0x25b   : > { %v4211_v17 = vpop.f32.mrb[20].mxu0 }
 0x25c   : > { %v1361_v22 = vpack.c.bf16 %v4211_v17, %v4211_v17  ;;  %v1276_v23 = vpop.f32.mrb[21].mxu0  ;;  %v1332_v17 = vpack.c.bf16 %v5514_v42, %v5514_v42 }
 0x25d   : > { %v1359_v30 = vpack.c.bf16 %v1276_v23, %v1276_v23  ;;  %v4212_v31 = vpop.f32.mrb[22].mxu0 }
 0x25e   : > { %v5569_v33 = vsel %vm2223_vm1, %v1361_v22, 0  ;;  %v1362_v34 = vpack.c.bf16 %v4212_v31, %v4212_v31  ;;  %v1279_v35 = vpop.f32.mrb[23].mxu0  ;;  %4254 = vmatmul.mubr.bf16.vlgmr.msra.gmra.mrb[32].mxu1 %v1328_v21  ;;  %4284 = vmatmul.mubr.bf16.vlgmr.msra.gmra.mrb[44].mxu0 %v1333_v11  ;;  %v1350_v22 = vpack.c.bf16 %v5512_v41, %v5512_v41 }
 0x25f   : > { %v5572_v32 = vsel %vm2223_vm1, %v1359_v30, 0  ;;  %v1360_v36 = vpack.c.bf16 %v1279_v35, %v1279_v35  ;;  %4264 = vmatpush3.bf16.xpose.msra.mxu1 %v1346_v27  ;;  %4294 = vmatpush3.bf16.xpose.msra.mxu0 %v1351_v20  ;;  %v2225_v30 = vsel %vm2223_vm1, %v1355_v14, 0 }
 0x260   : > { %v5575_v26 = vsel %vm2223_vm1, %v1362_v34, 0  ;;  %4265 = vmatprep.mubr.msk.bf16.mxu1 %vm5039_vm0, %v5038_v45  ;;  %4295 = vmatprep.mubr.msk.bf16.mxu0 %vm5039_vm0, %v5038_v45 }
 0x261   : > { %v5582_v25 = vsel %vm2223_vm1, %v1360_v36, 0  ;;  %4275 = vmatprep.subr.bf16.mxu1 %v5038_v45  ;;  %4305 = vmatprep.subr.bf16.mxu0 %v5038_v45  ;;  %v1334_v36 = vpack.c.bf16 %v5510_v40, %v5510_v40  ;;  %v1356_v40 = vpack.c.bf16 %v5551_v15, %v5551_v15 }
 0x263   : > { %v4215_v46 = vpop.f32.mrb[24].mxu0 }
 0x264   : > { %v1365_v53 = vpack.c.bf16 %v4215_v46, %v4215_v46  ;;  %v1292_v54 = vpop.f32.mrb[25].mxu0  ;;  %v1354_v46 = vpack.c.bf16 %v5532_v56, %v5532_v56 }
 0x265   : > { %v1363_v3 = vpack.c.bf16 %v1292_v54, %v1292_v54  ;;  %v4216_v4 = vpop.f32.mrb[26].mxu0 }
 0x266   : > { %4266 = vmatmul.mubr.bf16.vlgmr.msra.gmra.mrb[36].mxu1 %v1330_v51  ;;  %4296 = vmatmul.mubr.bf16.vlgmr.msra.gmra.mrb[48].mxu0 %v1335_v37  ;;  %v5595_v5 = vsel %vm2223_vm1, %v1365_v53, 0  ;;  %v1366_v52 = vpack.c.bf16 %v4216_v4, %v4216_v4  ;;  %v1295_v6 = vpop.f32.mrb[27].mxu0  ;;  %v1352_v37 = vpack.c.bf16 %v5536_v62, %v5536_v62  ;;  %v1338_v62 = vpack.c.bf16 %v5530_v55, %v5530_v55 }
 0x267   : > { %4276 = vmatpush3.bf16.xpose.msra.mxu1 %v1348_v2  ;;  %4306 = vmatpush3.bf16.xpose.msra.mxu0 %v1353_v44  ;;  %v5598_v48 = vsel %vm2223_vm1, %v1363_v3, 0  ;;  %v1364_v24 = vpack.c.bf16 %v1295_v6, %v1295_v6  ;;  %v1336_v44 = vpack.c.bf16 %v5534_v57, %v5534_v57  ;;  %v2271_v51 = vsel %vm2223_vm1, %v1356_v40, 0 }
 0x268   : > { %4277 = vmatprep.mubr.msk.bf16.mxu1 %vm5039_vm0, %v5038_v45  ;;  %4307 = vmatprep.mubr.msk.bf16.mxu0 %vm5039_vm0, %v5038_v45  ;;  %v5605_v43 = vsel %vm2223_vm1, %v1366_v52, 0 }
 0x269   : > { %4287 = vmatprep.subr.bf16.mxu1 %v5038_v45  ;;  %4317 = vmatprep.subr.bf16.mxu0 %v5038_v45  ;;  %v5610_v10 = vsel %vm2223_vm1, %v1364_v24, 0 }
 0x26b   : > { %v4219_v11 = vpop.f32.mrb[28].mxu0 }
 0x26c   : > { %v1369_v20 = vpack.c.bf16 %v4219_v11, %v4219_v11  ;;  %v1308_v21 = vpop.f32.mrb[29].mxu0 }
 0x26d   : > { %v1367_v23 = vpack.c.bf16 %v1308_v21, %v1308_v21  ;;  %v4220_v27 = vpop.f32.mrb[30].mxu0 }
 0x26e   : > { %4278 = vmatmul.mubr.bf16.vlgmr.msra.gmra.mrb[40].mxu1 %v1332_v17  ;;  %4308 = vmatmul.mubr.bf16.vlgmr.msra.gmra.mrb[52].mxu0 %v1337_v12  ;;  %v5622_v47 = vsel %vm2223_vm1, %v1369_v20, 0  ;;  %v1370_v31 = vpack.c.bf16 %v4220_v27, %v4220_v27  ;;  %v1311_v7 = vpop.f32.mrb[31].mxu0 }
 0x26f   : > { %4288 = vmatpush3.bf16.xpose.msra.mxu1 %v1350_v22  ;;  %4318 = vmatpush3.bf16.msra.mxu0 %v2225_v30  ;;  %v5625_v42 = vsel %vm2223_vm1, %v1367_v23, 0  ;;  %v1368_v34 = vpack.c.bf16 %v1311_v7, %v1311_v7 }
 0x270   : > { %4289 = vmatprep.mubr.msk.bf16.mxu1 %vm5039_vm0, %v5038_v45  ;;  %4299 = vmatprep.subr.bf16.mxu1 %v5038_v45  ;;  %v5631_v41 = vsel %vm2223_vm1, %v1370_v31, 0 }
 0x271   : > { %v5634_v35 = vsel %vm2223_vm1, %v1368_v34, 0  ;;  %4319 = vmatprep.mubr.msk.bf16.mxu0 %vm5039_vm0, %v5038_v45  ;;  %4329 = vmatprep.subr.bf16.mxu0 %v5038_v45 }
 0x276   : > { %4290 = vmatmul.mubr.bf16.vlgmr.msra.gmra.mrb[44].mxu1 %v1334_v36 }
 0x277   : > { %4300 = vmatpush3.bf16.xpose.msra.mxu1 %v1352_v37  ;;  %4301 = vmatprep.mubr.msk.bf16.mxu1 %vm5039_vm0, %v5038_v45 }
 0x278   : > { %4311 = vmatprep.subr.bf16.mxu1 %v5038_v45 }
 0x27e   : > { %4302 = vmatmul.mubr.bf16.vlgmr.msra.gmra.mrb[48].mxu1 %v1336_v44 }
 0x27f   : > { %4312 = vmatpush3.bf16.xpose.msra.mxu1 %v1354_v46  ;;  %4313 = vmatprep.mubr.msk.bf16.mxu1 %vm5039_vm0, %v5038_v45 }
 0x280   : > { %4323 = vmatprep.subr.bf16.mxu1 %v5038_v45 }
 0x286   : > { %4314 = vmatmul.mubr.bf16.vlgmr.msra.gmra.mrb[52].mxu1 %v1338_v62 }
 0x287   : > { %4324 = vmatpush3.bf16.msra.mxu1 %v2271_v51  ;;  %4325 = vmatprep.mubr.msk.bf16.mxu1 %vm5039_vm0, %v5038_v45 }
 0x288   : > { %4335 = vmatprep.subr.bf16.mxu1 %v5038_v45 }
 0x311   : > { %v1405_v56 = vpop.f32.mrb[16].mxu1 }
 0x312   : > { %v5661_v57 = vmul.f32 0.17677669, %v1405_v56  ;;  %v4225_v53 = vpop.f32.mrb[17].mxu1 }
 0x313   : > { %v1408_v54 = vpop.f32.mrb[18].mxu1 }
 0x314   : > { %v4226_v2 = vpop.f32.mrb[19].mxu1  ;;  %v2028_v15 = vsel %vm2027_vm2, %v5661_v57, -inf }
 0x315   : > { %2029 = vmax.xlane.f32.xlu0 %v2028_v15 }
 0x319   : > { %v1445_v55 = vpop.f32.mrb[20].mxu1  ;;  %v1565_v3 = vpop.f32.mrb[32].mxu0 }
 0x31a   : > { %v5665_v4 = vmul.f32 0.17677669, %v1445_v55  ;;  %v4231_v52 = vpop.f32.mrb[21].mxu1  ;;  %v5667_v6 = vmul.f32 0.17677669, %v1565_v3  ;;  %v4249_v24 = vpop.f32.mrb[33].mxu0 }
 0x31b   : > { %v1448_v12 = vpop.f32.mrb[22].mxu1  ;;  %v1568_v14 = vpop.f32.mrb[34].mxu0 }
 0x31c   : > { %v4232_v11 = vpop.f32.mrb[23].mxu1  ;;  %v2031_v17 = vsel %vm2027_vm2, %v5665_v4, -inf  ;;  %v4250_v20 = vpop.f32.mrb[35].mxu0  ;;  %v2040_v21 = vsel %vm2027_vm2, %v5667_v6, -inf }
 0x31d   : > { %2032 = vmax.xlane.f32.xlu1 %v2031_v17 }
 0x321   : > { %v1485_v22 = vpop.f32.mrb[24].mxu1  ;;  %2041 = vmax.xlane.f32.xlu1 %v2040_v21  ;;  %v1645_v23 = vpop.f32.mrb[36].mxu0 }
 0x322   : > { %v5673_v27 = vmul.f32 0.17677669, %v1485_v22  ;;  %v5675_v30 = vmul.f32 0.17677669, %v1645_v23  ;;  %v4237_v31 = vpop.f32.mrb[25].mxu1  ;;  %v4261_v7 = vpop.f32.mrb[37].mxu0 }
 0x323   : > { %v1488_v34 = vpop.f32.mrb[26].mxu1  ;;  %v1648_v36 = vpop.f32.mrb[38].mxu0 }
 0x324   : > { %v4238_v37 = vpop.f32.mrb[27].mxu1  ;;  %v2034_v44 = vsel %vm2027_vm2, %v5673_v27, -inf  ;;  %v2046_v46 = vsel %vm2027_vm2, %v5675_v30, -inf  ;;  %v4262_v40 = vpop.f32.mrb[39].mxu0 }
 0x325   : > { %2035 = vmax.xlane.f32.xlu0 %v2034_v44  ;;  %2047 = vmax.xlane.f32.xlu1 %v2046_v46 }
 0x329   : > { %v1525_v62 = vpop.f32.mrb[28].mxu1  ;;  %v1725_v51 = vpop.f32.mrb[40].mxu0 }
 0x32a   : > { %v5681_v56 = vmul.f32 0.17677669, %v1525_v62  ;;  %v5683_v53 = vmul.f32 0.17677669, %v1725_v51  ;;  %v4243_v54 = vpop.f32.mrb[29].mxu1  ;;  %v4273_v2 = vpop.f32.mrb[41].mxu0 }
 0x32b   : > { %v1528_v15 = vpop.f32.mrb[30].mxu1  ;;  %v1728_v55 = vpop.f32.mrb[42].mxu0 }
 0x32c   : > { %v4244_v3 = vpop.f32.mrb[31].mxu1  ;;  %v2037_v52 = vsel %vm2027_vm2, %v5681_v56, -inf  ;;  %v2052_v24 = vsel %vm2027_vm2, %v5683_v53, -inf  ;;  %v4274_v12 = vpop.f32.mrb[43].mxu0 }
 0x32d   : > { %2038 = vmax.xlane.f32.xlu0 %v2037_v52  ;;  %2053 = vmax.xlane.f32.xlu1 %v2052_v24 }
 0x331   : > { %v1605_v14 = vpop.f32.mrb[32].mxu1  ;;  %v1805_v11 = vpop.f32.mrb[44].mxu0 }
 0x332   : > { %v5689_v17 = vmul.f32 0.17677669, %v1605_v14  ;;  %v5691_v20 = vmul.f32 0.17677669, %v1805_v11  ;;  %v4255_v21 = vpop.f32.mrb[33].mxu1  ;;  %v4285_v22 = vpop.f32.mrb[45].mxu0 }
 0x333   : > { %v1608_v23 = vpop.f32.mrb[34].mxu1  ;;  %v1808_v31 = vpop.f32.mrb[46].mxu0 }
 0x334   : > { %v4256_v7 = vpop.f32.mrb[35].mxu1  ;;  %v2043_v34 = vsel %vm2027_vm2, %v5689_v17, -inf  ;;  %v2058_v36 = vsel %vm2027_vm2, %v5691_v20, -inf  ;;  %v4286_v37 = vpop.f32.mrb[47].mxu0 }
 0x335   : > { %2044 = vmax.xlane.f32.xlu0 %v2043_v34  ;;  %2059 = vmax.xlane.f32.xlu1 %v2058_v36 }
 0x339   : > { %v1685_v44 = vpop.f32.mrb[36].mxu1  ;;  %v1885_v46 = vpop.f32.mrb[48].mxu0 }
 0x33a   : > { %v5697_v40 = vmul.f32 0.17677669, %v1685_v44  ;;  %v5699_v62 = vmul.f32 0.17677669, %v1885_v46  ;;  %v4267_v51 = vpop.f32.mrb[37].mxu1  ;;  %v4297_v54 = vpop.f32.mrb[49].mxu0 }
 0x33b   : > { %v1688_v2 = vpop.f32.mrb[38].mxu1  ;;  %v1888_v15 = vpop.f32.mrb[50].mxu0 }
 0x33c   : > { %v4268_v55 = vpop.f32.mrb[39].mxu1  ;;  %v2049_v3 = vsel %vm2027_vm2, %v5697_v40, -inf  ;;  %v2064_v52 = vsel %vm2027_vm2, %v5699_v62, -inf  ;;  %v4298_v24 = vpop.f32.mrb[51].mxu0 }
 0x33d   : > { %2050 = vmax.xlane.f32.xlu0 %v2049_v3  ;;  %2065 = vmax.xlane.f32.xlu1 %v2064_v52 }
 0x341   : > { %v1765_v12 = vpop.f32.mrb[40].mxu1  ;;  %v1965_v14 = vpop.f32.mrb[52].mxu0 }
 0x342   : > { %v5705_v11 = vmul.f32 0.17677669, %v1765_v12  ;;  %v5707_v21 = vmul.f32 0.17677669, %v1965_v14  ;;  %v4279_v22 = vpop.f32.mrb[41].mxu1  ;;  %v4309_v23 = vpop.f32.mrb[53].mxu0 }
 0x343   : > { %v1768_v31 = vpop.f32.mrb[42].mxu1  ;;  %v1968_v7 = vpop.f32.mrb[54].mxu0 }
 0x344   : > { %v2055_v34 = vsel %vm2027_vm2, %v5705_v11, -inf  ;;  %v2070_v36 = vsel %vm2027_vm2, %v5707_v21, -inf  ;;  %v4280_v37 = vpop.f32.mrb[43].mxu1  ;;  %v4310_v44 = vpop.f32.mrb[55].mxu0 }
 0x345   : > { %2056 = vmax.xlane.f32.xlu0 %v2055_v34  ;;  %2071 = vmax.xlane.f32.xlu1 %v2070_v36 }
 0x349   : > { %v1845_v46 = vpop.f32.mrb[44].mxu1 }
 0x34a   : > { %v5713_v51 = vmul.f32 0.17677669, %v1845_v46  ;;  %v4291_v54 = vpop.f32.mrb[45].mxu1 }
 0x34b   : > { %v1848_v2 = vpop.f32.mrb[46].mxu1 }
 0x34c   : > { %v2061_v15 = vsel %vm2027_vm2, %v5713_v51, -inf  ;;  %v4292_v55 = vpop.f32.mrb[47].mxu1 }
 0x34d   : > { %2062 = vmax.xlane.f32.xlu0 %v2061_v15 }
 0x351   : > { %v1925_v3 = vpop.f32.mrb[48].mxu1 }
 0x352   : > { %v5717_v52 = vmul.f32 0.17677669, %v1925_v3  ;;  %v4303_v24 = vpop.f32.mrb[49].mxu1 }
 0x353   : > { %v1928_v12 = vpop.f32.mrb[50].mxu1 }
 0x354   : > { %v2067_v14 = vsel %vm2027_vm2, %v5717_v52, -inf  ;;  %v4304_v22 = vpop.f32.mrb[51].mxu1 }
 0x355   : > { %2068 = vmax.xlane.f32.xlu0 %v2067_v14 }
 0x359   : > { %v2005_v23 = vpop.f32.mrb[52].mxu1 }
 0x35a   : > { %v5721_v31 = vmul.f32 0.17677669, %v2005_v23  ;;  %v4315_v7 = vpop.f32.mrb[53].mxu1 }
 0x35b   : > { %v2008_v34 = vpop.f32.mrb[54].mxu1 }
 0x35c   : > { %v2073_v36 = vsel %vm2027_vm2, %v5721_v31, -inf  ;;  %v4316_v37 = vpop.f32.mrb[55].mxu1 }
 0x35d   : > { %2074 = vmax.xlane.f32.xlu0 %v2073_v36 }
 0x3a2   : > { %v2030_v44 = vpop.xlane.xlu0 %2029 }
 0x3a3   : > { %v2076_v46 = vsub.f32 %v5661_v57, %v2030_v44 }
 0x3a5   : > { %v2092_v54 = vmul.f32 1.442695, %v2076_v46 }
 0x3a7   : > { %4679 = vpow2.f32 %v2092_v54 }
 0x3aa   : > { %v2033_v2 = vpop.xlane.xlu1 %2032 }
 0x3ab   : > { %v2077_v15 = vsub.f32 %v5665_v4, %v2033_v2 }
 0x3ad   : > { %v2094_v55 = vmul.f32 1.442695, %v2077_v15 }
 0x3ae   : > { %v2042_v3 = vpop.xlane.xlu1 %2041 }
 0x3af   : > { %4681 = vpow2.f32 %v2094_v55  ;;  %v2080_v12 = vsub.f32 %v5667_v6, %v2042_v3 }
 0x3b1   : > { %v5727_v24 = vpop.eup %4679  ;;  %v2100_v57 = vmul.f32 1.442695, %v2080_v12 }
 0x3b2   : > { %v2036_v14 = vpop.xlane.xlu0 %2035  ;;  %v2048_v22 = vpop.xlane.xlu1 %2047  ;;  %v2124_v23 = vsel %vm2027_vm2, %v5727_v24, 0.0 }
 0x3b3   : > { %v2078_v7 = vsub.f32 %v5673_v27, %v2036_v14  ;;  %2125 = vadd.xlane.f32.xlu1 %v2124_v23  ;;  %v2082_v36 = vsub.f32 %v5675_v30, %v2048_v22 }
 0x3b5   : > { %v2096_v34 = vmul.f32 1.442695, %v2078_v7  ;;  %v2104_v37 = vmul.f32 1.442695, %v2082_v36 }
 0x3b7   : > { %4683 = vpow2.f32 %v2096_v34 }
 0x3b8   : > { %4685 = vpow2.f32 %v2100_v57 }
 0x3b9   : > { %v5734_v4 = vpop.eup %4681  ;;  %4687 = vpow2.f32 %v2104_v37 }
 0x3ba   : > { %v2039_v44 = vpop.xlane.xlu0 %2038  ;;  %v2054_v46 = vpop.xlane.xlu1 %2053  ;;  %v2127_v6 = vsel %vm2027_vm2, %v5734_v4, 0.0 }
 0x3bb   : > { %v2079_v54 = vsub.f32 %v5681_v56, %v2039_v44  ;;  %v2084_v2 = vsub.f32 %v5683_v53, %v2054_v46  ;;  %2128 = vadd.xlane.f32.xlu0 %v2127_v6 }
 0x3bd   : > { %v2098_v27 = vmul.f32 1.442695, %v2079_v54  ;;  %v2108_v15 = vmul.f32 1.442695, %v2084_v2 }
 0x3bf   : > { %4689 = vpow2.f32 %v2098_v27 }
 0x3c0   : > { %4691 = vpow2.f32 %v2108_v15 }
 0x3c1   : > { %v5740_v30 = vpop.eup %4683 }
 0x3c2   : > { %v2045_v55 = vpop.xlane.xlu0 %2044  ;;  %v2060_v3 = vpop.xlane.xlu1 %2059  ;;  %v2130_v12 = vsel %vm2027_vm2, %v5740_v30, 0.0 }
 0x3c3   : > { %v5744_v14 = vpop.eup %4685  ;;  %v2081_v22 = vsub.f32 %v5689_v17, %v2045_v55  ;;  %v2086_v56 = vsub.f32 %v5691_v20, %v2060_v3  ;;  %2131 = vadd.xlane.f32.xlu1 %v2130_v12 }
 0x3c4   : > { %v2136_v7 = vsel %vm2027_vm2, %v5744_v14, 0.0  ;;  %v5750_v57 = vpop.eup %4687 }
 0x3c5   : > { %v2102_v53 = vmul.f32 1.442695, %v2081_v22  ;;  %v2112_v23 = vmul.f32 1.442695, %v2086_v56  ;;  %v2142_v20 = vsel %vm2027_vm2, %v5750_v57, 0.0 }
 0x3c7   : > { %4693 = vpow2.f32 %v2102_v53  ;;  %2137 = vadd.xlane.f32.xlu1 %v2136_v7 }
 0x3c8   : > { %4695 = vpow2.f32 %v2112_v23 }
 0x3c9   : > { %v5752_v34 = vpop.eup %4689 }
 0x3ca   : > { %v2051_v36 = vpop.xlane.xlu0 %2050  ;;  %v2066_v37 = vpop.xlane.xlu1 %2065  ;;  %v2133_v17 = vsel %vm2027_vm2, %v5752_v34, 0.0 }
 0x3cb   : > { %v5758_v44 = vpop.eup %4691  ;;  %v2083_v46 = vsub.f32 %v5697_v40, %v2051_v36  ;;  %v2088_v6 = vsub.f32 %v5699_v62, %v2066_v37  ;;  %2134 = vadd.xlane.f32.xlu0 %v2133_v17  ;;  %2143 = vadd.xlane.f32.xlu1 %v2142_v20 }
 0x3cc   : > { %v2148_v27 = vsel %vm2027_vm2, %v5758_v44, 0.0 }
 0x3cd   : > { %v2106_v54 = vmul.f32 1.442695, %v2083_v46  ;;  %v2116_v2 = vmul.f32 1.442695, %v2088_v6 }
 0x3cf   : > { %4697 = vpow2.f32 %v2106_v54  ;;  %2149 = vadd.xlane.f32.xlu1 %v2148_v27 }
 0x3d0   : > { %4699 = vpow2.f32 %v2116_v2 }
 0x3d1   : > { %v5764_v15 = vpop.eup %4693 }
 0x3d2   : > { %v5766_v55 = vpop.eup %4695  ;;  %v2057_v3 = vpop.xlane.xlu0 %2056  ;;  %v2139_v40 = vsel %vm2027_vm2, %v5764_v15, 0.0 }
 0x3d3   : > { %v2072_v12 = vpop.xlane.xlu1 %2071  ;;  %v2085_v62 = vsub.f32 %v5705_v11, %v2057_v3  ;;  %2140 = vadd.xlane.f32.xlu0 %v2139_v40  ;;  %v2154_v56 = vsel %vm2027_vm2, %v5766_v55, 0.0 }
 0x3d4   : > { %v2090_v22 = vsub.f32 %v5707_v21, %v2072_v12  ;;  %2155 = vadd.xlane.f32.xlu1 %v2154_v56 }
 0x3d5   : > { %v2110_v53 = vmul.f32 1.442695, %v2085_v62 }
 0x3d6   : > { %v2120_v23 = vmul.f32 1.442695, %v2090_v22 }
 0x3d7   : > { %4701 = vpow2.f32 %v2110_v53 }
 0x3d8   : > { %4703 = vpow2.f32 %v2120_v23 }
 0x3d9   : > { %v5774_v7 = vpop.eup %4697 }
 0x3da   : > { %v5776_v36 = vpop.eup %4699  ;;  %v2063_v37 = vpop.xlane.xlu0 %2062  ;;  %v2145_v17 = vsel %vm2027_vm2, %v5774_v7, 0.0 }
 0x3db   : > { %v2087_v11 = vsub.f32 %v5713_v51, %v2063_v37  ;;  %2146 = vadd.xlane.f32.xlu0 %v2145_v17  ;;  %v2160_v21 = vsel %vm2027_vm2, %v5776_v36, 0.0 }
 0x3dc   : > { %2161 = vadd.xlane.f32.xlu1 %v2160_v21 }
 0x3dd   : > { %v2114_v20 = vmul.f32 1.442695, %v2087_v11 }
 0x3df   : > { %4705 = vpow2.f32 %v2114_v20 }
 0x3e1   : > { %v5783_v46 = vpop.eup %4701 }
 0x3e2   : > { %v5785_v6 = vpop.eup %4703  ;;  %v2069_v54 = vpop.xlane.xlu0 %2068  ;;  %v2151_v2 = vsel %vm2027_vm2, %v5783_v46, 0.0 }
 0x3e3   : > { %v2089_v27 = vsub.f32 %v5717_v52, %v2069_v54  ;;  %2152 = vadd.xlane.f32.xlu0 %v2151_v2  ;;  %v2166_v51 = vsel %vm2027_vm2, %v5785_v6, 0.0 }
 0x3e4   : > { %2167 = vadd.xlane.f32.xlu1 %v2166_v51 }
 0x3e5   : > { %v2118_v3 = vmul.f32 1.442695, %v2089_v27 }
 0x3e7   : > { %4707 = vpow2.f32 %v2118_v3 }
 0x3e9   : > { %v5792_v12 = vpop.eup %4705 }
 0x3ea   : > { %v2075_v40 = vpop.xlane.xlu0 %2074  ;;  %v2157_v62 = vsel %vm2027_vm2, %v5792_v12, 0.0 }
 0x3eb   : > { %v2091_v22 = vsub.f32 %v5721_v31, %v2075_v40  ;;  %2158 = vadd.xlane.f32.xlu0 %v2157_v62 }
 0x3ed   : > { %v2122_v56 = vmul.f32 1.442695, %v2091_v22 }
 0x3ef   : > { %4709 = vpow2.f32 %v2122_v56 }
 0x3f1   : > { %v5797_v53 = vpop.eup %4707 }
 0x3f2   : > { %v2163_v52 = vsel %vm2027_vm2, %v5797_v53, 0.0 }
 0x3f3   : > { %2164 = vadd.xlane.f32.xlu0 %v2163_v52 }
 0x3f9   : > { %v5801_v23 = vpop.eup %4709 }
 0x3fa   : > { %v2169_v37 = vsel %vm2027_vm2, %v5801_v23, 0.0 }
 0x3fb   : > { %2170 = vadd.xlane.f32.xlu0 %v2169_v37 }
 0x440   : > { %v2126_v17 = vpop.xlane.xlu1 %2125 }
 0x441   : > { %4711 = vrcp.f32 %v2126_v17 }
 0x448   : > { %v2129_v11 = vpop.xlane.xlu0 %2128 }
 0x449   : > { %4713 = vrcp.f32 %v2129_v11 }
 0x44b   : > { %v4712_v31 = vpop.eup %4711 }
 0x44c   : > { %v2188_v21 = vmul.f32 %v4712_v31, %v5727_v24 }
 0x44e   : > { %v2204_v20 = vpack.c.bf16 %v2188_v21, %v2188_v21 }
 0x450   : > { %4320 = vmatmul.mubr.msk.bf16.vlgmr.msra.gmra.mrb[56].mxu0 %vm2027_vm2, %v2204_v20  ;;  %v2132_v54 = vpop.xlane.xlu1 %2131 }
 0x451   : > { %4330 = vmatpush3.bf16.msra.mxu0 %v5549_v13  ;;  %4715 = vrcp.f32 %v2132_v54  ;;  %4331 = vmatprep.mubr.msk.bf16.mxu0 %vm5039_vm0, %v5038_v45 }
 0x452   : > { %4341 = vmatprep.subr.bf16.mxu0 %v5038_v45 }
 0x453   : > { %v4714_v2 = vpop.eup %4713 }
 0x454   : > { %v2189_v27 = vmul.f32 %v4714_v2, %v5734_v4  ;;  %v2138_v51 = vpop.xlane.xlu1 %2137 }
 0x455   : > { %4717 = vrcp.f32 %v2138_v51 }
 0x456   : > { %v2205_v3 = vpack.c.bf16 %v2189_v27, %v2189_v27 }
 0x458   : > { %v2135_v40 = vpop.xlane.xlu0 %2134  ;;  %4326 = vmatmul.mubr.msk.bf16.vlgmr.msra.gmra.mrb[56].mxu1 %vm2027_vm2, %v2205_v3  ;;  %v2144_v13 = vpop.xlane.xlu1 %2143 }
 0x459   : > { %4719 = vrcp.f32 %v2135_v40  ;;  %4336 = vmatpush3.bf16.msra.mxu1 %v5554_v16  ;;  %4337 = vmatprep.mubr.msk.bf16.mxu1 %vm5039_vm0, %v5038_v45 }
 0x45a   : > { %4347 = vmatprep.subr.bf16.mxu1 %v5038_v45  ;;  %4721 = vrcp.f32 %v2144_v13 }
 0x45b   : > { %v4716_v24 = vpop.eup %4715 }
 0x45c   : > { %v2190_v62 = vmul.f32 %v4716_v24, %v5740_v30  ;;  %v2150_v52 = vpop.xlane.xlu1 %2149 }
 0x45e   : > { %v2206_v4 = vpack.c.bf16 %v2190_v62, %v2190_v62 }
 0x45f   : > { %v4718_v22 = vpop.eup %4717 }
 0x460   : > { %v2141_v56 = vpop.xlane.xlu0 %2140  ;;  %4332 = vmatmul.mubr.msk.bf16.vlgmr.msra.gmra.mrb[60].mxu0 %vm2027_vm2, %v2206_v4  ;;  %v2192_v16 = vmul.f32 %v4718_v22, %v5744_v14 }
 0x461   : > { %4723 = vrcp.f32 %v2141_v56  ;;  %4342 = vmatpush3.bf16.msra.mxu0 %v5572_v32  ;;  %4343 = vmatprep.mubr.msk.bf16.mxu0 %vm5039_vm0, %v5038_v45  ;;  %v2156_v14 = vpop.xlane.xlu1 %2155 }
 0x462   : > { %4353 = vmatprep.subr.bf16.mxu0 %v5038_v45  ;;  %4725 = vrcp.f32 %v2150_v52  ;;  %v2208_v11 = vpack.c.bf16 %v2192_v16, %v2192_v16  ;;  %v4647_v52 = vld [vmem:[#allocation10] sm:$0xff]  }
 0x463   : > { %v4720_v37 = vpop.eup %4719 }
 0x464   : > { %v2191_v30 = vmul.f32 %v4720_v37, %v5752_v34  ;;  %v4722_v31 = vpop.eup %4721 }
 0x465   : > { %v2194_v32 = vmul.f32 %v4722_v31, %v5750_v57  ;;  %v4650_v31 = vld [vmem:[#allocation10 + $0x18] sm:$0xff]  }
 0x466   : > { %v2207_v17 = vpack.c.bf16 %v2191_v30, %v2191_v30 }
 0x467   : > { %v2210_v54 = vpack.c.bf16 %v2194_v32, %v2194_v32  ;;  %v4654_v32 = vld [vmem:[#allocation10 + $0x38] sm:$0xff]  }
 0x468   : > { %v2147_v21 = vpop.xlane.xlu0 %2146  ;;  %4338 = vmatmul.mubr.msk.bf16.vlgmr.msra.gmra.mrb[60].mxu1 %vm2027_vm2, %v2207_v17  ;;  %4344 = vmatmul.mubr.msk.bf16.vlgmr.msra.gmra.mrb[64].mxu0 %vm2027_vm2, %v2208_v11  ;;  %v4648_v11 = vld [vmem:[#allocation10 + $0x8] sm:$0xff]  }
 0x469   : > { %4727 = vrcp.f32 %v2147_v21  ;;  %4348 = vmatpush3.bf16.msra.mxu1 %v5582_v25  ;;  %4354 = vmatpush3.bf16.msra.mxu0 %v5569_v33  ;;  %v2162_v27 = vpop.xlane.xlu1 %2161  ;;  %v4652_v21 = vld [vmem:[#allocation10 + $0x28] sm:$0xff]  }
 0x46a   : > { %4349 = vmatprep.mubr.msk.bf16.mxu1 %vm5039_vm0, %v5038_v45  ;;  %4355 = vmatprep.mubr.msk.bf16.mxu0 %vm5039_vm0, %v5038_v45  ;;  %4729 = vrcp.f32 %v2156_v14 }
 0x46b   : > { %v4724_v34 = vpop.eup %4723  ;;  %4359 = vmatprep.subr.bf16.mxu1 %v5038_v45  ;;  %4365 = vmatprep.subr.bf16.mxu0 %v5038_v45 }
 0x46c   : > { %v2193_v20 = vmul.f32 %v4724_v34, %v5764_v15  ;;  %v4726_v33 = vpop.eup %4725 }
 0x46d   : > { %v2196_v57 = vmul.f32 %v4726_v33, %v5758_v44 }
 0x46e   : > { %v2209_v25 = vpack.c.bf16 %v2193_v20, %v2193_v20 }
 0x46f   : > { %v2212_v3 = vpack.c.bf16 %v2196_v57, %v2196_v57 }
 0x470   : > { %v2153_v2 = vpop.xlane.xlu0 %2152  ;;  %4350 = vmatmul.mubr.msk.bf16.vlgmr.msra.gmra.mrb[64].mxu1 %vm2027_vm2, %v2209_v25  ;;  %4356 = vmatmul.mubr.msk.bf16.vlgmr.msra.gmra.mrb[68].mxu0 %vm2027_vm2, %v2210_v54 }
 0x471   : > { %4731 = vrcp.f32 %v2153_v2  ;;  %4360 = vmatpush3.bf16.msra.mxu1 %v5575_v26  ;;  %4366 = vmatpush3.bf16.msra.mxu0 %v5598_v48  ;;  %v2168_v13 = vpop.xlane.xlu1 %2167 }
 0x472   : > { %4361 = vmatprep.mubr.msk.bf16.mxu1 %vm5039_vm0, %v5038_v45  ;;  %4367 = vmatprep.mubr.msk.bf16.mxu0 %vm5039_vm0, %v5038_v45  ;;  %4733 = vrcp.f32 %v2162_v27 }
 0x473   : > { %v4728_v15 = vpop.eup %4727  ;;  %4371 = vmatprep.subr.bf16.mxu1 %v5038_v45  ;;  %4377 = vmatprep.subr.bf16.mxu0 %v5038_v45 }
 0x474   : > { %v2195_v51 = vmul.f32 %v4728_v15, %v5774_v7  ;;  %v4730_v48 = vpop.eup %4729 }
 0x475   : > { %v2198_v44 = vmul.f32 %v4730_v48, %v5766_v55 }
 0x476   : > { %v2211_v26 = vpack.c.bf16 %v2195_v51, %v2195_v51 }
 0x477   : > { %v2214_v62 = vpack.c.bf16 %v2198_v44, %v2198_v44 }
 0x478   : > { %v2159_v40 = vpop.xlane.xlu0 %2158  ;;  %4362 = vmatmul.mubr.msk.bf16.vlgmr.msra.gmra.mrb[68].mxu1 %vm2027_vm2, %v2211_v26  ;;  %4368 = vmatmul.mubr.msk.bf16.vlgmr.msra.gmra.mrb[72].mxu0 %vm2027_vm2, %v2212_v3 }
 0x479   : > { %4735 = vrcp.f32 %v2159_v40  ;;  %4372 = vmatpush3.bf16.msra.mxu1 %v5610_v10  ;;  %4378 = vmatpush3.bf16.msra.mxu0 %v5595_v5 }
 0x47a   : > { %4373 = vmatprep.mubr.msk.bf16.mxu1 %vm5039_vm0, %v5038_v45  ;;  %4379 = vmatprep.mubr.msk.bf16.mxu0 %vm5039_vm0, %v5038_v45  ;;  %4737 = vrcp.f32 %v2168_v13 }
 0x47b   : > { %v4732_v7 = vpop.eup %4731  ;;  %4383 = vmatprep.subr.bf16.mxu1 %v5038_v45  ;;  %4389 = vmatprep.subr.bf16.mxu0 %v5038_v45 }
 0x47c   : > { %v2197_v24 = vmul.f32 %v4732_v7, %v5783_v46  ;;  %v4734_v5 = vpop.eup %4733 }
 0x47d   : > { %v2200_v55 = vmul.f32 %v4734_v5, %v5776_v36 }
 0x47e   : > { %v2213_v10 = vpack.c.bf16 %v2197_v24, %v2197_v24 }
 0x47f   : > { %v2216_v16 = vpack.c.bf16 %v2200_v55, %v2200_v55 }
 0x480   : > { %v2165_v4 = vpop.xlane.xlu0 %2164  ;;  %4374 = vmatmul.mubr.msk.bf16.vlgmr.msra.gmra.mrb[72].mxu1 %vm2027_vm2, %v2213_v10  ;;  %4380 = vmatmul.mubr.msk.bf16.vlgmr.msra.gmra.mrb[76].mxu0 %vm2027_vm2, %v2214_v62 }
 0x481   : > { %4739 = vrcp.f32 %v2165_v4  ;;  %4384 = vmatpush3.bf16.msra.mxu1 %v5605_v43  ;;  %4390 = vmatpush3.bf16.msra.mxu0 %v5625_v42 }
 0x482   : > { %4385 = vmatprep.mubr.msk.bf16.mxu1 %vm5039_vm0, %v5038_v45  ;;  %4391 = vmatprep.mubr.msk.bf16.mxu0 %vm5039_vm0, %v5038_v45 }
 0x483   : > { %v4736_v46 = vpop.eup %4735  ;;  %4395 = vmatprep.subr.bf16.mxu1 %v5038_v45  ;;  %4401 = vmatprep.subr.bf16.mxu0 %v5038_v45 }
 0x484   : > { %v2199_v22 = vmul.f32 %v4736_v46, %v5792_v12  ;;  %v4738_v43 = vpop.eup %4737 }
 0x485   : > { %v2202_v36 = vmul.f32 %v4738_v43, %v5785_v6 }
 0x486   : > { %v2215_v56 = vpack.c.bf16 %v2199_v22, %v2199_v22 }
 0x487   : > { %v2218_v17 = vpack.c.bf16 %v2202_v36, %v2202_v36 }
 0x488   : > { %v2171_v42 = vpop.xlane.xlu0 %2170  ;;  %4386 = vmatmul.mubr.msk.bf16.vlgmr.msra.gmra.mrb[76].mxu1 %vm2027_vm2, %v2215_v56  ;;  %4392 = vmatmul.mubr.msk.bf16.vlgmr.msra.gmra.mrb[80].mxu0 %vm2027_vm2, %v2216_v16 }
 0x489   : > { %4741 = vrcp.f32 %v2171_v42  ;;  %4396 = vmatpush3.bf16.msra.mxu1 %v5634_v35  ;;  %4402 = vmatpush3.bf16.msra.mxu0 %v5622_v47 }
 0x48a   : > { %4397 = vmatprep.mubr.msk.bf16.mxu1 %vm5039_vm0, %v5038_v45  ;;  %4403 = vmatprep.mubr.msk.bf16.mxu0 %vm5039_vm0, %v5038_v45 }
 0x48b   : > { %v4740_v12 = vpop.eup %4739  ;;  %4407 = vmatprep.subr.bf16.mxu1 %v5038_v45  ;;  %4413 = vmatprep.subr.bf16.mxu0 %v4647_v52 }
 0x48c   : > { %v2201_v37 = vmul.f32 %v4740_v12, %v5797_v53  ;;  %v4649_v53 = vld [vmem:[#allocation10 + $0x10] sm:$0xff]  }
 0x48e   : > { %v2217_v30 = vpack.c.bf16 %v2201_v37, %v2201_v37 }
 0x490   : > { %4398 = vmatmul.mubr.msk.bf16.vlgmr.msra.gmra.mrb[80].mxu1 %vm2027_vm2, %v2217_v30  ;;  %4404 = vmatmul.mubr.msk.bf16.vlgmr.msra.gmra.mrb[84].mxu0 %vm2027_vm2, %v2218_v17 }
 0x491   : > { %4408 = vmatpush3.bf16.msra.mxu1 %v5631_v41  ;;  %4409 = vmatprep.mubr.msk.bf16.mxu1 %vm5039_vm0, %v5038_v45  ;;  %v4651_v41 = vld [vmem:[#allocation10 + $0x20] sm:$0xff]  }
 0x492   : > { %4414 = vmatpush3.bf16.msra.mxu0 %v4647_v52  ;;  %4445 = vmatprep.subr.bf16.mxu1 %v5038_v45 }
 0x493   : > { %v4742_v47 = vpop.eup %4741  ;;  %4415 = vmatprep.subr.bf16.mxu0 %v4648_v11 }
 0x494   : > { %v2203_v35 = vmul.f32 %v4742_v47, %v5801_v23  ;;  %v4653_v23 = vld [vmem:[#allocation10 + $0x30] sm:$0xff]  }
 0x496   : > { %v2219_v6 = vpack.c.bf16 %v2203_v35, %v2203_v35  ;;  %4416 = vmatpush3.bf16.msra.mxu0 %v4648_v11 }
 0x497   : > { %4417 = vmatprep.subr.bf16.mxu0 %v4649_v53 }
 0x498   : > { %4410 = vmatmul.mubr.msk.bf16.vlgmr.msra.gmra.mrb[84].mxu1 %vm2027_vm2, %v2219_v6 }
 0x499   : > { %4461 = vmatprep.mubr.msk.bf16.mxu1 %vm5039_vm0, %v5038_v45 }
 0x49a   : > { %4418 = vmatpush3.bf16.msra.mxu0 %v4649_v53 }
 0x49b   : > { %4419 = vmatprep.subr.bf16.mxu0 %v4650_v31 }
 0x49e   : > { %4420 = vmatpush3.bf16.msra.mxu0 %v4650_v31 }
 0x49f   : > { %4421 = vmatprep.subr.bf16.mxu0 %v4651_v41 }
 0x4a2   : > { %4422 = vmatpush3.bf16.msra.mxu0 %v4651_v41 }
 0x4a3   : > { %4423 = vmatprep.subr.bf16.mxu0 %v4652_v21 }
 0x4a6   : > { %4424 = vmatpush3.bf16.msra.mxu0 %v4652_v21 }
 0x4a7   : > { %4425 = vmatprep.subr.bf16.mxu0 %v4653_v23 }
 0x4aa   : > { %4426 = vmatpush3.bf16.msra.mxu0 %v4653_v23 }
 0x4ab   : > { %4427 = vmatprep.subr.bf16.mxu0 %v4654_v32 }
 0x4ae   : > { %4428 = vmatpush3.bf16.msra.mxu0 %v4654_v32 }
 0x4af   : > { %4465 = vmatprep.subr.bf16.mxu0 %v5038_v45 }
 0x523   : > { %v2261_v14 = vpop.f32.mrb[56].mxu0 }
 0x524   : > { %v4321_v34 = vpop.f32.mrb[57].mxu0 }
 0x525   : > { %v2264_v20 = vpop.f32.mrb[58].mxu0 }
 0x526   : > { %v4322_v25 = vpop.f32.mrb[59].mxu0 }
 0x52b   : > { %v2307_v54 = vpop.f32.mrb[56].mxu1 }
 0x52c   : > { %v2957_v33 = vpack.c.bf16 %v2307_v54, %v2261_v14  ;;  %v4327_v2 = vpop.f32.mrb[57].mxu1 }
 0x52d   : > { %v2310_v57 = vpop.f32.mrb[58].mxu1 }
 0x52e   : > { %v4328_v27 = vpop.f32.mrb[59].mxu1  ;;  %4429 = vmatprep.mubr.bf16.mxu0 %v2957_v33 }
 0x533   : > { %v2353_v15 = vpop.f32.mrb[60].mxu0 }
 0x534   : > { %v4333_v51 = vpop.f32.mrb[61].mxu0 }
 0x535   : > { %v2356_v26 = vpop.f32.mrb[62].mxu0 }
 0x536   : > { %v4334_v3 = vpop.f32.mrb[63].mxu0 }
 0x53b   : > { %v2399_v48 = vpop.f32.mrb[60].mxu1  ;;  %v2445_v40 = vpop.f32.mrb[64].mxu0 }
 0x53c   : > { %v2958_v44 = vpack.c.bf16 %v2399_v48, %v2353_v15  ;;  %v4339_v13 = vpop.f32.mrb[61].mxu1  ;;  %v4345_v7 = vpop.f32.mrb[65].mxu0 }
 0x53d   : > { %v2402_v24 = vpop.f32.mrb[62].mxu1  ;;  %v2448_v10 = vpop.f32.mrb[66].mxu0 }
 0x53e   : > { %v4340_v62 = vpop.f32.mrb[63].mxu1  ;;  %v4346_v5 = vpop.f32.mrb[67].mxu0  ;;  %4430 = vmatmul.mubr.bf16.vlgmr.msra.gmra.mrb[88].mxu0 %v2958_v44 }
 0x543   : > { %v2491_v4 = vpop.f32.mrb[64].mxu1  ;;  %v2537_v55 = vpop.f32.mrb[68].mxu0 }
 0x544   : > { %v2959_v46 = vpack.c.bf16 %v2491_v4, %v2445_v40  ;;  %v4351_v22 = vpop.f32.mrb[65].mxu1  ;;  %v4357_v56 = vpop.f32.mrb[69].mxu0 }
 0x545   : > { %v2494_v16 = vpop.f32.mrb[66].mxu1  ;;  %v2540_v43 = vpop.f32.mrb[70].mxu0 }
 0x546   : > { %v4352_v52 = vpop.f32.mrb[67].mxu1  ;;  %v4358_v42 = vpop.f32.mrb[71].mxu0  ;;  %4433 = vmatprep.mubr.bf16.mxu0 %v2959_v46 }
 0x54b   : > { %v2583_v36 = vpop.f32.mrb[68].mxu1  ;;  %v2629_v12 = vpop.f32.mrb[72].mxu0 }
 0x54c   : > { %v2960_v37 = vpack.c.bf16 %v2583_v36, %v2537_v55  ;;  %v4363_v30 = vpop.f32.mrb[69].mxu1  ;;  %v4369_v17 = vpop.f32.mrb[73].mxu0 }
 0x54d   : > { %v2586_v11 = vpop.f32.mrb[70].mxu1  ;;  %v2632_v47 = vpop.f32.mrb[74].mxu0 }
 0x54e   : > { %v4364_v35 = vpop.f32.mrb[71].mxu1  ;;  %v4370_v6 = vpop.f32.mrb[75].mxu0  ;;  %4434 = vmatmul.mubr.bf16.gmra.mrb[92].mxu0 %v2960_v37 }
 0x553   : > { %v2675_v53 = vpop.f32.mrb[72].mxu1  ;;  %v2721_v31 = vpop.f32.mrb[76].mxu0 }
 0x554   : > { %v2961_v41 = vpack.c.bf16 %v2675_v53, %v2629_v12  ;;  %v4375_v21 = vpop.f32.mrb[73].mxu1  ;;  %v4381_v23 = vpop.f32.mrb[77].mxu0 }
 0x555   : > { %v2678_v32 = vpop.f32.mrb[74].mxu1  ;;  %v2724_v14 = vpop.f32.mrb[78].mxu0 }
 0x556   : > { %v4376_v34 = vpop.f32.mrb[75].mxu1  ;;  %v4382_v20 = vpop.f32.mrb[79].mxu0  ;;  %4437 = vmatprep.mubr.bf16.mxu0 %v2961_v41 }
 0x55b   : > { %v2767_v25 = vpop.f32.mrb[76].mxu1  ;;  %v2813_v54 = vpop.f32.mrb[80].mxu0 }
 0x55c   : > { %v2962_v33 = vpack.c.bf16 %v2767_v25, %v2721_v31  ;;  %v4387_v2 = vpop.f32.mrb[77].mxu1  ;;  %v4393_v57 = vpop.f32.mrb[81].mxu0 }
 0x55d   : > { %v2770_v27 = vpop.f32.mrb[78].mxu1  ;;  %v2816_v15 = vpop.f32.mrb[82].mxu0 }
 0x55e   : > { %v4388_v51 = vpop.f32.mrb[79].mxu1  ;;  %v4394_v26 = vpop.f32.mrb[83].mxu0  ;;  %4438 = vmatmul.mubr.bf16.gmra.mrb[96].mxu0 %v2962_v33 }
 0x563   : > { %v2859_v3 = vpop.f32.mrb[80].mxu1  ;;  %v2905_v48 = vpop.f32.mrb[84].mxu0 }
 0x564   : > { %v2963_v40 = vpack.c.bf16 %v2859_v3, %v2813_v54  ;;  %v4399_v44 = vpop.f32.mrb[81].mxu1  ;;  %v4405_v13 = vpop.f32.mrb[85].mxu0 }
 0x565   : > { %v2862_v7 = vpop.f32.mrb[82].mxu1  ;;  %v2908_v24 = vpop.f32.mrb[86].mxu0 }
 0x566   : > { %v4400_v10 = vpop.f32.mrb[83].mxu1  ;;  %v4406_v62 = vpop.f32.mrb[87].mxu0  ;;  %4441 = vmatprep.mubr.bf16.mxu0 %v2963_v40 }
 0x56b   : > { %v2951_v5 = vpop.f32.mrb[84].mxu1 }
 0x56c   : > { %v2964_v4 = vpack.c.bf16 %v2951_v5, %v2905_v48  ;;  %v4411_v55 = vpop.f32.mrb[85].mxu1 }
 0x56d   : > { %v2954_v46 = vpop.f32.mrb[86].mxu1 }
 0x56e   : > { %v4412_v22 = vpop.f32.mrb[87].mxu1  ;;  %4442 = vmatmul.mubr.bf16.gmra.mrb[100].mxu0 %v2964_v4 }
 0x56f   : > { %4481 = vmatprep.mubr.msk.bf16.mxu0 %vm5039_vm0, %v5038_v45 }
 0x611   : > { %v4431_v56 = vpop.f32.mrb[88].mxu0 }
 0x612   : > { %v3063_v16 = vpop.f32.mrb[89].mxu0  ;;  %v5901_v36 = vadd.f32 %v4431_v56, %v5414_v58 }
 0x613   : > { %v4432_v43 = vpop.f32.mrb[90].mxu0  ;;  %v3126_v2 = vadd.f32 %v3063_v16, %v5416_v59 }
 0x614   : > { %v3066_v52 = vpop.f32.mrb[91].mxu0  ;;  %v5908_v47 = vadd.f32 %v4432_v43, %v5418_v60  ;;  %v3159_v6 = vrot.slane %v5901_v36, 6 }
 0x615   : > { %v5898_v42 = vadd.f32 %v3066_v52, %v5420_v61  ;;  %v3195_v27 = vsel %vm3177_vm9, %v3126_v2, 0.0 }
 0x616   : > { %v3162_v31 = vrot.slane %v5908_v47, 5 }
 0x617   : > { %v3158_v30 = vrot.slane %v5898_v42, 7 }
 0x619   : > { %v3161_v58 = vsel %vm3160_vm3, %v3159_v6, %v3158_v30 }
 0x621   : > { %v4435_v12 = vpop.f32.mrb[92].mxu0 }
 0x622   : > { %v3079_v37 = vpop.f32.mrb[93].mxu0  ;;  %v5920_v41 = vadd.f32 %v4435_v12, %v5448_v19 }
 0x623   : > { %v5905_v17 = vadd.f32 %v3079_v37, %v5434_v9  ;;  %v4436_v11 = vpop.f32.mrb[94].mxu0  ;;  %v3164_v9 = vsel %vm3163_vm4, %v3162_v31, %v3161_v58 }
 0x624   : > { %v3082_v35 = vpop.f32.mrb[95].mxu0  ;;  %v3171_v32 = vrot.slane %v5920_v41, 2 }
 0x625   : > { %v5912_v61 = vadd.f32 %v3082_v35, %v5432_v8  ;;  %v3165_v53 = vrot.slane %v5905_v17, 4  ;;  %v5924_v8 = vadd.f32 %v4436_v11, %v5446_v18 }
 0x627   : > { %v3168_v60 = vrot.slane %v5912_v61, 3  ;;  %v3167_v21 = vsel %vm3166_vm5, %v3165_v53, %v3164_v9  ;;  %v3174_v20 = vrot.slane %v5924_v8, 1 }
 0x629   : > { %v3170_v23 = vsel %vm3169_vm6, %v3168_v60, %v3167_v21 }
 0x62a   : > { %v3173_v34 = vsel %vm3172_vm7, %v3171_v32, %v3170_v23 }
 0x62b   : > { %v3176_v18 = vsel %vm3175_vm8, %v3174_v20, %v3173_v34  ;;  %v5980_v20 = vand.u32 127, %v676_v0 }
 0x62d   : > { %vm678_vm11 = vcmp.lt.s32.totalorder %v5980_v20, 32  ;;  %v4678_v20 = vld [vmem:[#allocation13 + $0x38] sm:$0xff]  }
 0x631   : > { %v4439_v14 = vpop.f32.mrb[96].mxu0 }
 0x632   : > { %v3095_v25 = vpop.f32.mrb[97].mxu0 }
 0x633   : > { %v5931_v19 = vadd.f32 %v3095_v25, %v5458_v29  ;;  %v4440_v54 = vpop.f32.mrb[98].mxu0  ;;  %v5942_v29 = vadd.f32 %v4439_v14, %v5466_v39 }
 0x634   : > { %v3098_v33 = vpop.f32.mrb[99].mxu0  ;;  %v5946_v26 = vadd.f32 %v4440_v54, %v5464_v38 }
 0x635   : > { %v3178_v57 = vsel %vm3177_vm9, %v5931_v19, %v3176_v18  ;;  %v5939_v15 = vadd.f32 %v3098_v33, %v5456_v28  ;;  %v3180_v59 = vrot.slane %v5942_v29, 6 }
 0x636   : > { %3198 = vadd.xlane.f32.xlu1 %v3178_v57  ;;  %v3182_v28 = vrot.slane %v5946_v26, 5 }
 0x637   : > { %v3179_v51 = vrot.slane %v5939_v15, 7 }
 0x639   : > { %v3181_v40 = vsel %vm3160_vm3, %v3180_v59, %v3179_v51 }
 0x63a   : > { %3196 = vadd.xlane.f32.xlu1 %v3195_v27  ;;  %v3183_v62 = vsel %vm3163_vm4, %v3182_v28, %v3181_v40 }
 0x641   : > { %v4443_v3 = vpop.f32.mrb[100].mxu0 }
 0x642   : > { %v3111_v48 = vpop.f32.mrb[101].mxu0  ;;  %v5955_v39 = vadd.f32 %v4443_v3, %v5482_v1 }
 0x643   : > { %v5951_v44 = vadd.f32 %v3111_v48, %v5474_v50  ;;  %v4444_v13 = vpop.f32.mrb[102].mxu0 }
 0x644   : > { %v3114_v7 = vpop.f32.mrb[103].mxu0  ;;  %v5959_v38 = vadd.f32 %v4444_v13, %v5480_v63  ;;  %v3188_v4 = vrot.slane %v5955_v39, 2 }
 0x645   : > { %v3184_v24 = vrot.slane %v5951_v44, 4  ;;  %v5962_v10 = vadd.f32 %v3114_v7, %v5472_v49 }
 0x646   : > { %v3190_v1 = vrot.slane %v5959_v38, 1 }
 0x647   : > { %v3185_v50 = vsel %vm3166_vm5, %v3184_v24, %v3183_v62  ;;  %v3186_v5 = vrot.slane %v5962_v10, 3 }
 0x649   : > { %v3187_v55 = vsel %vm3169_vm6, %v3186_v5, %v3185_v50 }
 0x64a   : > { %v3189_v46 = vsel %vm3172_vm7, %v3188_v4, %v3187_v55 }
 0x64b   : > { %v3191_v63 = vsel %vm3175_vm8, %v3190_v1, %v3189_v46 }
 0x64c   : > { %v3201_v22 = vsel %vm3200_vm10, %v3191_v63, 0.0 }
 0x64d   : > { %3202 = vadd.xlane.f32.xlu0 %v3201_v22 }
 0x6c3   : > { %v3199_v49 = vpop.xlane.xlu1 %3198 }
 0x6c4   : > { %v3205_v56 = vmul.f32 0.03125, %v3199_v49 }
 0x6c6   : > { %v3210_v16 = vrot.slane %v3205_v56, 1  ;;  %v3211_v43 = vrot.slane %v3205_v56, 2  ;;  %v3212_v52 = vrot.slane %v3205_v56, 3  ;;  %v3213_v37 = vrot.slane %v3205_v56, 4 }
 0x6c7   : > { %v3197_v12 = vpop.xlane.xlu1 %3196  ;;  %v3214_v35 = vrot.slane %v3205_v56, 5  ;;  %v3215_v58 = vrot.slane %v3205_v56, 6  ;;  %v3248_v3 = vsub.f32 %v5931_v19, %v3205_v56 }
 0x6c8   : > { %v3241_v30 = vsub.f32 %v5898_v42, %v3210_v16  ;;  %v3204_v11 = vmul.f32 0.03125, %v3197_v12  ;;  %v3242_v6 = vsub.f32 %v5901_v36, %v3211_v43  ;;  %v3243_v53 = vsub.f32 %v5908_v47, %v3212_v52 }
 0x6c9   : > { %v3244_v9 = vsub.f32 %v5905_v17, %v3213_v37  ;;  %v3245_v23 = vsub.f32 %v5912_v61, %v3214_v35  ;;  %v3246_v14 = vsub.f32 %v5920_v41, %v3215_v58  ;;  %v3216_v36 = vrot.slane %v3205_v56, 7  ;;  %v4658_v35 = vld [vmem:[%s6146_s9 + $0x18] sm:$0xff]   ;;  %v4660_v58 = vld [vmem:[%s6146_s9 + $0x28] sm:$0xff]  }
 0x6ca   : > { %v3240_v31 = vsub.f32 %v3126_v2, %v3204_v11  ;;  %v3275_v60 = vrot.slane %v3241_v30, 6  ;;  %v3277_v32 = vrot.slane %v3242_v6, 5  ;;  %v3279_v34 = vrot.slane %v3243_v53, 4  ;;  %v4655_v30 = vld [vmem:[%s6146_s9] sm:$0xff]   ;;  %v4657_v11 = vld [vmem:[%s6146_s9 + $0x10] sm:$0xff]  }
 0x6cb   : > { %v3281_v47 = vrot.slane %v3244_v9, 3  ;;  %v3283_v17 = vrot.slane %v3245_v23, 2  ;;  %v3285_v18 = vrot.slane %v3246_v14, 1  ;;  %v3247_v61 = vsub.f32 %v5924_v8, %v3216_v36  ;;  %4446 = vmatpush3.bf16.msra.mxu1 %v4655_v30  ;;  %v4659_v6 = vld [vmem:[%s6146_s9 + $0x20] sm:$0xff]   ;;  %v4661_v53 = vld [vmem:[%s6146_s9 + $0x30] sm:$0xff]   ;;  %v4666_v23 = vld [vmem:[#allocation11 + $0x18] sm:$0xff]  }
 0x6cc   : > { %v3274_v21 = vrot.slane %v3240_v31, 7  ;;  %v3288_v1 = vrot.slane %v3248_v3, 7  ;;  %4447 = vmatprep.subr.bf16.mxu1 %v5038_v45  ;;  %v4662_v31 = vld [vmem:[%s6146_s9 + $0x38] sm:$0xff]   ;;  %v4663_v9 = vld [vmem:[#allocation11] sm:$0xff]   ;;  %v4668_v14 = vld [vmem:[#allocation11 + $0x28] sm:$0xff]  }
 0x6cd   : > { %4466 = vmatpush3.bf16.msra.mxu0 %v4663_v9 }
 0x6ce   : > { %v3276_v42 = vsel %vm3160_vm3, %v3275_v60, %v3274_v21  ;;  %v4664_v60 = vld [vmem:[#allocation11 + $0x8] sm:$0xff]   ;;  %4467 = vmatprep.subr.bf16.mxu0 %v5038_v45  ;;  %v4665_v21 = vld [vmem:[#allocation11 + $0x10] sm:$0xff]  }
 0x6cf   : > { %v3278_v25 = vsel %vm3163_vm4, %v3277_v32, %v3276_v42  ;;  %v4667_v32 = vld [vmem:[#allocation11 + $0x20] sm:$0xff]  }
 0x6d0   : > { %v3280_v54 = vsel %vm3166_vm5, %v3279_v34, %v3278_v25 }
 0x6d1   : > { %v3282_v33 = vsel %vm3169_vm6, %v3281_v47, %v3280_v54  ;;  %4468 = vmatpush3.bf16.msra.mxu0 %v4664_v60 }
 0x6d2   : > { %v3284_v41 = vsel %vm3172_vm7, %v3283_v17, %v3282_v33  ;;  %4469 = vmatprep.subr.bf16.mxu0 %v5038_v45 }
 0x6d3   : > { %v3286_v2 = vsel %vm3175_vm8, %v3285_v18, %v3284_v41  ;;  %v3933_v18 = vld [vmem:[%s6144_s7] ss:$0 sm:$0xff] }
 0x6d4   : > { %v3287_v0 = vsel %vm3177_vm9, %v3247_v61, %v3286_v2 }
 0x6d5   : > { %v5992_v57 = vsel %vm678_vm11, %v3287_v0, 0.0  ;;  %4470 = vmatpush3.bf16.msra.mxu0 %v4665_v21  ;;  %v3934_v0 = vld [vmem:[%s6145_s8] ss:$0 sm:$0xff] }
 0x6d6   : > { %v3306_v27 = vmul.f32 %v5992_v57, %v5992_v57  ;;  %4471 = vmatprep.subr.bf16.mxu0 %v5038_v45 }
 0x6d8   : > { %3308 = vadd.xlane.f32.xlu0 %v3306_v27 }
 0x6d9   : > { %4472 = vmatpush3.bf16.msra.mxu0 %v4666_v23 }
 0x6da   : > { %v3203_v51 = vpop.xlane.xlu0 %3202  ;;  %4473 = vmatprep.subr.bf16.mxu0 %v5038_v45 }
 0x6db   : > { %v3206_v59 = vmul.f32 0.03125, %v3203_v51 }
 0x6dd   : > { %v3217_v48 = vrot.slane %v3206_v59, 1  ;;  %v3218_v8 = vrot.slane %v3206_v59, 2  ;;  %v3219_v40 = vrot.slane %v3206_v59, 3  ;;  %v3220_v13 = vrot.slane %v3206_v59, 4  ;;  %4474 = vmatpush3.bf16.msra.mxu0 %v4667_v32 }
 0x6de   : > { %v3221_v28 = vrot.slane %v3206_v59, 5  ;;  %v3222_v7 = vrot.slane %v3206_v59, 6  ;;  %v3223_v63 = vrot.slane %v3206_v59, 7  ;;  %4475 = vmatprep.subr.bf16.mxu0 %v5038_v45 }
 0x6df   : > { %v3249_v24 = vsub.f32 %v5939_v15, %v3217_v48  ;;  %v3250_v62 = vsub.f32 %v5942_v29, %v3218_v8  ;;  %v3251_v50 = vsub.f32 %v5946_v26, %v3219_v40  ;;  %v3252_v5 = vsub.f32 %v5951_v44, %v3220_v13  ;;  %v4670_v48 = vld [vmem:[#allocation11 + $0x38] sm:$0xff]   ;;  %v3935_v8 = vld [vmem:[%s6147_s10] ss:$0 sm:$0xff] }
 0x6e0   : > { %v3253_v4 = vsub.f32 %v5962_v10, %v3221_v28  ;;  %v3254_v19 = vsub.f32 %v5955_v39, %v3222_v7  ;;  %v3255_v10 = vsub.f32 %v5959_v38, %v3223_v63  ;;  %v4656_v38 = vld [vmem:[%s6146_s9 + $0x8] sm:$0xff]  }
 0x6e1   : > { %v3289_v55 = vrot.slane %v3249_v24, 6  ;;  %v3291_v46 = vrot.slane %v3250_v62, 5  ;;  %v3293_v49 = vrot.slane %v3251_v50, 4  ;;  %v3295_v15 = vrot.slane %v3252_v5, 3  ;;  %4448 = vmatpush3.bf16.msra.mxu1 %v4656_v38  ;;  %4476 = vmatpush3.bf16.msra.mxu0 %v4668_v14 }
 0x6e2   : > { %v3297_v16 = vrot.slane %v3253_v4, 2  ;;  %v3299_v44 = vrot.slane %v3254_v19, 1  ;;  %4449 = vmatprep.subr.bf16.mxu1 %v5038_v45  ;;  %4477 = vmatprep.subr.bf16.mxu0 %v5038_v45 }
 0x6e3   : > { %v3290_v22 = vsel %vm3160_vm3, %v3289_v55, %v3288_v1  ;;  %v3944_v1 = vld [vmem:[%s6149_s12] ss:$0 sm:$0xff] }
 0x6e4   : > { %v3292_v56 = vsel %vm3163_vm4, %v3291_v46, %v3290_v22 }
 0x6e5   : > { %v3294_v29 = vsel %vm3166_vm5, %v3293_v49, %v3292_v56  ;;  %4450 = vmatpush3.bf16.msra.mxu1 %v4657_v11  ;;  %v4673_v11 = vld [vmem:[#allocation13 + $0x10] sm:$0xff]  }
 0x6e6   : > { %v3296_v26 = vsel %vm3169_vm6, %v3295_v15, %v3294_v29  ;;  %4451 = vmatprep.subr.bf16.mxu1 %v5038_v45  ;;  %v4671_v29 = vld [vmem:[#allocation13] sm:$0xff]  }
 0x6e7   : > { %v3298_v43 = vsel %vm3172_vm7, %v3297_v16, %v3296_v26  ;;  %v4672_v16 = vld [vmem:[#allocation13 + $0x8] sm:$0xff]  }
 0x6e8   : > { %v3300_v52 = vsel %vm3175_vm8, %v3299_v44, %v3298_v43 }
 0x6e9   : > { %v3301_v39 = vsel %vm3177_vm9, %v3255_v10, %v3300_v52  ;;  %4452 = vmatpush3.bf16.msra.mxu1 %v4658_v35  ;;  %v4674_v35 = vld [vmem:[#allocation13 + $0x18] sm:$0xff]  }
 0x6ea   : > { %v3305_v12 = vsel %vm678_vm11, %v3301_v39, 0.0  ;;  %4453 = vmatprep.subr.bf16.mxu1 %v5038_v45 }
 0x6eb   : > { %v3307_v37 = vmul.f32 %v3305_v12, %v3305_v12 }
 0x6ed   : > { %3310 = vadd.xlane.f32.xlu1 %v3307_v37  ;;  %4454 = vmatpush3.bf16.msra.mxu1 %v4659_v6  ;;  %v4675_v6 = vld [vmem:[#allocation13 + $0x20] sm:$0xff]  }
 0x6ee   : > { %4455 = vmatprep.subr.bf16.mxu1 %v5038_v45 }
 0x6f1   : > { %4456 = vmatpush3.bf16.msra.mxu1 %v4660_v58  ;;  %v4676_v58 = vld [vmem:[#allocation13 + $0x28] sm:$0xff]  }
 0x6f2   : > { %4457 = vmatprep.subr.bf16.mxu1 %v5038_v45 }
 0x6f5   : > { %4458 = vmatpush3.bf16.msra.mxu1 %v4661_v53  ;;  %v4677_v53 = vld [vmem:[#allocation13 + $0x30] sm:$0xff]  }
 0x6f6   : > { %4459 = vmatprep.subr.bf16.mxu1 %v5038_v45 }
 0x6f9   : > { %4460 = vmatpush3.bf16.msra.mxu1 %v4662_v31 }
 0x6fa   : > { %4485 = vmatprep.subr.bf16.mxu1 %v5038_v45 }
 0x765   : > { %v3309_v34 = vpop.xlane.xlu0 %3308 }
 0x766   : > { %v3312_v42 = vmul.f32 0.03125, %v3309_v34  ;;  %v3953_v34 = vld [vmem:[%s6205_s17] ss:$0 sm:$0xff]  ;;  %s6096_s17 = scalar_lea.sflag [#allocation4], %s642_s0 }
 0x768   : > { %v3314_v36 = vadd.f32 1e-05, %v3312_v42 }
 0x76a   : > { %4743 = vrsqrt.f32 %v3314_v36 }
 0x774   : > { %v4744_v17 = vpop.eup %4743 }
 0x775   : > { %v3318_v33 = vmul.f32 %v4744_v17, %v5992_v57  ;;  %v4669_v57 = vld [vmem:[#allocation11 + $0x30] sm:$0xff]  }
 0x776   : > { %4478 = vmatpush3.bf16.msra.mxu0 %v4669_v57 }
 0x777   : > { %v3326_v2 = vmul.f32 %v3933_v18, %v3318_v33  ;;  %4479 = vmatprep.subr.bf16.mxu0 %v5038_v45 }
 0x779   : > { %v3334_v51 = vadd.f32 %v3934_v0, %v3326_v2 }
 0x77a   : > { %v3311_v25 = vpop.xlane.xlu1 %3310  ;;  %4480 = vmatpush3.bf16.msra.mxu0 %v4670_v48 }
 0x77b   : > { %v3313_v47 = vmul.f32 0.03125, %v3311_v25 }
 0x77d   : > { %v3315_v54 = vadd.f32 1e-05, %v3313_v47  ;;  %v3954_v47 = vld [vmem:[%s6206_s27] ss:$0 sm:$0xff]  ;;  %s4953_s27 = scalar_lea.vmem %s4952_s29, 512 }
 0x77e   : > { %p4955_p0 = scmp.lt.s32.totalorder %s4953_s27, %s4947_s28 }
 0x77f   : > { %4745 = vrsqrt.f32 %v3315_v54 }
 0x780   : > { %p4956_p10 = por %p4955_p0, %p4954_p5 }
 0x782   : > { %p4957_p2 = pnand %p4956_p10, %p4950_p9 }
 0x789   : > { %v4746_v61 = vpop.eup %4745 }
 0x78a   : > { %v3319_v41 = vmul.f32 %v4746_v61, %v3305_v12  ;;  %v3955_v61 = vld [vmem:[%s6207_s24] ss:$0 sm:$0xff] }
 0x78c   : > { %v3327_v27 = vmul.f32 %v3933_v18, %v3319_v41 }
 0x78e   : > { %v3335_v59 = vadd.f32 %v3934_v0, %v3327_v27 }
 0x790   : > { %v3336_v3 = vpack.c.bf16 %v3335_v59, %v3334_v51 }
 0x792   : > { %4462 = vmatmul.mubr.bf16.vlgmr.msra.gmra.mrb[88].mxu1 %v3336_v3 }
 0x793   : > { %4501 = vmatprep.mubr.msk.bf16.mxu1 %vm5039_vm0, %v5038_v45  ;;  %4486 = vmatpush3.bf16.msra.mxu1 %v4671_v29 }
 0x794   : > { %4487 = vmatprep.subr.bf16.mxu1 %v5038_v45 }
 0x797   : > { %4488 = vmatpush3.bf16.msra.mxu1 %v4672_v16 }
 0x798   : > { %4489 = vmatprep.subr.bf16.mxu1 %v5038_v45 }
 0x79b   : > { %4490 = vmatpush3.bf16.msra.mxu1 %v4673_v11 }
 0x79c   : > { %4491 = vmatprep.subr.bf16.mxu1 %v5038_v45 }
 0x79f   : > { %4492 = vmatpush3.bf16.msra.mxu1 %v4674_v35 }
 0x7a0   : > { %4493 = vmatprep.subr.bf16.mxu1 %v5038_v45 }
 0x7a3   : > { %4494 = vmatpush3.bf16.msra.mxu1 %v4675_v6 }
 0x7a4   : > { %4495 = vmatprep.subr.bf16.mxu1 %v5038_v45 }
 0x7a7   : > { %4496 = vmatpush3.bf16.msra.mxu1 %v4676_v58 }
 0x7a8   : > { %4497 = vmatprep.subr.bf16.mxu1 %v5038_v45 }
 0x7ab   : > { %4498 = vmatpush3.bf16.msra.mxu1 %v4677_v53 }
 0x7ac   : > { %4499 = vmatprep.subr.bf16.mxu1 %v5038_v45 }
 0x7af   : > { %4500 = vmatpush3.bf16.msra.mxu1 %v4678_v20 }
 0x865   : > { %v3441_v40 = vpop.f32.mrb[88].mxu1 }
 0x866   : > { %v3442_v13 = vadd.f32 %v3935_v8, %v3441_v40  ;;  %v4463_v28 = vpop.f32.mrb[89].mxu1 }
 0x867   : > { %v3444_v7 = vpop.f32.mrb[90].mxu1 }
 0x868   : > { %v3445_v24 = vadd.f32 %v3935_v8, %v3444_v7  ;;  %v4464_v62 = vpop.f32.mrb[91].mxu1  ;;  %v3448_v50 = vmax.f32 %v3442_v13, 0.0 }
 0x86a   : > { %v3449_v5 = vmax.f32 %v3445_v24, 0.0 }
 0x86c   : > { %v3450_v4 = vpack.c.bf16 %v3449_v5, %v3448_v50 }
 0x86e   : > { %4482 = vmatmul.mubr.bf16.vlgmr.msra.gmra.mrb[104].mxu0 %v3450_v4 }
 0x941   : > { %v3555_v55 = vpop.f32.mrb[104].mxu0 }
 0x942   : > { %v3556_v46 = vadd.f32 %v3944_v1, %v3555_v55  ;;  %v4483_v19 = vpop.f32.mrb[105].mxu0 }
 0x943   : > { %v3558_v63 = vpop.f32.mrb[106].mxu0 }
 0x944   : > { %v3559_v22 = vadd.f32 %v3944_v1, %v3558_v63  ;;  %v4484_v49 = vpop.f32.mrb[107].mxu0  ;;  %v3562_v56 = vadd.f32 %v3556_v46, %v3334_v51 }
 0x946   : > { %3564 = vadd.xlane.f32.xlu0 %v3562_v56  ;;  %v3563_v15 = vadd.f32 %v3559_v22, %v3335_v59 }
 0x948   : > { %3566 = vadd.xlane.f32.xlu1 %v3563_v15 }
 0x9d3   : > { %v3565_v26 = vpop.xlane.xlu0 %3564 }
 0x9d4   : > { %v3568_v44 = vmul.f32 0.03125, %v3565_v26 }
 0x9d5   : > { %v3567_v10 = vpop.xlane.xlu1 %3566 }
 0x9d6   : > { %v3570_v43 = vsub.f32 %v3562_v56, %v3568_v44  ;;  %v3569_v52 = vmul.f32 0.03125, %v3567_v10 }
 0x9d8   : > { %v3571_v39 = vsub.f32 %v3563_v15, %v3569_v52  ;;  %v3572_v12 = vsel %vm678_vm11, %v3570_v43, 0.0 }
 0x9d9   : > { %v3574_v37 = vmul.f32 %v3572_v12, %v3572_v12 }
 0x9da   : > { %v3573_v30 = vsel %vm678_vm11, %v3571_v39, 0.0 }
 0x9db   : > { %3576 = vadd.xlane.f32.xlu0 %v3574_v37  ;;  %v3575_v38 = vmul.f32 %v3573_v30, %v3573_v30 }
 0x9dd   : > { %3578 = vadd.xlane.f32.xlu1 %v3575_v38 }
 0xa68   : > { %v3577_v31 = vpop.xlane.xlu0 %3576 }
 0xa69   : > { %v3580_v9 = vmul.f32 0.03125, %v3577_v31 }
 0xa6a   : > { %v3579_v60 = vpop.xlane.xlu1 %3578 }
 0xa6b   : > { %v3582_v21 = vadd.f32 1e-05, %v3580_v9  ;;  %v3581_v23 = vmul.f32 0.03125, %v3579_v60 }
 0xa6d   : > { %4747 = vrsqrt.f32 %v3582_v21  ;;  %v3583_v32 = vadd.f32 1e-05, %v3581_v23 }
 0xa6f   : > { %4749 = vrsqrt.f32 %v3583_v32 }
 0xa77   : > { %v4748_v14 = vpop.eup %4747 }
 0xa78   : > { %v3586_v42 = vmul.f32 %v4748_v14, %v3572_v12 }
 0xa79   : > { %v4750_v36 = vpop.eup %4749 }
 0xa7a   : > { %v3587_v25 = vmul.f32 %v4750_v36, %v3573_v30  ;;  %v3594_v45 = vmul.f32 %v3953_v34, %v3586_v42 }
 0xa7c   : > { %v3595_v54 = vmul.f32 %v3953_v34, %v3587_v25  ;;  %v3602_v17 = vadd.f32 %v3954_v47, %v3594_v45 }
 0xa7e   : > { %v3603_v33 = vadd.f32 %v3954_v47, %v3595_v54 }
 0xa80   : > { %v3604_v18 = vpack.c.bf16 %v3603_v33, %v3602_v17 }
 0xa82   : > { %4502 = vmatmul.mubr.bf16.vlgmr.msra.gmra.mrb[92].mxu1 %v3604_v18 }
 0xb55   : > { %v3709_v41 = vpop.f32.mrb[92].mxu1 }
 0xb56   : > { %v3710_v2 = vadd.f32 %v3955_v61, %v3709_v41  ;;  %v4503_v0 = vpop.f32.mrb[93].mxu1 }
 0xb57   : > { %v3712_v27 = vpop.f32.mrb[94].mxu1 }
 0xb58   : > { %3716 = vst [vmem:[%s644_s23] sm:$0xff] %v3710_v2  ;;  %v3713_v51 = vadd.f32 %v3955_v61, %v3712_v27  ;;  %v4504_v59 = vpop.f32.mrb[95].mxu1 }
 0xb5a   : > { %3717 = vst [vmem:[%s644_s23 + $0x8] sm:$0xff] %v3713_v51 }
 0xb5b   : > { %4960 = shalt.err (!%p4957_p2)
}
 0xb5c   : > { %s4961_s0 = scalar_lea.hbm %s6094_s13, 256  ;;  %s4965_s30 = scalar_lea.hbm %s6209_s18, 512 }
 0xb5d   : > { %p4962_p3 = scmp.ne.s32.totalorder %s6094_s13, %s4961_s0  ;;  %p4966_p7 = scmp.lt.u32.totalorder %s6094_s13, %s6209_s18 }
 0xb5e   : > { %p4967_p8 = scmp.lt.u32.totalorder %s4965_s30, %s4961_s0  ;;  %p4969_p13 = scmp.lt.u32.totalorder %s4961_s0, %s6094_s13 }
 0xb5f   : > { %p4963_p4 = pnand %p4962_p3, %p6210_p1 }
 0xb60   : > { %p4968_p11 = por %p4967_p8, %p4966_p7 }
 0xb61   : > { %p4964_p12 = pneg %p4963_p4 }
 0xb62   : > { %p4970_p6 = por %p4969_p13, %p4968_p11 }
 0xb64   : > { %p4971_p9 = pnand %p4970_p6, %p4964_p12 }
 0xb66   : > { %4974 = shalt.err (!%p4971_p9)
}
 0xb67   : > { %s5041_s16 = smov 128   ;;  %s5042_s20 = smov 8  }
 0xb68   : > { %4533 = dma.vmem_to_hbm [thread:$0]  (%p6210_p1), %s6089_s3, 256, %s6094_s13, %s6096_s17, %s5041_s16, %s5041_s16, %s5042_s20  }
 0xb69 PF: > { %s6211_s19 = sld [smem:[#allocation22_spill]]  ;;  %s6212_s28 = sld [smem:[#allocation20_spill]] }
 0xb6a   : > { %s6213_s21 = sld [smem:[#allocation26_spill]] }
 0xb6f   : > { %p4575_p5 = scmp.ge.s32.totalorder %s6211_s19, 2  ;;  %s3747_s29 = sand.u32 1, %s6212_s28  }
 0xb70   : > { %p6214_p0 = scmp.ne.s32.totalorder %s6213_s21, 0  ;;  %s3748_s27 = scalar_lea.sflag [#allocation4], %s3747_s29 }
 0xb72   : > { %p4558_p10 = pnand %p4575_p5, %p6214_p0 }
 0xb74   : > { %5008 = dma.done.wait (!%p4558_p10), %s3748_s27, 256  }
 0xb75   : > { %5010 = vsyncadd (!%p4558_p10), %s3748_s27, 4294967040  ;;  %s6215_s27 = sld [smem:[#allocation23_spill]]  ;;  %s6216_s0 = sld [smem:[#allocation21_spill]] }
 0xb76   : > { %s6217_s26 = sld [smem:[#allocation24_spill]]  ;;  %s6218_s24 = smov %s5017_s25 }
 0xb7b   : > { %p31_p2 = scmp.ge.s32.totalorder %s6215_s27, 4   ;;  %s6219_s25 = smov %s6216_s0 }
 0xb7d   :  { %33 = sbr.rel (!%p31_p2) target bundleno = 15 (0xf), region = 152 }
 0xb84   :  { %3753 = vsyncpa [#allocation3], 1 }
 0xb85   :  { %3755 = vsyncpa [#allocation3 + $0x1], 1 }
 0xb86   :  { %3756 = vsyncpa [#allocation6], 1 }
 0xb87   :  { %3757 = vsyncpa [#allocation9], 1 }
 0xb88   :  { %3758 = vsyncpa [#allocation12], 1 }
 0xb89   :  { %3759 = vsyncpa [#allocation4], 1 }
 0xb8a   :  { %3761 = vsyncpa [#allocation4 + $0x1], 1 }

</bundles_post_ra>
